<compile_context>
chip_gen: v7x
topology: tpu7x:2x2x1
jax: 0.10.0
libtpu: 0.0.40
codegen_flags: <defaults>
</compile_context>

<pallas_src>
import functools

import jax
import jax.numpy as jnp
import numpy as np
from jax.experimental import pallas as pl
from jax.experimental.pallas import tpu as pltpu


# ----------------------------------------------------------------------------
# Pallas kernel: Bw windows per grid step.
# ----------------------------------------------------------------------------
def _window_attn_kernel(x_ref, wq_ref, wk_ref, wv_ref, wp_ref, bp_ref, bm_ref,
                        o_ref, attn_ref=None, *, num_heads, bw, n_tok):
    m, c = x_ref.shape                      # m = bw * n_tok
    hd = c // num_heads

    x = x_ref[...]                          # (m, C)

    acc = jnp.zeros((m, c), jnp.float32)    # head-accumulated projected output

    for h in range(num_heads):              # static unroll; H is small
        # Head-major pre-split weights -> no lane slicing of a packed (m, 3C)
        # qkv result; the softmax scale is already folded into wq.
        q = jnp.dot(x, wq_ref[h], preferred_element_type=jnp.float32)   # (m, hd)
        k = jnp.dot(x, wk_ref[h], preferred_element_type=jnp.float32)
        v = jnp.dot(x, wv_ref[h], preferred_element_type=jnp.float32)

        qb = q.reshape(bw, n_tok, hd)
        kb = k.reshape(bw, n_tok, hd)
        vb = v.reshape(bw, n_tok, hd)

        # Scores: batched over the bw windows, contraction over head_dim
        # (dot_general; no explicit k.T / XLU transpose).
        s = jnp.einsum('bnd,bmd->bnm', qb, kb,
                       preferred_element_type=jnp.float32)              # (bw,N,N)

        # Pre-combined rel-pos bias + shifted-window mask, read per head.
        # bm_ref leading dim is either bw (masked path) or 1 (no-mask path,
        # broadcast over the windows of this step).
        s = s + bm_ref[:, h]

        # Numerically stable softmax in f32; reciprocal runs on the EUP.
        s = s - jnp.max(s, axis=-1, keepdims=True)
        p = jnp.exp(s)
        p = p * pl.reciprocal(jnp.sum(p, axis=-1, keepdims=True), approx=True)

        if attn_ref is not None:
            # lane-dense (N*N wide) per-head store; avoids an H-way stack and
            # keeps vreg pressure at O(bw*N*N) instead of O(bw*H*N*N).
            attn_ref[:, h, :] = p.reshape(bw, n_tok * n_tok).astype(attn_ref.dtype)

        o = jnp.einsum('bnm,bmd->bnd', p.astype(vb.dtype), vb,
                       preferred_element_type=jnp.float32)              # (bw,N,hd)

        # Head-concat + output projection fused into a per-head accumulation:
        # acc += o_h @ wproj[h*hd:(h+1)*hd, :]   (no lane-axis concatenate).
        acc = acc + jnp.dot(o.reshape(m, hd), wp_ref[h],
                            preferred_element_type=jnp.float32)

    out = acc + bp_ref[...].astype(jnp.float32)        # (1, C) broadcast
    o_ref[...] = out.astype(o_ref.dtype)


# ----------------------------------------------------------------------------
# Window-batch factor: Bw windows per grid step.
#   - Bw must divide B, and be compatible with the mask period nW.
#   - Prefer Bw*N >= 256 rows (fills the v6e/v7x MXU; >=128 suffices on v5e)
#     while keeping at least 2 grid steps (v7x has 2 TensorCores).
# ----------------------------------------------------------------------------
def _choose_bw(B, N, nW, target_rows=256, max_rows=2048):
    valid = [d for d in range(1, B + 1)
             if B % d == 0 and (nW % d == 0 or d % nW == 0) and d * N <= max_rows]
    if not valid:
        return 1
    pref = [d for d in valid if B // d >= 2] or valid
    big = [d for d in pref if d * N >= target_rows]
    return min(big) if big else max(pref)


# ----------------------------------------------------------------------------
# Wrapper
# ----------------------------------------------------------------------------
def window_attention(x, mask, params, num_heads, return_attn=True):
    """x: (B, N, C); mask: (nW, N, N) or None; returns (out, attn) or out."""
    B, N, C = x.shape
    H = num_heads
    hd = C // H
    scale = hd ** (-0.5)
    nW = 1 if mask is None else mask.shape[0]

    Bw = _choose_bw(B, N, nW)
    num_steps = B // Bw

    # ---- one-time parameter / bias preparation (plain JAX glue) -------------
    rpi = params["relative_position_index"][:N, :N].reshape(-1)
    rpb = params["relative_position_bias_table"][rpi].reshape(N, N, H)
    rpb = jnp.transpose(rpb, (2, 0, 1)).astype(jnp.float32)          # (H, N, N)

    wqkv = params["wqkv"]                                            # (C, 3C)
    wq = (scale * wqkv[:, 0 * C:1 * C]).reshape(C, H, hd).transpose(1, 0, 2)
    wk = wqkv[:, 1 * C:2 * C].reshape(C, H, hd).transpose(1, 0, 2)
    wv = wqkv[:, 2 * C:3 * C].reshape(C, H, hd).transpose(1, 0, 2)   # (H, C, hd)
    wp = params["wproj"].reshape(H, hd, C)                           # (H, hd, C)
    bp = params["bproj"].reshape(1, C)

    # Pre-combine rel-pos bias + mask so one block row == one grid step.
    if mask is None:
        bm = rpb[None]                                               # (1, H, N, N)
        bm_block = (1, H, N, N)
        bm_index = lambda i: (0, 0, 0, 0)
        bm_rows = 1
    else:
        bm_w = rpb[None] + mask[:, None, :, :].astype(jnp.float32)   # (nW,H,N,N)
        if Bw % nW == 0:
            bm = jnp.tile(bm_w, (Bw // nW, 1, 1, 1))                 # (Bw,H,N,N)
            bm_block = (Bw, H, N, N)
            bm_index = lambda i: (0, 0, 0, 0)
        else:                                                        # nW % Bw == 0
            P = nW // Bw
            bm = bm_w                                                # (P*Bw,H,N,N)
            bm_block = (Bw, H, N, N)
            bm_index = lambda i: (i % P, 0, 0, 0)
        bm_rows = Bw

    x_flat = x.reshape(B * N, C)

    # Rough per-step VMEM budget hint (matters on v7x's 64 MiB at real shapes).
    itemsize = jnp.dtype(x.dtype).itemsize
    blk_bytes = (2 * Bw * N * C * itemsize
                 + (Bw * H * N * N * itemsize if return_attn else 0)
                 + bm_rows * H * N * N * 4
                 + (3 * H * C * hd + H * hd * C + C) * 4)
    vmem_limit = int(min(48 * 2 ** 20, max(32 * 2 ** 20, 8 * blk_bytes)))

    if return_attn:
        out_shape = (jax.ShapeDtypeStruct((B * N, C), x.dtype),
                     jax.ShapeDtypeStruct((B, H, N * N), x.dtype))
        out_specs = (pl.BlockSpec((Bw * N, C), lambda i: (i, 0)),
                     pl.BlockSpec((Bw, H, N * N), lambda i: (i, 0, 0)))
    else:
        out_shape = jax.ShapeDtypeStruct((B * N, C), x.dtype)
        out_specs = pl.BlockSpec((Bw * N, C), lambda i: (i, 0))

    kernel = functools.partial(_window_attn_kernel,
                               num_heads=H, bw=Bw, n_tok=N)

    result = pl.pallas_call(
        kernel,
        out_shape=out_shape,
        grid_spec=pltpu.PrefetchScalarGridSpec(
            num_scalar_prefetch=0,
            grid=(num_steps,),
            in_specs=[
                pl.BlockSpec((Bw * N, C), lambda i: (i, 0)),         # x slab
                pl.BlockSpec((H, C, hd), lambda i: (0, 0, 0)),       # wq (scaled)
                pl.BlockSpec((H, C, hd), lambda i: (0, 0, 0)),       # wk
                pl.BlockSpec((H, C, hd), lambda i: (0, 0, 0)),       # wv
                pl.BlockSpec((H, hd, C), lambda i: (0, 0, 0)),       # wproj
                pl.BlockSpec((1, C), lambda i: (0, 0)),              # proj bias
                pl.BlockSpec(bm_block, bm_index),                    # bias+mask
            ],
            out_specs=out_specs,
        ),
        compiler_params=pltpu.CompilerParams(
            dimension_semantics=("parallel",),
            vmem_limit_bytes=vmem_limit),
    )(x_flat, wq, wk, wv, wp, bp, bm)

    if return_attn:
        out_flat, attn_flat = result
        return out_flat.reshape(B, N, C), attn_flat.reshape(B, H, N, N)
    return result.reshape(B, N, C)


# ----------------------------------------------------------------------------
# Parameter construction (deterministic, in-script)
# ----------------------------------------------------------------------------
def make_relative_position_index(window_size):
    coords = jnp.stack(
        jnp.meshgrid(*[jnp.arange(w) for w in window_size], indexing="ij"))
    coords_flatten = coords.reshape(len(window_size), -1)
    rel = coords_flatten[:, :, None] - coords_flatten[:, None, :]
    rel = jnp.transpose(rel, (1, 2, 0))
    if len(window_size) == 3:
        rel = rel.at[:, :, 0].add(window_size[0] - 1)
        rel = rel.at[:, :, 1].add(window_size[1] - 1)
        rel = rel.at[:, :, 2].add(window_size[2] - 1)
        rel = rel.at[:, :, 0].multiply(
            (2 * window_size[1] - 1) * (2 * window_size[2] - 1))
        rel = rel.at[:, :, 1].multiply(2 * window_size[2] - 1)
    else:
        rel = rel.at[:, :, 0].add(window_size[0] - 1)
        rel = rel.at[:, :, 1].add(window_size[1] - 1)
        rel = rel.at[:, :, 0].multiply(2 * window_size[1] - 1)
    return rel.sum(-1)                                        # (N, N) int32


def make_params(key, dim, num_heads, window_size):
    k1, k2, k3, k4 = jax.random.split(key, 4)
    table_len = 1
    for w in window_size:
        table_len *= (2 * w - 1)
    # trunc_normal_(std=0.02, a=-2, b=2): truncation >100 sigma away -> plain normal
    rpb_table = 0.02 * jax.random.normal(k1, (table_len, num_heads), jnp.float32)
    wqkv = 0.05 * jax.random.normal(k2, (dim, 3 * dim), jnp.float32)  # qkv_bias=False
    wproj = 0.05 * jax.random.normal(k3, (dim, dim), jnp.float32)
    bproj = 0.01 * jax.random.normal(k4, (dim,), jnp.float32)
    return {
        "relative_position_bias_table": rpb_table,
        "relative_position_index": make_relative_position_index(window_size),
        "wqkv": wqkv,
        "wproj": wproj,
        "bproj": bproj,
    }


# ----------------------------------------------------------------------------
# Pure-JAX reference (mirrors the PyTorch forward)
# ----------------------------------------------------------------------------
def reference(x, mask, params, num_heads):
    B, N, C = x.shape
    hd = C // num_heads
    scale = hd ** (-0.5)
    qkv = (x @ params["wqkv"]).reshape(B, N, 3, num_heads, hd)
    qkv = jnp.transpose(qkv, (2, 0, 3, 1, 4))
    q, k, v = qkv[0], qkv[1], qkv[2]
    q = q * scale
    attn = q @ jnp.swapaxes(k, -2, -1)                         # (B, H, N, N)
    rpi = params["relative_position_index"][:N, :N].reshape(-1)
    rpb = params["relative_position_bias_table"][rpi].reshape(N, N, num_heads)
    rpb = jnp.transpose(rpb, (2, 0, 1))
    attn = attn + rpb[None]
    if mask is not None:
        nW = mask.shape[0]
        attn = attn.reshape(B // nW, nW, num_heads, N, N) + mask[None, :, None]
        attn = attn.reshape(-1, num_heads, N, N)
    attn = jax.nn.softmax(attn, axis=-1)
    out = jnp.transpose(attn @ v, (0, 2, 1, 3)).reshape(B, N, C)
    out = out @ params["wproj"] + params["bproj"]
    return out, attn


# ----------------------------------------------------------------------------
if __name__ == "__main__":
    dim = 32
    num_heads = 4
    window_size = (4, 4)
    N = window_size[0] * window_size[1]   # 16 tokens per window
    batch = 2
    nW = 4
    B = batch * nW                        # 8 windows total

    key = jax.random.PRNGKey(0)
    kx, km, kp = jax.random.split(key, 3)

    x = jax.random.normal(kx, (B, N, dim), jnp.float32)
    # shifted-window style mask: 0 (keep) or -100 (drop)
    mask = jnp.where(jax.random.uniform(km, (nW, N, N)) > 0.3, 0.0, -100.0)
    mask = mask.astype(jnp.float32)

    params = make_params(kp, dim, num_heads, window_size)

    # masked path
    out, attn = window_attention(x, mask, params, num_heads)
    out = jax.block_until_ready(out)
    attn = jax.block_until_ready(attn)
    out_ref, attn_ref = reference(x, mask, params, num_heads)
    assert out.shape == (B, N, dim) and attn.shape == (B, num_heads, N, N)
    np.testing.assert_allclose(np.asarray(out), np.asarray(out_ref),
                               rtol=5e-3, atol=5e-3)
    np.testing.assert_allclose(np.asarray(attn), np.asarray(attn_ref),
                               rtol=5e-3, atol=5e-3)

    # no-mask path (bias streamed once as (1, H, N, N) and broadcast in-kernel)
    out_nm, attn_nm = window_attention(x, None, params, num_heads)
    out_nm = jax.block_until_ready(out_nm)
    out_ref_nm, attn_ref_nm = reference(x, None, params, num_heads)
    np.testing.assert_allclose(np.asarray(out_nm), np.asarray(out_ref_nm),
                               rtol=5e-3, atol=5e-3)
    np.testing.assert_allclose(np.asarray(attn_nm), np.asarray(attn_ref_nm),
                               rtol=5e-3, atol=5e-3)

    # attention output skipped (drops the B*H*N*N HBM writeback)
    out_only = window_attention(x, mask, params, num_heads, return_attn=False)
    out_only = jax.block_until_ready(out_only)
    np.testing.assert_allclose(np.asarray(out_only), np.asarray(out_ref),
                               rtol=5e-3, atol=5e-3)

    print("KERNEL_OK")
</pallas_src>

<mosaic_0001>
module attributes {stable_mosaic.version = 11 : i64} {
  func.func @_window_attn_kernel(%arg0: i32, %arg1: memref<64x32xf32, #tpu.memory_space<vmem>>, %arg2: memref<4x32x8xf32, #tpu.memory_space<vmem>>, %arg3: memref<4x32x8xf32, #tpu.memory_space<vmem>>, %arg4: memref<4x32x8xf32, #tpu.memory_space<vmem>>, %arg5: memref<4x8x32xf32, #tpu.memory_space<vmem>>, %arg6: memref<1x32xf32, #tpu.memory_space<vmem>>, %arg7: memref<4x4x16x16xf32, #tpu.memory_space<vmem>>, %arg8: memref<64x32xf32, #tpu.memory_space<vmem>>, %arg9: memref<4x4x256xf32, #tpu.memory_space<vmem>>) attributes {dimension_semantics = [#tpu.dimension_semantics<parallel>], iteration_bounds = array<i64: 2>, scalar_prefetch = 0 : i64, scratch_operands = 0 : i64, tpu.core_type = #tpu.core_type<tc>, window_params = [{transform_indices = @transform_0, window_bounds = array<i64: 64, 32>}, {pipeline_mode = #tpu.pipeline_mode<synchronous>, transform_indices = @transform_1, window_bounds = array<i64: 4, 32, 8>}, {pipeline_mode = #tpu.pipeline_mode<synchronous>, transform_indices = @transform_2, window_bounds = array<i64: 4, 32, 8>}, {pipeline_mode = #tpu.pipeline_mode<synchronous>, transform_indices = @transform_3, window_bounds = array<i64: 4, 32, 8>}, {pipeline_mode = #tpu.pipeline_mode<synchronous>, transform_indices = @transform_4, window_bounds = array<i64: 4, 8, 32>}, {pipeline_mode = #tpu.pipeline_mode<synchronous>, transform_indices = @transform_5, window_bounds = array<i64: 1, 32>}, {pipeline_mode = #tpu.pipeline_mode<synchronous>, transform_indices = @transform_6, window_bounds = array<i64: 4, 4, 16, 16>}, {transform_indices = @transform_7, window_bounds = array<i64: 64, 32>}, {transform_indices = @transform_8, window_bounds = array<i64: 4, 4, 256>}]} {
    %c0 = arith.constant 0 : index
    %c0_0 = arith.constant 0 : index
    %0 = vector.load %arg1[%c0, %c0_0] : memref<64x32xf32, #tpu.memory_space<vmem>>, vector<64x32xf32>
    %cst = arith.constant 0.000000e+00 : f32
    %1 = vector.broadcast %cst : f32 to vector<64x32xf32>
    %c0_1 = arith.constant 0 : index
    %c0_2 = arith.constant 0 : index
    %c0_3 = arith.constant 0 : index
    %2 = vector.load %arg2[%c0_1, %c0_2, %c0_3] : memref<4x32x8xf32, #tpu.memory_space<vmem>>, vector<1x32x8xf32>
    %3 = vector.shape_cast %2 : vector<1x32x8xf32> to vector<32x8xf32>
    %cst_4 = arith.constant dense<0.000000e+00> : vector<64x8xf32>
    %4 = tpu.matmul %0, %3, %cst_4 {dimension_numbers = #tpu.dot_dimension_numbers<[1], [0], [0], [1], [0, 0, 1, 1], [], []>} : vector<64x32xf32>, vector<32x8xf32>, vector<64x8xf32> -> vector<64x8xf32>
    %c0_5 = arith.constant 0 : index
    %c0_6 = arith.constant 0 : index
    %c0_7 = arith.constant 0 : index
    %5 = vector.load %arg3[%c0_5, %c0_6, %c0_7] : memref<4x32x8xf32, #tpu.memory_space<vmem>>, vector<1x32x8xf32>
    %6 = vector.shape_cast %5 : vector<1x32x8xf32> to vector<32x8xf32>
    %cst_8 = arith.constant dense<0.000000e+00> : vector<64x8xf32>
    %7 = tpu.matmul %0, %6, %cst_8 {dimension_numbers = #tpu.dot_dimension_numbers<[1], [0], [0], [1], [0, 0, 1, 1], [], []>} : vector<64x32xf32>, vector<32x8xf32>, vector<64x8xf32> -> vector<64x8xf32>
    %c0_9 = arith.constant 0 : index
    %c0_10 = arith.constant 0 : index
    %c0_11 = arith.constant 0 : index
    %8 = vector.load %arg4[%c0_9, %c0_10, %c0_11] : memref<4x32x8xf32, #tpu.memory_space<vmem>>, vector<1x32x8xf32>
    %9 = vector.shape_cast %8 : vector<1x32x8xf32> to vector<32x8xf32>
    %cst_12 = arith.constant dense<0.000000e+00> : vector<64x8xf32>
    %10 = tpu.matmul %0, %9, %cst_12 {dimension_numbers = #tpu.dot_dimension_numbers<[1], [0], [0], [1], [0, 0, 1, 1], [], []>} : vector<64x32xf32>, vector<32x8xf32>, vector<64x8xf32> -> vector<64x8xf32>
    %11 = vector.shape_cast %4 : vector<64x8xf32> to vector<4x16x8xf32>
    %12 = vector.shape_cast %7 : vector<64x8xf32> to vector<4x16x8xf32>
    %13 = vector.shape_cast %10 : vector<64x8xf32> to vector<4x16x8xf32>
    "tpu.trace_start"() <{level = 10 : i32, message = "bnd,bmd->bnm"}> : () -> ()
    %cst_13 = arith.constant dense<0.000000e+00> : vector<4x16x16xf32>
    %14 = tpu.matmul %11, %12, %cst_13 {dimension_numbers = #tpu.dot_dimension_numbers<[2], [2], [1], [1], [0, 0, 0, 1, 1, 1], [0], [0]>} : vector<4x16x8xf32>, vector<4x16x8xf32>, vector<4x16x16xf32> -> vector<4x16x16xf32>
    "tpu.trace_stop"() : () -> ()
    %c0_14 = arith.constant 0 : index
    %c0_15 = arith.constant 0 : index
    %c0_16 = arith.constant 0 : index
    %c0_17 = arith.constant 0 : index
    %15 = vector.load %arg7[%c0_14, %c0_15, %c0_16, %c0_17] : memref<4x4x16x16xf32, #tpu.memory_space<vmem>>, vector<4x1x16x16xf32>
    %16 = vector.shape_cast %15 : vector<4x1x16x16xf32> to vector<4x16x16xf32>
    %17 = arith.addf %14, %16 : vector<4x16x16xf32>
    %cst_18 = arith.constant dense<0xFF800000> : vector<4x16xf32>
    %18 = vector.multi_reduction <maximumf>, %17, %cst_18 [2] : vector<4x16x16xf32> to vector<4x16xf32>
    %19 = vector.shape_cast %18 : vector<4x16xf32> to vector<4x16x1xf32>
    %20 = vector.broadcast %19 : vector<4x16x1xf32> to vector<4x16x16xf32>
    %21 = arith.subf %17, %20 : vector<4x16x16xf32>
    %22 = math.exp %21 : vector<4x16x16xf32>
    %cst_19 = arith.constant dense<0.000000e+00> : vector<4x16xf32>
    %23 = vector.multi_reduction <add>, %22, %cst_19 [2] : vector<4x16x16xf32> to vector<4x16xf32>
    %24 = vector.shape_cast %23 : vector<4x16xf32> to vector<4x16x1xf32>
    %25 = tpu.reciprocal %24 {approx = true} : vector<4x16x1xf32> -> vector<4x16x1xf32>
    %26 = vector.broadcast %25 : vector<4x16x1xf32> to vector<4x16x16xf32>
    %27 = arith.mulf %22, %26 : vector<4x16x16xf32>
    %28 = vector.shape_cast %27 : vector<4x16x16xf32> to vector<4x256xf32>
    %c0_20 = arith.constant 0 : index
    %c0_21 = arith.constant 0 : index
    %c0_22 = arith.constant 0 : index
    %29 = vector.load %arg9[%c0_20, %c0_21, %c0_22] : memref<4x4x256xf32, #tpu.memory_space<vmem>>, vector<4x1x256xf32>
    %30 = vector.shape_cast %29 : vector<4x1x256xf32> to vector<4x256xf32>
    %31 = vector.shape_cast %28 : vector<4x256xf32> to vector<4x1x256xf32>
    tpu.vector_store %arg9[%c0_20, %c0_21, %c0_22], %31 {strides = array<i32>} : memref<4x4x256xf32, #tpu.memory_space<vmem>>, vector<4x1x256xf32>,
    "tpu.trace_start"() <{level = 10 : i32, message = "bnm,bmd->bnd"}> : () -> ()
    %cst_23 = arith.constant dense<0.000000e+00> : vector<4x16x8xf32>
    %32 = tpu.matmul %27, %13, %cst_23 {dimension_numbers = #tpu.dot_dimension_numbers<[2], [1], [1], [2], [0, 0, 0, 1, 1, 2], [0], [0]>} : vector<4x16x16xf32>, vector<4x16x8xf32>, vector<4x16x8xf32> -> vector<4x16x8xf32>
    "tpu.trace_stop"() : () -> ()
    %33 = vector.shape_cast %32 : vector<4x16x8xf32> to vector<64x8xf32>
    %c0_24 = arith.constant 0 : index
    %c0_25 = arith.constant 0 : index
    %c0_26 = arith.constant 0 : index
    %34 = vector.load %arg5[%c0_24, %c0_25, %c0_26] : memref<4x8x32xf32, #tpu.memory_space<vmem>>, vector<1x8x32xf32>
    %35 = vector.shape_cast %34 : vector<1x8x32xf32> to vector<8x32xf32>
    %cst_27 = arith.constant dense<0.000000e+00> : vector<64x32xf32>
    %36 = tpu.matmul %33, %35, %cst_27 {dimension_numbers = #tpu.dot_dimension_numbers<[1], [0], [0], [1], [0, 0, 1, 1], [], []>} : vector<64x8xf32>, vector<8x32xf32>, vector<64x32xf32> -> vector<64x32xf32>
    %37 = arith.addf %1, %36 : vector<64x32xf32>
    %c1 = arith.constant 1 : index
    %c0_28 = arith.constant 0 : index
    %c0_29 = arith.constant 0 : index
    %38 = vector.load %arg2[%c1, %c0_28, %c0_29] : memref<4x32x8xf32, #tpu.memory_space<vmem>>, vector<1x32x8xf32>
    %39 = vector.shape_cast %38 : vector<1x32x8xf32> to vector<32x8xf32>
    %cst_30 = arith.constant dense<0.000000e+00> : vector<64x8xf32>
    %40 = tpu.matmul %0, %39, %cst_30 {dimension_numbers = #tpu.dot_dimension_numbers<[1], [0], [0], [1], [0, 0, 1, 1], [], []>} : vector<64x32xf32>, vector<32x8xf32>, vector<64x8xf32> -> vector<64x8xf32>
    %c1_31 = arith.constant 1 : index
    %c0_32 = arith.constant 0 : index
    %c0_33 = arith.constant 0 : index
    %41 = vector.load %arg3[%c1_31, %c0_32, %c0_33] : memref<4x32x8xf32, #tpu.memory_space<vmem>>, vector<1x32x8xf32>
    %42 = vector.shape_cast %41 : vector<1x32x8xf32> to vector<32x8xf32>
    %cst_34 = arith.constant dense<0.000000e+00> : vector<64x8xf32>
    %43 = tpu.matmul %0, %42, %cst_34 {dimension_numbers = #tpu.dot_dimension_numbers<[1], [0], [0], [1], [0, 0, 1, 1], [], []>} : vector<64x32xf32>, vector<32x8xf32>, vector<64x8xf32> -> vector<64x8xf32>
    %c1_35 = arith.constant 1 : index
    %c0_36 = arith.constant 0 : index
    %c0_37 = arith.constant 0 : index
    %44 = vector.load %arg4[%c1_35, %c0_36, %c0_37] : memref<4x32x8xf32, #tpu.memory_space<vmem>>, vector<1x32x8xf32>
    %45 = vector.shape_cast %44 : vector<1x32x8xf32> to vector<32x8xf32>
    %cst_38 = arith.constant dense<0.000000e+00> : vector<64x8xf32>
    %46 = tpu.matmul %0, %45, %cst_38 {dimension_numbers = #tpu.dot_dimension_numbers<[1], [0], [0], [1], [0, 0, 1, 1], [], []>} : vector<64x32xf32>, vector<32x8xf32>, vector<64x8xf32> -> vector<64x8xf32>
    %47 = vector.shape_cast %40 : vector<64x8xf32> to vector<4x16x8xf32>
    %48 = vector.shape_cast %43 : vector<64x8xf32> to vector<4x16x8xf32>
    %49 = vector.shape_cast %46 : vector<64x8xf32> to vector<4x16x8xf32>
    "tpu.trace_start"() <{level = 10 : i32, message = "bnd,bmd->bnm"}> : () -> ()
    %cst_39 = arith.constant dense<0.000000e+00> : vector<4x16x16xf32>
    %50 = tpu.matmul %47, %48, %cst_39 {dimension_numbers = #tpu.dot_dimension_numbers<[2], [2], [1], [1], [0, 0, 0, 1, 1, 1], [0], [0]>} : vector<4x16x8xf32>, vector<4x16x8xf32>, vector<4x16x16xf32> -> vector<4x16x16xf32>
    "tpu.trace_stop"() : () -> ()
    %c0_40 = arith.constant 0 : index
    %c1_41 = arith.constant 1 : index
    %c0_42 = arith.constant 0 : index
    %c0_43 = arith.constant 0 : index
    %51 = vector.load %arg7[%c0_40, %c1_41, %c0_42, %c0_43] : memref<4x4x16x16xf32, #tpu.memory_space<vmem>>, vector<4x1x16x16xf32>
    %52 = vector.shape_cast %51 : vector<4x1x16x16xf32> to vector<4x16x16xf32>
    %53 = arith.addf %50, %52 : vector<4x16x16xf32>
    %cst_44 = arith.constant dense<0xFF800000> : vector<4x16xf32>
    %54 = vector.multi_reduction <maximumf>, %53, %cst_44 [2] : vector<4x16x16xf32> to vector<4x16xf32>
    %55 = vector.shape_cast %54 : vector<4x16xf32> to vector<4x16x1xf32>
    %56 = vector.broadcast %55 : vector<4x16x1xf32> to vector<4x16x16xf32>
    %57 = arith.subf %53, %56 : vector<4x16x16xf32>
    %58 = math.exp %57 : vector<4x16x16xf32>
    %cst_45 = arith.constant dense<0.000000e+00> : vector<4x16xf32>
    %59 = vector.multi_reduction <add>, %58, %cst_45 [2] : vector<4x16x16xf32> to vector<4x16xf32>
    %60 = vector.shape_cast %59 : vector<4x16xf32> to vector<4x16x1xf32>
    %61 = tpu.reciprocal %60 {approx = true} : vector<4x16x1xf32> -> vector<4x16x1xf32>
    %62 = vector.broadcast %61 : vector<4x16x1xf32> to vector<4x16x16xf32>
    %63 = arith.mulf %58, %62 : vector<4x16x16xf32>
    %64 = vector.shape_cast %63 : vector<4x16x16xf32> to vector<4x256xf32>
    %c0_46 = arith.constant 0 : index
    %c1_47 = arith.constant 1 : index
    %c0_48 = arith.constant 0 : index
    %65 = vector.load %arg9[%c0_46, %c1_47, %c0_48] : memref<4x4x256xf32, #tpu.memory_space<vmem>>, vector<4x1x256xf32>
    %66 = vector.shape_cast %65 : vector<4x1x256xf32> to vector<4x256xf32>
    %67 = vector.shape_cast %64 : vector<4x256xf32> to vector<4x1x256xf32>
    tpu.vector_store %arg9[%c0_46, %c1_47, %c0_48], %67 {strides = array<i32>} : memref<4x4x256xf32, #tpu.memory_space<vmem>>, vector<4x1x256xf32>,
    "tpu.trace_start"() <{level = 10 : i32, message = "bnm,bmd->bnd"}> : () -> ()
    %cst_49 = arith.constant dense<0.000000e+00> : vector<4x16x8xf32>
    %68 = tpu.matmul %63, %49, %cst_49 {dimension_numbers = #tpu.dot_dimension_numbers<[2], [1], [1], [2], [0, 0, 0, 1, 1, 2], [0], [0]>} : vector<4x16x16xf32>, vector<4x16x8xf32>, vector<4x16x8xf32> -> vector<4x16x8xf32>
    "tpu.trace_stop"() : () -> ()
    %69 = vector.shape_cast %68 : vector<4x16x8xf32> to vector<64x8xf32>
    %c1_50 = arith.constant 1 : index
    %c0_51 = arith.constant 0 : index
    %c0_52 = arith.constant 0 : index
    %70 = vector.load %arg5[%c1_50, %c0_51, %c0_52] : memref<4x8x32xf32, #tpu.memory_space<vmem>>, vector<1x8x32xf32>
    %71 = vector.shape_cast %70 : vector<1x8x32xf32> to vector<8x32xf32>
    %cst_53 = arith.constant dense<0.000000e+00> : vector<64x32xf32>
    %72 = tpu.matmul %69, %71, %cst_53 {dimension_numbers = #tpu.dot_dimension_numbers<[1], [0], [0], [1], [0, 0, 1, 1], [], []>} : vector<64x8xf32>, vector<8x32xf32>, vector<64x32xf32> -> vector<64x32xf32>
    %73 = arith.addf %37, %72 : vector<64x32xf32>
    %c2 = arith.constant 2 : index
    %c0_54 = arith.constant 0 : index
    %c0_55 = arith.constant 0 : index
    %74 = vector.load %arg2[%c2, %c0_54, %c0_55] : memref<4x32x8xf32, #tpu.memory_space<vmem>>, vector<1x32x8xf32>
    %75 = vector.shape_cast %74 : vector<1x32x8xf32> to vector<32x8xf32>
    %cst_56 = arith.constant dense<0.000000e+00> : vector<64x8xf32>
    %76 = tpu.matmul %0, %75, %cst_56 {dimension_numbers = #tpu.dot_dimension_numbers<[1], [0], [0], [1], [0, 0, 1, 1], [], []>} : vector<64x32xf32>, vector<32x8xf32>, vector<64x8xf32> -> vector<64x8xf32>
    %c2_57 = arith.constant 2 : index
    %c0_58 = arith.constant 0 : index
    %c0_59 = arith.constant 0 : index
    %77 = vector.load %arg3[%c2_57, %c0_58, %c0_59] : memref<4x32x8xf32, #tpu.memory_space<vmem>>, vector<1x32x8xf32>
    %78 = vector.shape_cast %77 : vector<1x32x8xf32> to vector<32x8xf32>
    %cst_60 = arith.constant dense<0.000000e+00> : vector<64x8xf32>
    %79 = tpu.matmul %0, %78, %cst_60 {dimension_numbers = #tpu.dot_dimension_numbers<[1], [0], [0], [1], [0, 0, 1, 1], [], []>} : vector<64x32xf32>, vector<32x8xf32>, vector<64x8xf32> -> vector<64x8xf32>
    %c2_61 = arith.constant 2 : index
    %c0_62 = arith.constant 0 : index
    %c0_63 = arith.constant 0 : index
    %80 = vector.load %arg4[%c2_61, %c0_62, %c0_63] : memref<4x32x8xf32, #tpu.memory_space<vmem>>, vector<1x32x8xf32>
    %81 = vector.shape_cast %80 : vector<1x32x8xf32> to vector<32x8xf32>
    %cst_64 = arith.constant dense<0.000000e+00> : vector<64x8xf32>
    %82 = tpu.matmul %0, %81, %cst_64 {dimension_numbers = #tpu.dot_dimension_numbers<[1], [0], [0], [1], [0, 0, 1, 1], [], []>} : vector<64x32xf32>, vector<32x8xf32>, vector<64x8xf32> -> vector<64x8xf32>
    %83 = vector.shape_cast %76 : vector<64x8xf32> to vector<4x16x8xf32>
    %84 = vector.shape_cast %79 : vector<64x8xf32> to vector<4x16x8xf32>
    %85 = vector.shape_cast %82 : vector<64x8xf32> to vector<4x16x8xf32>
    "tpu.trace_start"() <{level = 10 : i32, message = "bnd,bmd->bnm"}> : () -> ()
    %cst_65 = arith.constant dense<0.000000e+00> : vector<4x16x16xf32>
    %86 = tpu.matmul %83, %84, %cst_65 {dimension_numbers = #tpu.dot_dimension_numbers<[2], [2], [1], [1], [0, 0, 0, 1, 1, 1], [0], [0]>} : vector<4x16x8xf32>, vector<4x16x8xf32>, vector<4x16x16xf32> -> vector<4x16x16xf32>
    "tpu.trace_stop"() : () -> ()
    %c0_66 = arith.constant 0 : index
    %c2_67 = arith.constant 2 : index
    %c0_68 = arith.constant 0 : index
    %c0_69 = arith.constant 0 : index
    %87 = vector.load %arg7[%c0_66, %c2_67, %c0_68, %c0_69] : memref<4x4x16x16xf32, #tpu.memory_space<vmem>>, vector<4x1x16x16xf32>
    %88 = vector.shape_cast %87 : vector<4x1x16x16xf32> to vector<4x16x16xf32>
    %89 = arith.addf %86, %88 : vector<4x16x16xf32>
    %cst_70 = arith.constant dense<0xFF800000> : vector<4x16xf32>
    %90 = vector.multi_reduction <maximumf>, %89, %cst_70 [2] : vector<4x16x16xf32> to vector<4x16xf32>
    %91 = vector.shape_cast %90 : vector<4x16xf32> to vector<4x16x1xf32>
    %92 = vector.broadcast %91 : vector<4x16x1xf32> to vector<4x16x16xf32>
    %93 = arith.subf %89, %92 : vector<4x16x16xf32>
    %94 = math.exp %93 : vector<4x16x16xf32>
    %cst_71 = arith.constant dense<0.000000e+00> : vector<4x16xf32>
    %95 = vector.multi_reduction <add>, %94, %cst_71 [2] : vector<4x16x16xf32> to vector<4x16xf32>
    %96 = vector.shape_cast %95 : vector<4x16xf32> to vector<4x16x1xf32>
    %97 = tpu.reciprocal %96 {approx = true} : vector<4x16x1xf32> -> vector<4x16x1xf32>
    %98 = vector.broadcast %97 : vector<4x16x1xf32> to vector<4x16x16xf32>
    %99 = arith.mulf %94, %98 : vector<4x16x16xf32>
    %100 = vector.shape_cast %99 : vector<4x16x16xf32> to vector<4x256xf32>
    %c0_72 = arith.constant 0 : index
    %c2_73 = arith.constant 2 : index
    %c0_74 = arith.constant 0 : index
    %101 = vector.load %arg9[%c0_72, %c2_73, %c0_74] : memref<4x4x256xf32, #tpu.memory_space<vmem>>, vector<4x1x256xf32>
    %102 = vector.shape_cast %101 : vector<4x1x256xf32> to vector<4x256xf32>
    %103 = vector.shape_cast %100 : vector<4x256xf32> to vector<4x1x256xf32>
    tpu.vector_store %arg9[%c0_72, %c2_73, %c0_74], %103 {strides = array<i32>} : memref<4x4x256xf32, #tpu.memory_space<vmem>>, vector<4x1x256xf32>,
    "tpu.trace_start"() <{level = 10 : i32, message = "bnm,bmd->bnd"}> : () -> ()
    %cst_75 = arith.constant dense<0.000000e+00> : vector<4x16x8xf32>
    %104 = tpu.matmul %99, %85, %cst_75 {dimension_numbers = #tpu.dot_dimension_numbers<[2], [1], [1], [2], [0, 0, 0, 1, 1, 2], [0], [0]>} : vector<4x16x16xf32>, vector<4x16x8xf32>, vector<4x16x8xf32> -> vector<4x16x8xf32>
    "tpu.trace_stop"() : () -> ()
    %105 = vector.shape_cast %104 : vector<4x16x8xf32> to vector<64x8xf32>
    %c2_76 = arith.constant 2 : index
    %c0_77 = arith.constant 0 : index
    %c0_78 = arith.constant 0 : index
    %106 = vector.load %arg5[%c2_76, %c0_77, %c0_78] : memref<4x8x32xf32, #tpu.memory_space<vmem>>, vector<1x8x32xf32>
    %107 = vector.shape_cast %106 : vector<1x8x32xf32> to vector<8x32xf32>
    %cst_79 = arith.constant dense<0.000000e+00> : vector<64x32xf32>
    %108 = tpu.matmul %105, %107, %cst_79 {dimension_numbers = #tpu.dot_dimension_numbers<[1], [0], [0], [1], [0, 0, 1, 1], [], []>} : vector<64x8xf32>, vector<8x32xf32>, vector<64x32xf32> -> vector<64x32xf32>
    %109 = arith.addf %73, %108 : vector<64x32xf32>
    %c3 = arith.constant 3 : index
    %c0_80 = arith.constant 0 : index
    %c0_81 = arith.constant 0 : index
    %110 = vector.load %arg2[%c3, %c0_80, %c0_81] : memref<4x32x8xf32, #tpu.memory_space<vmem>>, vector<1x32x8xf32>
    %111 = vector.shape_cast %110 : vector<1x32x8xf32> to vector<32x8xf32>
    %cst_82 = arith.constant dense<0.000000e+00> : vector<64x8xf32>
    %112 = tpu.matmul %0, %111, %cst_82 {dimension_numbers = #tpu.dot_dimension_numbers<[1], [0], [0], [1], [0, 0, 1, 1], [], []>} : vector<64x32xf32>, vector<32x8xf32>, vector<64x8xf32> -> vector<64x8xf32>
    %c3_83 = arith.constant 3 : index
    %c0_84 = arith.constant 0 : index
    %c0_85 = arith.constant 0 : index
    %113 = vector.load %arg3[%c3_83, %c0_84, %c0_85] : memref<4x32x8xf32, #tpu.memory_space<vmem>>, vector<1x32x8xf32>
    %114 = vector.shape_cast %113 : vector<1x32x8xf32> to vector<32x8xf32>
    %cst_86 = arith.constant dense<0.000000e+00> : vector<64x8xf32>
    %115 = tpu.matmul %0, %114, %cst_86 {dimension_numbers = #tpu.dot_dimension_numbers<[1], [0], [0], [1], [0, 0, 1, 1], [], []>} : vector<64x32xf32>, vector<32x8xf32>, vector<64x8xf32> -> vector<64x8xf32>
    %c3_87 = arith.constant 3 : index
    %c0_88 = arith.constant 0 : index
    %c0_89 = arith.constant 0 : index
    %116 = vector.load %arg4[%c3_87, %c0_88, %c0_89] : memref<4x32x8xf32, #tpu.memory_space<vmem>>, vector<1x32x8xf32>
    %117 = vector.shape_cast %116 : vector<1x32x8xf32> to vector<32x8xf32>
    %cst_90 = arith.constant dense<0.000000e+00> : vector<64x8xf32>
    %118 = tpu.matmul %0, %117, %cst_90 {dimension_numbers = #tpu.dot_dimension_numbers<[1], [0], [0], [1], [0, 0, 1, 1], [], []>} : vector<64x32xf32>, vector<32x8xf32>, vector<64x8xf32> -> vector<64x8xf32>
    %119 = vector.shape_cast %112 : vector<64x8xf32> to vector<4x16x8xf32>
    %120 = vector.shape_cast %115 : vector<64x8xf32> to vector<4x16x8xf32>
    %121 = vector.shape_cast %118 : vector<64x8xf32> to vector<4x16x8xf32>
    "tpu.trace_start"() <{level = 10 : i32, message = "bnd,bmd->bnm"}> : () -> ()
    %cst_91 = arith.constant dense<0.000000e+00> : vector<4x16x16xf32>
    %122 = tpu.matmul %119, %120, %cst_91 {dimension_numbers = #tpu.dot_dimension_numbers<[2], [2], [1], [1], [0, 0, 0, 1, 1, 1], [0], [0]>} : vector<4x16x8xf32>, vector<4x16x8xf32>, vector<4x16x16xf32> -> vector<4x16x16xf32>
    "tpu.trace_stop"() : () -> ()
    %c0_92 = arith.constant 0 : index
    %c3_93 = arith.constant 3 : index
    %c0_94 = arith.constant 0 : index
    %c0_95 = arith.constant 0 : index
    %123 = vector.load %arg7[%c0_92, %c3_93, %c0_94, %c0_95] : memref<4x4x16x16xf32, #tpu.memory_space<vmem>>, vector<4x1x16x16xf32>
    %124 = vector.shape_cast %123 : vector<4x1x16x16xf32> to vector<4x16x16xf32>
    %125 = arith.addf %122, %124 : vector<4x16x16xf32>
    %cst_96 = arith.constant dense<0xFF800000> : vector<4x16xf32>
    %126 = vector.multi_reduction <maximumf>, %125, %cst_96 [2] : vector<4x16x16xf32> to vector<4x16xf32>
    %127 = vector.shape_cast %126 : vector<4x16xf32> to vector<4x16x1xf32>
    %128 = vector.broadcast %127 : vector<4x16x1xf32> to vector<4x16x16xf32>
    %129 = arith.subf %125, %128 : vector<4x16x16xf32>
    %130 = math.exp %129 : vector<4x16x16xf32>
    %cst_97 = arith.constant dense<0.000000e+00> : vector<4x16xf32>
    %131 = vector.multi_reduction <add>, %130, %cst_97 [2] : vector<4x16x16xf32> to vector<4x16xf32>
    %132 = vector.shape_cast %131 : vector<4x16xf32> to vector<4x16x1xf32>
    %133 = tpu.reciprocal %132 {approx = true} : vector<4x16x1xf32> -> vector<4x16x1xf32>
    %134 = vector.broadcast %133 : vector<4x16x1xf32> to vector<4x16x16xf32>
    %135 = arith.mulf %130, %134 : vector<4x16x16xf32>
    %136 = vector.shape_cast %135 : vector<4x16x16xf32> to vector<4x256xf32>
    %c0_98 = arith.constant 0 : index
    %c3_99 = arith.constant 3 : index
    %c0_100 = arith.constant 0 : index
    %137 = vector.load %arg9[%c0_98, %c3_99, %c0_100] : memref<4x4x256xf32, #tpu.memory_space<vmem>>, vector<4x1x256xf32>
    %138 = vector.shape_cast %137 : vector<4x1x256xf32> to vector<4x256xf32>
    %139 = vector.shape_cast %136 : vector<4x256xf32> to vector<4x1x256xf32>
    tpu.vector_store %arg9[%c0_98, %c3_99, %c0_100], %139 {strides = array<i32>} : memref<4x4x256xf32, #tpu.memory_space<vmem>>, vector<4x1x256xf32>,
    "tpu.trace_start"() <{level = 10 : i32, message = "bnm,bmd->bnd"}> : () -> ()
    %cst_101 = arith.constant dense<0.000000e+00> : vector<4x16x8xf32>
    %140 = tpu.matmul %135, %121, %cst_101 {dimension_numbers = #tpu.dot_dimension_numbers<[2], [1], [1], [2], [0, 0, 0, 1, 1, 2], [0], [0]>} : vector<4x16x16xf32>, vector<4x16x8xf32>, vector<4x16x8xf32> -> vector<4x16x8xf32>
    "tpu.trace_stop"() : () -> ()
    %141 = vector.shape_cast %140 : vector<4x16x8xf32> to vector<64x8xf32>
    %c3_102 = arith.constant 3 : index
    %c0_103 = arith.constant 0 : index
    %c0_104 = arith.constant 0 : index
    %142 = vector.load %arg5[%c3_102, %c0_103, %c0_104] : memref<4x8x32xf32, #tpu.memory_space<vmem>>, vector<1x8x32xf32>
    %143 = vector.shape_cast %142 : vector<1x8x32xf32> to vector<8x32xf32>
    %cst_105 = arith.constant dense<0.000000e+00> : vector<64x32xf32>
    %144 = tpu.matmul %141, %143, %cst_105 {dimension_numbers = #tpu.dot_dimension_numbers<[1], [0], [0], [1], [0, 0, 1, 1], [], []>} : vector<64x8xf32>, vector<8x32xf32>, vector<64x32xf32> -> vector<64x32xf32>
    %145 = arith.addf %109, %144 : vector<64x32xf32>
    %c0_106 = arith.constant 0 : index
    %c0_107 = arith.constant 0 : index
    %146 = vector.load %arg6[%c0_106, %c0_107] : memref<1x32xf32, #tpu.memory_space<vmem>>, vector<1x32xf32>
    %147 = vector.broadcast %146 : vector<1x32xf32> to vector<64x32xf32>
    %148 = arith.addf %145, %147 : vector<64x32xf32>
    %c0_108 = arith.constant 0 : index
    %c0_109 = arith.constant 0 : index
    %149 = vector.load %arg8[%c0_108, %c0_109] : memref<64x32xf32, #tpu.memory_space<vmem>>, vector<64x32xf32>
    tpu.vector_store %arg8[%c0_108, %c0_109], %148 {strides = array<i32>} : memref<64x32xf32, #tpu.memory_space<vmem>>, vector<64x32xf32>,
    return
  }
  func.func @transform_0(%arg0: i32) -> (i32, i32) {
    %c0_i32 = arith.constant 0 : i32
    %c0_i32_0 = arith.constant 0 : i32
    return %arg0, %c0_i32 : i32, i32
  }
  func.func @transform_1(%arg0: i32) -> (i32, i32, i32) {
    %c0_i32 = arith.constant 0 : i32
    %c0_i32_0 = arith.constant 0 : i32
    %c0_i32_1 = arith.constant 0 : i32
    %c0_i32_2 = arith.constant 0 : i32
    return %c0_i32, %c0_i32_0, %c0_i32_1 : i32, i32, i32
  }
  func.func @transform_2(%arg0: i32) -> (i32, i32, i32) {
    %c0_i32 = arith.constant 0 : i32
    %c0_i32_0 = arith.constant 0 : i32
    %c0_i32_1 = arith.constant 0 : i32
    %c0_i32_2 = arith.constant 0 : i32
    return %c0_i32, %c0_i32_0, %c0_i32_1 : i32, i32, i32
  }
  func.func @transform_3(%arg0: i32) -> (i32, i32, i32) {
    %c0_i32 = arith.constant 0 : i32
    %c0_i32_0 = arith.constant 0 : i32
    %c0_i32_1 = arith.constant 0 : i32
    %c0_i32_2 = arith.constant 0 : i32
    return %c0_i32, %c0_i32_0, %c0_i32_1 : i32, i32, i32
  }
  func.func @transform_4(%arg0: i32) -> (i32, i32, i32) {
    %c0_i32 = arith.constant 0 : i32
    %c0_i32_0 = arith.constant 0 : i32
    %c0_i32_1 = arith.constant 0 : i32
    %c0_i32_2 = arith.constant 0 : i32
    return %c0_i32, %c0_i32_0, %c0_i32_1 : i32, i32, i32
  }
  func.func @transform_5(%arg0: i32) -> (i32, i32) {
    %c0_i32 = arith.constant 0 : i32
    %c0_i32_0 = arith.constant 0 : i32
    %c0_i32_1 = arith.constant 0 : i32
    return %c0_i32, %c0_i32_0 : i32, i32
  }
  func.func @transform_6(%arg0: i32) -> (i32, i32, i32, i32) {
    %c0_i32 = arith.constant 0 : i32
    %c0_i32_0 = arith.constant 0 : i32
    %c0_i32_1 = arith.constant 0 : i32
    %c0_i32_2 = arith.constant 0 : i32
    %c0_i32_3 = arith.constant 0 : i32
    return %c0_i32, %c0_i32_0, %c0_i32_1, %c0_i32_2 : i32, i32, i32, i32
  }
  func.func @transform_7(%arg0: i32) -> (i32, i32) {
    %c0_i32 = arith.constant 0 : i32
    %c0_i32_0 = arith.constant 0 : i32
    return %arg0, %c0_i32 : i32, i32
  }
  func.func @transform_8(%arg0: i32) -> (i32, i32, i32) {
    %c0_i32 = arith.constant 0 : i32
    %c0_i32_0 = arith.constant 0 : i32
    %c0_i32_1 = arith.constant 0 : i32
    return %arg0, %c0_i32, %c0_i32_0 : i32, i32, i32
  }
}

</mosaic_0001>

<bundles_post_ra>
// kernel: tpu_custom_call.1
= control target key start
LH: loop header
LB: loop body
LE: loop exit
PB: predicated region body
PF: predicated region fallthrough
CT: control target
= control target key end

     0   :  { %14 = vsyncpa [#allocation3], 0  ;;  %s12834_s0 = inlined_call_operand.vmem [shape: f32[128,32], index: 0, kind: input, shape index: {}]   ;;  %s12835_s1 = inlined_call_operand.vmem [shape: f32[4,32,8], index: 1, kind: input, shape index: {}]   ;;  %s12836_s2 = inlined_call_operand.vmem [shape: f32[4,32,8], index: 2, kind: input, shape index: {}]   ;;  %s12837_s3 = inlined_call_operand.vmem [shape: f32[4,32,8], index: 3, kind: input, shape index: {}]   ;;  %s12838_s4 = inlined_call_operand.vmem [shape: f32[4,8,32], index: 4, kind: input, shape index: {}]   ;;  %s12839_s5 = inlined_call_operand.vmem [shape: f32[1,32], index: 5, kind: input, shape index: {}]   ;;  %s12840_s6 = inlined_call_operand.vmem [shape: f32[4,4,16,16], index: 6, kind: input, shape index: {}]   ;;  %s12841_s7 = inlined_call_operand.vmem [shape: f32[128,32], index: 7, kind: output, shape index: {0}]   ;;  %s12842_s8 = inlined_call_operand.hbm [shape: f32[8,4,256], index: 8, kind: output, shape index: {1}]  }
   0x1   :  { %16 = vsyncpa [#allocation3 + $0x1], 0  ;;  %s10180_s27 = smov 0   ;;  %s10182_s28 = smov 0  }
   0x2   :  { %s10184_s29 = smov 0   ;;  %s10186_s30 = smov 0  }
   0x3 LB: > { %s10201_s9 = sadd.s32 4294967295, %s10119_s30   ;;  %s8437_s10 = sadd.s32 4294967294, %s10119_s30   ;;  %s10119_s30 = sphi %s10186_s30, %s12956_s30   ;;  %s10115_s29 = sphi %s10184_s29, %s12955_s29   ;;  %s10111_s28 = sphi %s10182_s28, %s12954_s28   ;;  %s10107_s27 = sphi %s10180_s27, %s12953_s27  }
   0x4   : > { %s10205_s11 = sadd.s32 1, %s10119_s30   ;;  %s207_s12 = sadd.s32 1, %s10115_s29 }
   0x5   : > { %s204_s13 = ssub.s32 %s10119_s30, %s10205_s11  ;;  %p217_p0 = scmp.ne.s32.totalorder %s10115_s29, %s10111_s28 }
   0x6   : > { %p205_p1 = scmp.eq.s32.totalorder %s204_s13, 0  ;;  %p218_p2 = scmp.eq.s32.totalorder %s10201_s9, 1 }
   0x7   : > { %p223_p3 = scmp.ne.s32.totalorder %s10111_s28, %s10107_s27  ;;  %p224_p4 = scmp.eq.s32.totalorder %s8437_s10, 1 }
   0x8   : > { %s10216_s14 = scalar_select %p205_p1, %s10115_s29, %s207_s12  }
   0x9   : > { %p10218_p5 = por %p218_p2, %p217_p0  ;;  %p10222_p6 = por %p224_p4, %p223_p3 }
   0xa   : > { %p8440_p7 = scmp.ge.s32.totalorder %s10119_s30, 1  ;;  %p269_p8 = scmp.lt.s32.totalorder %s10119_s30, 3 }
   0xc   : > { %p270_p9 = pnand %p8440_p7, %p269_p8 }
   0xe   : > { %273 = sbr.rel (%p270_p9) target bundleno = 3846 (0xf06), region = 48 }
  0x15   : > { %v329_v0 = vld [vmem:[%s12835_s1] sm:$0xff]  ;;  %v330_v1 = vld [vmem:[%s12835_s1 + $0x8] sm:$0xff]  ;;  %v331_v2 = vld [vmem:[%s12835_s1 + $0x10] sm:$0xff]  ;;  %s8442_s23 = sshll.u32 %s10201_s9, 3  ;;  %vm333_vm0 = vcmask 261120   ;;  %vm689_vm1 = vcmask 64512  }
  0x16   : > { %v9585_v3 = vpack.c.bf16 %v330_v1, %v329_v0  ;;  %v332_v4 = vld [vmem:[%s12835_s1 + $0x18] sm:$0xff]  ;;  %p309_p10 = scmp.lt.s32.totalorder %s8442_s23, 15  ;;  %v463_v6 = vld [vmem:[%s12836_s2] sm:$0xff]  ;;  %v464_v7 = vld [vmem:[%s12836_s2 + $0x8] sm:$0xff]  ;;  %vm1038_vm3 = vcmask 130048   ;;  %s10124_s17 = smov 16  }
  0x17   : > { %v9589_v5 = vpack.c.bf16 %v332_v4, %v331_v2  ;;  %v572_v8 = vld [vmem:[%s12837_s3] sm:$0xff]  ;;  %v573_v9 = vld [vmem:[%s12837_s3 + $0x8] sm:$0xff]  ;;  %v9593_v10 = vpack.c.bf16 %v464_v7, %v463_v6  ;;  %v465_v11 = vld [vmem:[%s12836_s2 + $0x10] sm:$0xff]  ;;  %s10125_s18 = smov 32   ;;  %s10126_s19 = smov 48   ;;  %vm1751_vm4 = vcmask 392192  }
  0x18   : > { %9841 = vmatprep.subr.bf16.mxu1 %v9585_v3  ;;  %s12958_s23 = smov (!%p309_p10, %s8442_s23), 15  ;;  %9586 = vmatprep.subr.bf16.mxu0 %v9585_v3  ;;  %v466_v12 = vld [vmem:[%s12836_s2 + $0x18] sm:$0xff]  ;;  %v9601_v13 = vpack.c.bf16 %v573_v9, %v572_v8  ;;  %v574_v16 = vld [vmem:[%s12837_s3 + $0x10] sm:$0xff]  ;;  %vm10351_vm2 = vmpackc.low %vm689_vm1, %vm689_vm1  ;;  %s10127_s20 = smov 64   ;;  %vm1761_vm5 = vcmask 654336   ;;  %vm1756_vm6 = vcmask 523264  }
  0x19   : > { %9843 = vmatpush3.bf16.msra.mxu1 %v9585_v3  ;;  %9588 = vmatpush3.bf16.msra.mxu0 %v9585_v3  ;;  %s8443_s21 = sshll.u32 %s12958_s23, 3  ;;  %v575_v17 = vld [vmem:[%s12837_s3 + $0x18] sm:$0xff]  ;;  %v9597_v19 = vpack.c.bf16 %v466_v12, %v465_v11  ;;  %v683_v61 = vld [vmem:[%s12840_s6 + $0x40] sm:$0xff]  ;;  %v684_v0 = vld [vmem:[%s12840_s6 + $0x48] sm:$0xff]  ;;  %s10128_s22 = smov 80   ;;  %vm1766_vm7 = vcmask 785408  }
  0x1a   : > { %9842 = vmatprep.subr.bf16.mxu1 %v9589_v5  ;;  %9590 = vmatprep.subr.bf16.mxu0 %v9589_v5  ;;  %s10261_s25 = scalar_lea.vmem %s12834_s0, %s8443_s21  ;;  %v9605_v21 = vpack.c.bf16 %v575_v17, %v574_v16  ;;  %v681_v6 = vld [vmem:[%s12840_s6] sm:$0xff]  ;;  %v688_v12 = vld [vmem:[%s12840_s6 + $0xc8] sm:$0xff]  ;;  %v8704_v36 = vld [vmem:[%s12840_s6 + $0x38] sm:$0xff]  ;;  %s10129_s24 = smov 96   ;;  %vm1771_vm8 = vcmask 916480  }
  0x1b   : > { %v10270_v14 = vld [vmem:[%s10261_s25 + $0x20] sm:$0xff]  ;;  %v10275_v15 = vld [vmem:[%s10261_s25 + $0x28] sm:$0xff]  ;;  %v10284_v18 = vld [vmem:[%s10261_s25 + $0x30] sm:$0xff]  ;;  %s10130_s26 = smov 112   ;;  %s305_s10 = sand.u32 1, %s10111_s28  }
  0x1c   : > { %9079 = vmatprep.mubr.msk.f32.mxu1 %vm333_vm0, %v10270_v14  ;;  %v10287_v20 = vld [vmem:[%s10261_s25] sm:$0xff]  ;;  %v10296_v22 = vld [vmem:[%s10261_s25 + $0x38] sm:$0xff]  ;;  %v10299_v23 = vld [vmem:[%s10261_s25 + $0x8] sm:$0xff]  ;;  %s8441_s13 = sshll.u32 %s305_s10, 5  ;;  %s8756_s23 = sshll.u32 %s10201_s9, 9 }
  0x1d   : > { %9844 = vmatpush3.bf16.msra.mxu1 %v9589_v5  ;;  %9592 = vmatpush3.bf16.msra.mxu0 %v9589_v5  ;;  %v10302_v24 = vld [vmem:[%s10261_s25 + $0x10] sm:$0xff]  ;;  %v10313_v25 = vld [vmem:[%s10261_s25 + $0x18] sm:$0xff]  ;;  %v687_v7 = vld [vmem:[%s12840_s6 + $0xc0] sm:$0xff]  ;;  %s12777_s12 = scalar_lea.hbm %s12842_s8, %s8756_s23  ;;  %s12787_s9 = scalar_lea.sflag [#allocation3], %s305_s10 }
  0x1e   : > { %9594 = vmatprep.subr.bf16.mxu1 %v9593_v10  ;;  %9073 = vmatprep.mubr.msk.f32.mxu0 %vm333_vm0, %v10287_v20  ;;  %v685_v11 = vld [vmem:[%s12840_s6 + $0x80] sm:$0xff] }
  0x1f   : > { %9602 = vmatprep.subr.bf16.mxu0 %v9601_v13 }
  0x20   : > { %9080 = vmatmul.mubr.msk.f32.vlgmr.msra.gmra.mrb[0].mxu1 %vm333_vm0, %v10275_v15  ;;  %9074 = vmatmul.mubr.msk.f32.vlgmr.msra.gmra.mrb[0].mxu0 %vm333_vm0, %v10299_v23 }
  0x21   : > { %9596 = vmatpush3.bf16.msra.mxu1 %v9593_v10  ;;  %9082 = vmatprep.mubr.msk.f32.mxu1 %vm333_vm0, %v10284_v18 }
  0x22   : > { %9598 = vmatprep.subr.bf16.mxu1 %v9597_v19  ;;  %9076 = vmatprep.mubr.msk.f32.mxu0 %vm333_vm0, %v10302_v24 }
  0x23   : > { %9604 = vmatpush3.bf16.msra.mxu0 %v9601_v13 }
  0x24   : > { %9083 = vmatmul.mubr.msk.f32.gmra.mrb[2].mxu1 %vm333_vm0, %v10296_v22  ;;  %9606 = vmatprep.subr.bf16.mxu0 %v9605_v21 }
  0x25   : > { %9600 = vmatpush3.bf16.msra.mxu1 %v9597_v19  ;;  %9093 = vmatprep.mubr.msk.f32.mxu1 %vm333_vm0, %v10287_v20 }
  0x26   : > { %9077 = vmatmul.mubr.msk.f32.gmra.mrb[2].mxu0 %vm333_vm0, %v10313_v25 }
  0x27   : > { %9608 = vmatpush3.bf16.msra.mxu0 %v9605_v21  ;;  %9113 = vmatprep.mubr.msk.f32.mxu0 %vm333_vm0, %v10287_v20 }
  0x28   : > { %9094 = vmatmul.mubr.msk.f32.vlgmr.msra.gmra.mrb[4].mxu1 %vm333_vm0, %v10299_v23 }
  0x29   : > { %9096 = vmatprep.mubr.msk.f32.mxu1 %vm333_vm0, %v10302_v24 }
  0x2a   : > { %9114 = vmatmul.mubr.msk.f32.vlgmr.msra.gmra.mrb[4].mxu0 %vm333_vm0, %v10299_v23 }
  0x2b   : > { %9116 = vmatprep.mubr.msk.f32.mxu0 %vm333_vm0, %v10302_v24 }
  0x2c   : > { %9097 = vmatmul.mubr.msk.f32.gmra.mrb[6].mxu1 %vm333_vm0, %v10313_v25 }
  0x2d   : > { %9099 = vmatprep.mubr.msk.f32.mxu1 %vm333_vm0, %v10270_v14 }
  0x2e   : > { %9117 = vmatmul.mubr.msk.f32.gmra.mrb[6].mxu0 %vm333_vm0, %v10313_v25 }
  0x2f   : > { %9119 = vmatprep.mubr.msk.f32.mxu0 %vm333_vm0, %v10270_v14 }
  0x30   : > { %9100 = vmatmul.mubr.msk.f32.gmra.mrb[8].mxu1 %vm333_vm0, %v10275_v15 }
  0x31   : > { %9102 = vmatprep.mubr.msk.f32.mxu1 %vm333_vm0, %v10284_v18 }
  0x32   : > { %9120 = vmatmul.mubr.msk.f32.gmra.mrb[8].mxu0 %vm333_vm0, %v10275_v15 }
  0x33   : > { %9122 = vmatprep.mubr.msk.f32.mxu0 %vm333_vm0, %v10284_v18 }
  0x34   : > { %9103 = vmatmul.mubr.msk.f32.gmra.mrb[10].mxu1 %vm333_vm0, %v10296_v22 }
  0x36   : > { %9123 = vmatmul.mubr.msk.f32.gmra.mrb[10].mxu0 %vm333_vm0, %v10296_v22 }
  0xf3   : > { %v9081_v26 = vpop.f32.mrb[0].mxu1  ;;  %v9075_v28 = vpop.f32.mrb[0].mxu0 }
  0xf4   : > { %v444_v27 = vpop.f32.mrb[1].mxu1  ;;  %v424_v29 = vpop.f32.mrb[1].mxu0 }
  0xf5   : > { %9143 = vmatprep.mubr.msk.f32.mxu0 %vm689_vm1, %v444_v27  ;;  %9129 = vmatprep.mubr.msk.f32.mxu1 %vm689_vm1, %v424_v29  ;;  %v682_v27 = vld [vmem:[%s12840_s6 + $0x8] sm:$0xff] }
  0xf7   : > { %v9084_v30 = vpop.f32.mrb[2].mxu1 }
  0xf8   : > { %v454_v31 = vpop.f32.mrb[3].mxu1 }
  0xf9   : > { %v9078_v32 = vpop.f32.mrb[2].mxu0 }
  0xfa   : > { %v434_v33 = vpop.f32.mrb[3].mxu0 }
  0xfb   : > { %v9095_v34 = vpop.f32.mrb[4].mxu1 }
  0xfc   : > { %v533_v35 = vpop.f32.mrb[5].mxu1 }
  0xfd   : > { %v9609_v37 = vpack.c.bf16 %v9095_v34, %v533_v35  ;;  %v9115_v38 = vpop.f32.mrb[4].mxu0 }
  0xfe   : > { %v642_v48 = vpop.f32.mrb[5].mxu0 }
  0xff   : > { %9611 = vmatprep.subr.msk.bf16.mxu1 %vm10351_vm2, %v9609_v37  ;;  %v9098_v39 = vpop.f32.mrb[6].mxu1  ;;  %v9633_v49 = vpack.c.bf16 %v9115_v38, %v642_v48 }
 0x100   : > { %9614 = vmatpush3.bf16.xpose.msk.msra.mxu1 %vm10351_vm2, %v9609_v37  ;;  %v543_v40 = vpop.f32.mrb[7].mxu1 }
 0x101   : > { %v9615_v41 = vpack.c.bf16 %v9098_v39, %v543_v40  ;;  %v9118_v50 = vpop.f32.mrb[6].mxu0 }
 0x102   : > { %v652_v51 = vpop.f32.mrb[7].mxu0 }
 0x103   : > { %v9101_v42 = vpop.f32.mrb[8].mxu1  ;;  %9617 = vmatprep.subr.msk.bf16.mxu1 %vm10351_vm2, %v9615_v41  ;;  %v9637_v52 = vpack.c.bf16 %v9118_v50, %v652_v51 }
 0x104   : > { %v553_v43 = vpop.f32.mrb[9].mxu1 }
 0x105   : > { %v9621_v44 = vpack.c.bf16 %v9101_v42, %v553_v43  ;;  %v9121_v53 = vpop.f32.mrb[8].mxu0 }
 0x106   : > { %v662_v54 = vpop.f32.mrb[9].mxu0 }
 0x107   : > { %9130 = vmatmul.mubr.msk.f32.vlgmr.msra.gmra.mrb[12].mxu1 %vm689_vm1, %v9075_v28  ;;  %9623 = vmatprep.subr.msk.bf16.mxu0 %vm10351_vm2, %v9621_v44  ;;  %v9104_v45 = vpop.f32.mrb[10].mxu1  ;;  %v10377_v55 = vpack.c.bf16 %v9121_v53, %v662_v54 }
 0x108   : > { %9620 = vmatpush3.bf16.xpose.msk.msra.mxu1 %vm10351_vm2, %v9615_v41  ;;  %9626 = vmatpush3.bf16.xpose.msk.msra.mxu0 %vm10351_vm2, %v9621_v44  ;;  %v563_v46 = vpop.f32.mrb[11].mxu1 }
 0x109   : > { %v9627_v47 = vpack.c.bf16 %v9104_v45, %v563_v46  ;;  %9136 = vmatprep.mubr.msk.f32.mxu1 %vm689_vm1, %v434_v33  ;;  %9634 = vmatprep.subr.bf16.mxu0 %v9633_v49  ;;  %v9124_v56 = vpop.f32.mrb[10].mxu0 }
 0x10a   : > { %v672_v57 = vpop.f32.mrb[11].mxu0 }
 0x10b   : > { %9629 = vmatprep.subr.msk.bf16.mxu1 %vm10351_vm2, %v9627_v47  ;;  %v10379_v58 = vpack.c.bf16 %v9124_v56, %v672_v57 }
 0x10f   : > { %9137 = vmatmul.mubr.msk.f32.vlgmr.msra.gmra.mrb[14].mxu1 %vm689_vm1, %v9078_v32  ;;  %9144 = vmatmul.mubr.msk.f32.vlgmr.msra.gmra.mrb[12].mxu0 %vm689_vm1, %v9081_v26 }
 0x110   : > { %9632 = vmatpush3.bf16.xpose.msk.msra.mxu1 %vm10351_vm2, %v9627_v47  ;;  %9150 = vmatprep.mubr.msk.f32.mxu1 %vm689_vm1, %v454_v31  ;;  %v686_v31 = vld [vmem:[%s12840_s6 + $0x88] sm:$0xff] }
 0x111   : > { %9636 = vmatpush3.bf16.msra.mxu0 %v9633_v49  ;;  %9638 = vmatprep.subr.bf16.mxu1 %v9637_v52 }
 0x112   : > { %9642 = vmatprep.subr.bf16.mxu0 %v10377_v55 }
 0x117   : > { %9151 = vmatmul.mubr.msk.f32.vlgmr.msra.gmra.mrb[16].mxu1 %vm689_vm1, %v9084_v30 }
 0x118   : > { %9640 = vmatpush3.bf16.msra.mxu1 %v9637_v52 }
 0x119   : > { %9646 = vmatprep.subr.bf16.mxu1 %v10379_v58 }
 0x1da   : > { %v9131_v59 = vpop.f32.mrb[12].mxu1 }
 0x1db   : > { %v768_v60 = vpop.f32.mrb[13].mxu1  ;;  %v774_v28 = vadd.f32 %v9131_v59, %v682_v27 }
 0x1dc   : > { %v769_v8 = vadd.f32 %v768_v60, %v681_v6 }
 0x1dd   : > { %v1042_v33 = vsel %vm1038_vm3, %v774_v28, -inf }
 0x1de   : > { %v1039_v26 = vsel %vm1038_vm3, %v769_v8, -inf }
 0x1e2   : > { %v9138_v62 = vpop.f32.mrb[14].mxu1  ;;  %v9145_v63 = vpop.f32.mrb[12].mxu0 }
 0x1e3   : > { %v855_v1 = vpop.f32.mrb[15].mxu1  ;;  %v942_v2 = vpop.f32.mrb[13].mxu0  ;;  %v861_v4 = vadd.f32 %v9138_v62, %v684_v0  ;;  %v948_v32 = vadd.f32 %v9145_v63, %v686_v31 }
 0x1e4   : > { %v856_v3 = vadd.f32 %v855_v1, %v683_v61  ;;  %v943_v17 = vadd.f32 %v942_v2, %v685_v11 }
 0x1e5   : > { %v1048_v10 = vsel %vm1038_vm3, %v861_v4, -inf  ;;  %v1054_v34 = vsel %vm1038_vm3, %v948_v32, -inf }
 0x1e6   : > { %v1045_v5 = vsel %vm1038_vm3, %v856_v3, -inf  ;;  %v1051_v30 = vsel %vm1038_vm3, %v943_v17, -inf }
 0x1e7   : > { %1046 = vmax.xlane.f32.xlu0 %v1045_v5 }
 0x1ea   : > { %v9152_v9 = vpop.f32.mrb[16].mxu1 }
 0x1eb   : > { %v1029_v13 = vpop.f32.mrb[17].mxu1  ;;  %1049 = vmax.xlane.f32.xlu0 %v1048_v10  ;;  %v1035_v19 = vadd.f32 %v9152_v9, %v688_v12 }
 0x1ec   : > { %v1030_v16 = vadd.f32 %v1029_v13, %v687_v7 }
 0x1ed   : > { %v1060_v29 = vsel %vm1038_vm3, %v1035_v19, -inf }
 0x1ee   : > { %v1057_v21 = vsel %vm1038_vm3, %v1030_v16, -inf }
 0x1ef   : > { %1058 = vmax.xlane.f32.xlu1 %v1057_v21  ;;  %1040 = vmax.xlane.f32.xlu0 %v1039_v26 }
 0x1f3   : > { %1061 = vmax.xlane.f32.xlu1 %v1060_v29  ;;  %1052 = vmax.xlane.f32.xlu0 %v1051_v30  ;;  %v8509_v29 = vld [vmem:[%s12836_s2 + $0x20] sm:$0xff]  ;;  %v8510_v30 = vld [vmem:[%s12836_s2 + $0x28] sm:$0xff] }
 0x1f7   : > { %1043 = vmax.xlane.f32.xlu1 %v1042_v33 }
 0x1fb   : > { %1055 = vmax.xlane.f32.xlu1 %v1054_v34 }
 0x274   : > { %v1047_v35 = vpop.xlane.xlu0 %1046 }
 0x275   : > { %v1065_v37 = vsub.f32 %v856_v3, %v1047_v35  ;;  %v9657_v35 = vpack.c.bf16 %v8510_v30, %v8509_v29 }
 0x277   : > { %v1075_v38 = vmul.f32 1.442695, %v1065_v37 }
 0x278   : > { %v1050_v39 = vpop.xlane.xlu0 %1049 }
 0x279   : > { %9921 = vpow2.f32 %v1075_v38  ;;  %v1066_v40 = vsub.f32 %v861_v4, %v1050_v39 }
 0x27b   : > { %v1077_v41 = vmul.f32 1.442695, %v1066_v40  ;;  %v8511_v40 = vld [vmem:[%s12836_s2 + $0x30] sm:$0xff] }
 0x27c   : > { %v1059_v42 = vpop.xlane.xlu1 %1058  ;;  %v1041_v43 = vpop.xlane.xlu0 %1040 }
 0x27d   : > { %9923 = vpow2.f32 %v1077_v41  ;;  %v1069_v44 = vsub.f32 %v1030_v16, %v1059_v42  ;;  %v1063_v45 = vsub.f32 %v769_v8, %v1041_v43  ;;  %v8512_v41 = vld [vmem:[%s12836_s2 + $0x38] sm:$0xff] }
 0x27f   : > { %v1083_v46 = vmul.f32 1.442695, %v1069_v44  ;;  %v1071_v47 = vmul.f32 1.442695, %v1063_v45 }
 0x280   : > { %v1062_v48 = vpop.xlane.xlu1 %1061  ;;  %v1053_v49 = vpop.xlane.xlu0 %1052 }
 0x281   : > { %9925 = vpow2.f32 %v1083_v46  ;;  %v1070_v50 = vsub.f32 %v1035_v19, %v1062_v48  ;;  %v1067_v51 = vsub.f32 %v943_v17, %v1053_v49  ;;  %v8497_v46 = vld [vmem:[%s12835_s1 + $0x20] sm:$0xff] }
 0x282   : > { %9927 = vpow2.f32 %v1071_v47  ;;  %v8498_v47 = vld [vmem:[%s12835_s1 + $0x28] sm:$0xff] }
 0x283   : > { %v9922_v52 = vpop.eup %9921  ;;  %v1085_v53 = vmul.f32 1.442695, %v1070_v50  ;;  %v1079_v54 = vmul.f32 1.442695, %v1067_v51  ;;  %v9649_v51 = vpack.c.bf16 %v8498_v47, %v8497_v46 }
 0x284   : > { %v1044_v56 = vpop.xlane.xlu1 %1043  ;;  %v1093_v57 = vsel %vm1038_vm3, %v9922_v52, 0.0 }
 0x285   : > { %9929 = vpow2.f32 %v1085_v53  ;;  %v1064_v59 = vsub.f32 %v774_v28, %v1044_v56  ;;  %1094 = vadd.xlane.f32.xlu0 %v1093_v57  ;;  %v8499_v53 = vld [vmem:[%s12835_s1 + $0x30] sm:$0xff] }
 0x286   : > { %9931 = vpow2.f32 %v1079_v54  ;;  %v8500_v54 = vld [vmem:[%s12835_s1 + $0x38] sm:$0xff] }
 0x287   : > { %v9924_v60 = vpop.eup %9923  ;;  %v1073_v61 = vmul.f32 1.442695, %v1064_v59  ;;  %v9653_v59 = vpack.c.bf16 %v8500_v54, %v8499_v53  ;;  %v8534_v53 = vld [vmem:[%s12840_s6 + $0x18] sm:$0xff] }
 0x288   : > { %v1056_v62 = vpop.xlane.xlu1 %1055  ;;  %v1096_v63 = vsel %vm1038_vm3, %v9924_v60, 0.0 }
 0x289   : > { %9933 = vpow2.f32 %v1073_v61  ;;  %v1068_v0 = vsub.f32 %v948_v32, %v1056_v62  ;;  %1097 = vadd.xlane.f32.xlu1 %v1096_v63  ;;  %v8523_v62 = vld [vmem:[%s12837_s3 + $0x30] sm:$0xff]  ;;  %v8524_v63 = vld [vmem:[%s12837_s3 + $0x38] sm:$0xff] }
 0x28b   : > { %v9926_v1 = vpop.eup %9925  ;;  %v1081_v2 = vmul.f32 1.442695, %v1068_v0  ;;  %v9669_v0 = vpack.c.bf16 %v8524_v63, %v8523_v62  ;;  %v8535_v63 = vld [vmem:[%s12840_s6 + $0x50] sm:$0xff] }
 0x28c   : > { %v1105_v3 = vsel %vm1038_vm3, %v9926_v1, 0.0  ;;  %v9928_v4 = vpop.eup %9927 }
 0x28d   : > { %9935 = vpow2.f32 %v1081_v2  ;;  %1106 = vadd.xlane.f32.xlu0 %v1105_v3  ;;  %v1087_v7 = vsel %vm1038_vm3, %v9928_v4, 0.0 }
 0x28f   : > { %v9930_v5 = vpop.eup %9929 }
 0x290   : > { %v1108_v6 = vsel %vm1038_vm3, %v9930_v5, 0.0  ;;  %v9932_v8 = vpop.eup %9931 }
 0x291   : > { %1109 = vadd.xlane.f32.xlu1 %v1108_v6  ;;  %1088 = vadd.xlane.f32.xlu0 %v1087_v7  ;;  %v1099_v11 = vsel %vm1038_vm3, %v9932_v8, 0.0 }
 0x293   : > { %v9934_v9 = vpop.eup %9933 }
 0x294   : > { %v1090_v10 = vsel %vm1038_vm3, %v9934_v9, 0.0 }
 0x295   : > { %1091 = vadd.xlane.f32.xlu1 %v1090_v10  ;;  %1100 = vadd.xlane.f32.xlu0 %v1099_v11 }
 0x297   : > { %v9936_v12 = vpop.eup %9935 }
 0x298   : > { %v1102_v13 = vsel %vm1038_vm3, %v9936_v12, 0.0 }
 0x299   : > { %1103 = vadd.xlane.f32.xlu1 %v1102_v13 }
 0x312   : > { %v1095_v16 = vpop.xlane.xlu0 %1094 }
 0x313   : > { %9937 = vrcp.f32 %v1095_v16 }
 0x316   : > { %v1098_v17 = vpop.xlane.xlu1 %1097 }
 0x317   : > { %9939 = vrcp.f32 %v1098_v17 }
 0x31a   : > { %v1107_v19 = vpop.xlane.xlu0 %1106 }
 0x31b   : > { %9941 = vrcp.f32 %v1107_v19 }
 0x31d   : > { %v9938_v21 = vpop.eup %9937 }
 0x31e   : > { %v1110_v26 = vpop.xlane.xlu1 %1109  ;;  %v1089_v27 = vpop.xlane.xlu0 %1088  ;;  %v10423_v28 = vmul.f32 %v9938_v21, %v9922_v52 }
 0x31f   : > { %9943 = vrcp.f32 %v1110_v26 }
 0x320   : > { %9945 = vrcp.f32 %v1089_v27  ;;  %9164 = vmatprep.mubr.msk.f32.mxu1 %vm1038_vm3, %v10423_v28 }
 0x321   : > { %v9940_v31 = vpop.eup %9939 }
 0x322   : > { %v1092_v32 = vpop.xlane.xlu1 %1091  ;;  %v1101_v33 = vpop.xlane.xlu0 %1100  ;;  %v10433_v34 = vmul.f32 %v9940_v31, %v9924_v60  ;;  %v8522_v60 = vld [vmem:[%s12837_s3 + $0x28] sm:$0xff] }
 0x323   : > { %9947 = vrcp.f32 %v1092_v32 }
 0x324   : > { %9949 = vrcp.f32 %v1101_v33  ;;  %9165 = vmatmul.mubr.msk.f32.vlgmr.msra.gmra.mrb[18].mxu1 %vm1038_vm3, %v10433_v34 }
 0x325   : > { %v9942_v37 = vpop.eup %9941  ;;  %9648 = vmatpush3.bf16.msra.mxu1 %v10379_v58  ;;  %v9661_v58 = vpack.c.bf16 %v8512_v41, %v8511_v40 }
 0x326   : > { %v1104_v38 = vpop.xlane.xlu1 %1103  ;;  %v10438_v39 = vmul.f32 %v9942_v37, %v9926_v1  ;;  %9658 = vmatprep.subr.bf16.mxu1 %v9657_v35 }
 0x327   : > { %9951 = vrcp.f32 %v1104_v38 }
 0x328   : > { %9178 = vmatprep.mubr.msk.f32.mxu1 %vm1038_vm3, %v10438_v39 }
 0x329   : > { %v9944_v42 = vpop.eup %9943 }
 0x32a   : > { %v9946_v43 = vpop.eup %9945  ;;  %v10448_v44 = vmul.f32 %v9944_v42, %v9930_v5 }
 0x32b   : > { %v10450_v45 = vmul.f32 %v9946_v43, %v9928_v4 }
 0x32c   : > { %9179 = vmatmul.mubr.msk.f32.vlgmr.msra.gmra.mrb[20].mxu1 %vm1038_vm3, %v10448_v44 }
 0x32d   : > { %v9948_v48 = vpop.eup %9947  ;;  %9157 = vmatprep.mubr.msk.f32.mxu0 %vm1038_vm3, %v10450_v45  ;;  %9660 = vmatpush3.bf16.msra.mxu1 %v9657_v35 }
 0x32e   : > { %v9950_v49 = vpop.eup %9949  ;;  %9662 = vmatprep.subr.bf16.mxu1 %v9661_v58  ;;  %v10462_v50 = vmul.f32 %v9948_v48, %v9934_v9  ;;  %9209 = vmatprep.mubr.msk.f32.mxu1 %vm333_vm0, %v10287_v20 }
 0x32f   : > { %v10466_v52 = vmul.f32 %v9950_v49, %v9932_v8 }
 0x330   : > { %9158 = vmatmul.mubr.msk.f32.vlgmr.msra.gmra.mrb[14].mxu0 %vm1038_vm3, %v10462_v50 }
 0x331   : > { %v9952_v56 = vpop.eup %9951  ;;  %9644 = vmatpush3.bf16.msra.mxu0 %v10377_v55  ;;  %9664 = vmatpush3.bf16.msra.mxu1 %v9661_v58  ;;  %v8521_v55 = vld [vmem:[%s12837_s3 + $0x20] sm:$0xff] }
 0x332   : > { %9171 = vmatprep.mubr.msk.f32.mxu0 %vm1038_vm3, %v10466_v52  ;;  %v10479_v57 = vmul.f32 %v9952_v56, %v9936_v12  ;;  %9650 = vmatprep.subr.bf16.mxu0 %v9649_v51  ;;  %v9665_v61 = vpack.c.bf16 %v8522_v60, %v8521_v55  ;;  %v8533_v56 = vld [vmem:[%s12840_s6 + $0x10] sm:$0xff] }
 0x334   : > { %9210 = vmatmul.mubr.msk.f32.vlgmr.msra.gmra.mrb[22].mxu1 %vm333_vm0, %v10299_v23  ;;  %9172 = vmatmul.mubr.msk.f32.vlgmr.msra.gmra.mrb[16].mxu0 %vm1038_vm3, %v10479_v57 }
 0x335   : > { %9652 = vmatpush3.bf16.msra.mxu0 %v9649_v51  ;;  %9212 = vmatprep.mubr.msk.f32.mxu1 %vm333_vm0, %v10302_v24 }
 0x336   : > { %9654 = vmatprep.subr.bf16.mxu0 %v9653_v59  ;;  %9189 = vmatprep.mubr.msk.f32.mxu0 %vm333_vm0, %v10287_v20 }
 0x338   : > { %9213 = vmatmul.mubr.msk.f32.gmra.mrb[24].mxu1 %vm333_vm0, %v10313_v25 }
 0x339   : > { %9656 = vmatpush3.bf16.msra.mxu0 %v9653_v59  ;;  %9215 = vmatprep.mubr.msk.f32.mxu1 %vm333_vm0, %v10270_v14 }
 0x33a   : > { %9666 = vmatprep.subr.bf16.mxu0 %v9665_v61 }
 0x33c   : > { %9190 = vmatmul.mubr.msk.f32.vlgmr.msra.gmra.mrb[18].mxu0 %vm333_vm0, %v10299_v23  ;;  %9216 = vmatmul.mubr.msk.f32.gmra.mrb[26].mxu1 %vm333_vm0, %v10275_v15 }
 0x33d   : > { %9192 = vmatprep.mubr.msk.f32.mxu0 %vm333_vm0, %v10302_v24  ;;  %9218 = vmatprep.mubr.msk.f32.mxu1 %vm333_vm0, %v10284_v18 }
 0x33e   : > { %9668 = vmatpush3.bf16.msra.mxu0 %v9665_v61 }
 0x33f   : > { %9670 = vmatprep.subr.bf16.mxu0 %v9669_v0 }
 0x340   : > { %9193 = vmatmul.mubr.msk.f32.gmra.mrb[20].mxu0 %vm333_vm0, %v10313_v25  ;;  %9219 = vmatmul.mubr.msk.f32.gmra.mrb[28].mxu1 %vm333_vm0, %v10296_v22 }
 0x341   : > { %9195 = vmatprep.mubr.msk.f32.mxu0 %vm333_vm0, %v10270_v14 }
 0x342   : > { %9672 = vmatpush3.bf16.msra.mxu0 %v9669_v0 }
 0x344   : > { %9196 = vmatmul.mubr.msk.f32.gmra.mrb[22].mxu0 %vm333_vm0, %v10275_v15 }
 0x345   : > { %9198 = vmatprep.mubr.msk.f32.mxu0 %vm333_vm0, %v10284_v18 }
 0x348   : > { %9199 = vmatmul.mubr.msk.f32.gmra.mrb[24].mxu0 %vm333_vm0, %v10296_v22 }
 0x349   : > { %9229 = vmatprep.mubr.msk.f32.mxu0 %vm333_vm0, %v10287_v20 }
 0x34c   : > { %9230 = vmatmul.mubr.msk.f32.vlgmr.msra.gmra.mrb[26].mxu0 %vm333_vm0, %v10299_v23 }
 0x34d   : > { %9232 = vmatprep.mubr.msk.f32.mxu0 %vm333_vm0, %v10302_v24 }
 0x350   : > { %9233 = vmatmul.mubr.msk.f32.gmra.mrb[28].mxu0 %vm333_vm0, %v10313_v25 }
 0x351   : > { %9235 = vmatprep.mubr.msk.f32.mxu0 %vm333_vm0, %v10270_v14 }
 0x354   : > { %9236 = vmatmul.mubr.msk.f32.gmra.mrb[30].mxu0 %vm333_vm0, %v10275_v15 }
 0x355   : > { %9238 = vmatprep.mubr.msk.f32.mxu0 %vm333_vm0, %v10284_v18 }
 0x358   : > { %9239 = vmatmul.mubr.msk.f32.gmra.mrb[32].mxu0 %vm333_vm0, %v10296_v22 }
 0x3f7   : > { %v10541_v1 = vpop.f32.mrb[18].mxu1 }
 0x3f8   : > { %v10543_v2 = vpop.f32.mrb[19].mxu1 }
 0x3ff   : > { %v10545_v3 = vpop.f32.mrb[20].mxu1 }
 0x400   : > { %v10547_v4 = vpop.f32.mrb[21].mxu1 }
 0x403   : > { %v10549_v5 = vpop.f32.mrb[14].mxu0 }
 0x404   : > { %v10551_v14 = vpop.f32.mrb[15].mxu0 }
 0x407   : > { %v9211_v6 = vpop.f32.mrb[22].mxu1  ;;  %v10553_v15 = vpop.f32.mrb[16].mxu0 }
 0x408   : > { %v2393_v7 = vpop.f32.mrb[23].mxu1  ;;  %v10555_v18 = vpop.f32.mrb[17].mxu0 }
 0x409   : > { %v9673_v8 = vpack.c.bf16 %v9211_v6, %v2393_v7  ;;  %v8536_v7 = vld [vmem:[%s12840_s6 + $0x58] sm:$0xff] }
 0x40b   : > { %9675 = vmatprep.subr.msk.bf16.mxu1 %vm10351_vm2, %v9673_v8  ;;  %v9214_v9 = vpop.f32.mrb[24].mxu1 }
 0x40c   : > { %9678 = vmatpush3.bf16.xpose.msk.msra.mxu1 %vm10351_vm2, %v9673_v8  ;;  %v2403_v10 = vpop.f32.mrb[25].mxu1 }
 0x40d   : > { %v9679_v11 = vpack.c.bf16 %v9214_v9, %v2403_v10 }
 0x40f   : > { %v9191_v12 = vpop.f32.mrb[18].mxu0  ;;  %v9217_v13 = vpop.f32.mrb[26].mxu1  ;;  %9681 = vmatprep.subr.msk.bf16.mxu1 %vm10351_vm2, %v9679_v11 }
 0x410   : > { %v2283_v16 = vpop.f32.mrb[19].mxu0  ;;  %v2413_v17 = vpop.f32.mrb[27].mxu1 }
 0x411   : > { %v9685_v19 = vpack.c.bf16 %v9217_v13, %v2413_v17  ;;  %9245 = vmatprep.mubr.msk.f32.mxu1 %vm689_vm1, %v2283_v16  ;;  %v8540_v13 = vld [vmem:[%s12840_s6 + $0xd8] sm:$0xff]  ;;  %v8539_v16 = vld [vmem:[%s12840_s6 + $0xd0] sm:$0xff] }
 0x413   : > { %9246 = vmatmul.mubr.msk.f32.vlgmr.msra.gmra.mrb[30].mxu1 %vm689_vm1, %v9191_v12  ;;  %9687 = vmatprep.subr.msk.bf16.mxu0 %vm10351_vm2, %v9685_v19  ;;  %v9220_v21 = vpop.f32.mrb[28].mxu1  ;;  %v9194_v26 = vpop.f32.mrb[20].mxu0 }
 0x414   : > { %9684 = vmatpush3.bf16.xpose.msk.msra.mxu1 %vm10351_vm2, %v9679_v11  ;;  %9690 = vmatpush3.bf16.xpose.msk.msra.mxu0 %vm10351_vm2, %v9685_v19  ;;  %v2423_v27 = vpop.f32.mrb[29].mxu1  ;;  %v2293_v29 = vpop.f32.mrb[21].mxu0 }
 0x415   : > { %v9691_v30 = vpack.c.bf16 %v9220_v21, %v2423_v27  ;;  %9252 = vmatprep.mubr.msk.f32.mxu1 %vm689_vm1, %v2293_v29  ;;  %v8538_v21 = vld [vmem:[%s12840_s6 + $0x98] sm:$0xff] }
 0x417   : > { %v9197_v31 = vpop.f32.mrb[22].mxu0  ;;  %9693 = vmatprep.subr.msk.bf16.mxu1 %vm10351_vm2, %v9691_v30 }
 0x418   : > { %v2303_v32 = vpop.f32.mrb[23].mxu0 }
 0x419   : > { %9259 = vmatprep.mubr.msk.f32.mxu0 %vm689_vm1, %v2303_v32 }
 0x41b   : > { %9253 = vmatmul.mubr.msk.f32.vlgmr.msra.gmra.mrb[32].mxu1 %vm689_vm1, %v9194_v26  ;;  %9260 = vmatmul.mubr.msk.f32.vlgmr.msra.gmra.mrb[34].mxu0 %vm689_vm1, %v9197_v31  ;;  %v9200_v33 = vpop.f32.mrb[24].mxu0  ;;  %v8537_v26 = vld [vmem:[%s12840_s6 + $0x90] sm:$0xff] }
 0x41c   : > { %9696 = vmatpush3.bf16.xpose.msk.msra.mxu1 %vm10351_vm2, %v9691_v30  ;;  %v2313_v35 = vpop.f32.mrb[25].mxu0 }
 0x41d   : > { %9266 = vmatprep.mubr.msk.f32.mxu1 %vm689_vm1, %v2313_v35 }
 0x41f   : > { %v9231_v37 = vpop.f32.mrb[26].mxu0 }
 0x420   : > { %v2503_v38 = vpop.f32.mrb[27].mxu0 }
 0x421   : > { %v9697_v40 = vpack.c.bf16 %v9231_v37, %v2503_v38 }
 0x423   : > { %9267 = vmatmul.mubr.msk.f32.vlgmr.msra.gmra.mrb[34].mxu1 %vm689_vm1, %v9200_v33  ;;  %v9234_v41 = vpop.f32.mrb[28].mxu0  ;;  %9698 = vmatprep.subr.bf16.mxu0 %v9697_v40 }
 0x424   : > { %v2513_v42 = vpop.f32.mrb[29].mxu0  ;;  %9700 = vmatpush3.bf16.msra.mxu0 %v9697_v40 }
 0x425   : > { %v9701_v43 = vpack.c.bf16 %v9234_v41, %v2513_v42 }
 0x427   : > { %v9237_v58 = vpop.f32.mrb[30].mxu0  ;;  %9702 = vmatprep.subr.bf16.mxu1 %v9701_v43 }
 0x428   : > { %v2523_v46 = vpop.f32.mrb[31].mxu0  ;;  %9704 = vmatpush3.bf16.msra.mxu1 %v9701_v43 }
 0x429   : > { %v10581_v47 = vpack.c.bf16 %v9237_v58, %v2523_v46 }
 0x42b   : > { %v9240_v48 = vpop.f32.mrb[32].mxu0  ;;  %9706 = vmatprep.subr.bf16.mxu0 %v10581_v47 }
 0x42c   : > { %v2533_v49 = vpop.f32.mrb[33].mxu0 }
 0x42d   : > { %v10583_v51 = vpack.c.bf16 %v9240_v48, %v2533_v49 }
 0x42f   : > { %9710 = vmatprep.subr.bf16.mxu1 %v10583_v51 }
 0x4e6   : > { %v9247_v54 = vpop.f32.mrb[30].mxu1 }
 0x4e7   : > { %v2635_v59 = vadd.f32 %v9247_v54, %v8534_v53  ;;  %v2629_v55 = vpop.f32.mrb[31].mxu1 }
 0x4e8   : > { %v2630_v60 = vadd.f32 %v8533_v56, %v2629_v55 }
 0x4e9   : > { %v2902_v61 = vsel %vm1038_vm3, %v2635_v59, -inf }
 0x4ea   : > { %2903 = vmax.xlane.f32.xlu0 %v2902_v61  ;;  %v2899_v62 = vsel %vm1038_vm3, %v2630_v60, -inf }
 0x4ee   : > { %2900 = vmax.xlane.f32.xlu0 %v2899_v62  ;;  %v9254_v0 = vpop.f32.mrb[32].mxu1  ;;  %v9261_v6 = vpop.f32.mrb[34].mxu0 }
 0x4ef   : > { %v2716_v8 = vpop.f32.mrb[33].mxu1  ;;  %v2803_v9 = vpop.f32.mrb[35].mxu0  ;;  %v2722_v11 = vadd.f32 %v9254_v0, %v8536_v7  ;;  %v2809_v32 = vadd.f32 %v9261_v6, %v8538_v21 }
 0x4f0   : > { %v2717_v10 = vadd.f32 %v8535_v63, %v2716_v8  ;;  %v2804_v33 = vadd.f32 %v8537_v26, %v2803_v9 }
 0x4f1   : > { %v2908_v19 = vsel %vm1038_vm3, %v2722_v11, -inf  ;;  %v2914_v37 = vsel %vm1038_vm3, %v2809_v32, -inf }
 0x4f2   : > { %v2905_v12 = vsel %vm1038_vm3, %v2717_v10, -inf  ;;  %v2911_v38 = vsel %vm1038_vm3, %v2804_v33, -inf }
 0x4f3   : > { %2906 = vmax.xlane.f32.xlu1 %v2905_v12 }
 0x4f6   : > { %v9268_v17 = vpop.f32.mrb[34].mxu1 }
 0x4f7   : > { %v2896_v27 = vadd.f32 %v9268_v17, %v8540_v13  ;;  %2909 = vmax.xlane.f32.xlu1 %v2908_v19  ;;  %v2890_v29 = vpop.f32.mrb[35].mxu1 }
 0x4f8   : > { %v2891_v30 = vadd.f32 %v8539_v16, %v2890_v29 }
 0x4f9   : > { %v2920_v31 = vsel %vm1038_vm3, %v2896_v27, -inf }
 0x4fa   : > { %v2917_v35 = vsel %vm1038_vm3, %v2891_v30, -inf }
 0x4fb   : > { %2921 = vmax.xlane.f32.xlu1 %v2920_v31  ;;  %2918 = vmax.xlane.f32.xlu0 %v2917_v35 }
 0x4ff   : > { %2915 = vmax.xlane.f32.xlu1 %v2914_v37  ;;  %2912 = vmax.xlane.f32.xlu0 %v2911_v38 }
 0x577   : > { %v2904_v40 = vpop.xlane.xlu0 %2903 }
 0x578   : > { %v2924_v41 = vsub.f32 %v2635_v59, %v2904_v40 }
 0x57a   : > { %v2933_v42 = vmul.f32 1.442695, %v2924_v41 }
 0x57b   : > { %v2901_v43 = vpop.xlane.xlu0 %2900 }
 0x57c   : > { %9953 = vpow2.f32 %v2933_v42  ;;  %v2923_v58 = vsub.f32 %v2630_v60, %v2901_v43 }
 0x57e   : > { %v2931_v46 = vmul.f32 1.442695, %v2923_v58 }
 0x580   : > { %9955 = vpow2.f32 %v2931_v46  ;;  %v2907_v48 = vpop.xlane.xlu1 %2906 }
 0x581   : > { %v2925_v49 = vsub.f32 %v2717_v10, %v2907_v48 }
 0x583   : > { %v2935_v53 = vmul.f32 1.442695, %v2925_v49 }
 0x584   : > { %v2910_v54 = vpop.xlane.xlu1 %2909 }
 0x585   : > { %9957 = vpow2.f32 %v2935_v53  ;;  %v2926_v56 = vsub.f32 %v2722_v11, %v2910_v54 }
 0x586   : > { %v9954_v55 = vpop.eup %9953 }
 0x587   : > { %v2937_v61 = vmul.f32 1.442695, %v2926_v56  ;;  %v2950_v62 = vsel %vm1038_vm3, %v9954_v55, 0.0 }
 0x588   : > { %v2922_v63 = vpop.xlane.xlu1 %2921  ;;  %v2919_v0 = vpop.xlane.xlu0 %2918  ;;  %2951 = vadd.xlane.f32.xlu0 %v2950_v62 }
 0x589   : > { %9959 = vpow2.f32 %v2937_v61  ;;  %v2930_v59 = vsub.f32 %v2896_v27, %v2922_v63  ;;  %v2929_v6 = vsub.f32 %v2891_v30, %v2919_v0  ;;  %v8587_v0 = vld [vmem:[%s12835_s1 + $0x48] sm:$0xff] }
 0x58a   : > { %v9956_v7 = vpop.eup %9955 }
 0x58b   : > { %v2945_v60 = vmul.f32 1.442695, %v2930_v59  ;;  %v2943_v8 = vmul.f32 1.442695, %v2929_v6  ;;  %v2947_v9 = vsel %vm1038_vm3, %v9956_v7, 0.0 }
 0x58c   : > { %v2916_v10 = vpop.xlane.xlu1 %2915  ;;  %2948 = vadd.xlane.f32.xlu0 %v2947_v9  ;;  %v2913_v12 = vpop.xlane.xlu0 %2912 }
 0x58d   : > { %9961 = vpow2.f32 %v2945_v60  ;;  %v2928_v11 = vsub.f32 %v2809_v32, %v2916_v10  ;;  %v2927_v13 = vsub.f32 %v2804_v33, %v2913_v12  ;;  %v8588_v60 = vld [vmem:[%s12835_s1 + $0x50] sm:$0xff] }
 0x58e   : > { %9963 = vpow2.f32 %v2943_v8  ;;  %v8589_v8 = vld [vmem:[%s12835_s1 + $0x58] sm:$0xff] }
 0x58f   : > { %v9958_v16 = vpop.eup %9957  ;;  %v2941_v17 = vmul.f32 1.442695, %v2928_v11  ;;  %v2939_v19 = vmul.f32 1.442695, %v2927_v13  ;;  %v9717_v11 = vpack.c.bf16 %v8589_v8, %v8588_v60 }
 0x590   : > { %v2953_v21 = vsel %vm1038_vm3, %v9958_v16, 0.0 }
 0x591   : > { %9965 = vpow2.f32 %v2941_v17  ;;  %2954 = vadd.xlane.f32.xlu1 %v2953_v21 }
 0x592   : > { %9967 = vpow2.f32 %v2939_v19 }
 0x593   : > { %v9960_v26 = vpop.eup %9959 }
 0x594   : > { %v2956_v27 = vsel %vm1038_vm3, %v9960_v26, 0.0 }
 0x595   : > { %2957 = vadd.xlane.f32.xlu1 %v2956_v27  ;;  %v8600_v27 = vld [vmem:[%s12836_s2 + $0x50] sm:$0xff] }
 0x597   : > { %v9962_v29 = vpop.eup %9961 }
 0x598   : > { %v9964_v30 = vpop.eup %9963  ;;  %v2968_v31 = vsel %vm1038_vm3, %v9962_v29, 0.0 }
 0x599   : > { %2969 = vadd.xlane.f32.xlu1 %v2968_v31  ;;  %v2965_v32 = vsel %vm1038_vm3, %v9964_v30, 0.0  ;;  %v10699_v31 = vld [vmem:[%s10261_s25 + $0x28] sm:$0xff] }
 0x59a   : > { %2966 = vadd.xlane.f32.xlu0 %v2965_v32  ;;  %v10704_v32 = vld [vmem:[%s10261_s25 + $0x30] sm:$0xff] }
 0x59b   : > { %v9966_v33 = vpop.eup %9965 }
 0x59c   : > { %v9968_v35 = vpop.eup %9967  ;;  %v2962_v37 = vsel %vm1038_vm3, %v9966_v33, 0.0 }
 0x59d   : > { %2963 = vadd.xlane.f32.xlu1 %v2962_v37  ;;  %v2959_v38 = vsel %vm1038_vm3, %v9968_v35, 0.0 }
 0x59e   : > { %2960 = vadd.xlane.f32.xlu0 %v2959_v38 }
 0x615   : > { %v2952_v40 = vpop.xlane.xlu0 %2951 }
 0x616   : > { %9969 = vrcp.f32 %v2952_v40 }
 0x619   : > { %v2949_v41 = vpop.xlane.xlu0 %2948 }
 0x61a   : > { %9971 = vrcp.f32 %v2949_v41 }
 0x61e   : > { %v2955_v42 = vpop.xlane.xlu1 %2954 }
 0x61f   : > { %9973 = vrcp.f32 %v2955_v42 }
 0x620   : > { %v9970_v58 = vpop.eup %9969 }
 0x621   : > { %v10629_v53 = vmul.f32 %v9970_v58, %v9954_v55  ;;  %v8586_v55 = vld [vmem:[%s12835_s1 + $0x40] sm:$0xff] }
 0x622   : > { %v2958_v43 = vpop.xlane.xlu1 %2957 }
 0x623   : > { %9975 = vrcp.f32 %v2958_v43 }
 0x624   : > { %v9972_v46 = vpop.eup %9971 }
 0x625   : > { %v10627_v48 = vmul.f32 %v9972_v46, %v9956_v7 }
 0x626   : > { %v2970_v49 = vpop.xlane.xlu1 %2969 }
 0x627   : > { %9977 = vrcp.f32 %v2970_v49  ;;  %v2967_v54 = vpop.xlane.xlu0 %2966  ;;  %9273 = vmatprep.mubr.msk.f32.mxu0 %vm1038_vm3, %v10627_v48 }
 0x628   : > { %9979 = vrcp.f32 %v2967_v54  ;;  %9274 = vmatmul.mubr.msk.f32.vlgmr.msra.gmra.mrb[36].mxu0 %vm1038_vm3, %v10629_v53 }
 0x629   : > { %v9974_v56 = vpop.eup %9973  ;;  %9708 = vmatpush3.bf16.msra.mxu0 %v10581_v47  ;;  %v9713_v47 = vpack.c.bf16 %v8587_v0, %v8586_v55 }
 0x62a   : > { %v2964_v61 = vpop.xlane.xlu1 %2963  ;;  %v10636_v62 = vmul.f32 %v9974_v56, %v9958_v16  ;;  %v8599_v16 = vld [vmem:[%s12836_s2 + $0x48] sm:$0xff] }
 0x62b   : > { %9981 = vrcp.f32 %v2964_v61  ;;  %v2961_v63 = vpop.xlane.xlu0 %2960  ;;  %v8612_v61 = vld [vmem:[%s12837_s3 + $0x50] sm:$0xff] }
 0x62c   : > { %9983 = vrcp.f32 %v2961_v63  ;;  %9280 = vmatprep.mubr.msk.f32.mxu1 %vm1038_vm3, %v10636_v62  ;;  %v8613_v63 = vld [vmem:[%s12837_s3 + $0x58] sm:$0xff] }
 0x62d   : > { %v9976_v59 = vpop.eup %9975 }
 0x62e   : > { %v10646_v6 = vmul.f32 %v9976_v59, %v9960_v26  ;;  %v9733_v59 = vpack.c.bf16 %v8613_v63, %v8612_v61  ;;  %v8624_v63 = vld [vmem:[%s12840_s6 + $0x60] sm:$0xff] }
 0x630   : > { %9281 = vmatmul.mubr.msk.f32.vlgmr.msra.gmra.mrb[36].mxu1 %vm1038_vm3, %v10646_v6 }
 0x631   : > { %v9978_v7 = vpop.eup %9977  ;;  %9712 = vmatpush3.bf16.msra.mxu1 %v10583_v51  ;;  %v8598_v51 = vld [vmem:[%s12836_s2 + $0x40] sm:$0xff] }
 0x632   : > { %v9980_v9 = vpop.eup %9979  ;;  %9714 = vmatprep.subr.bf16.mxu1 %v9713_v47  ;;  %v10657_v10 = vmul.f32 %v9978_v7, %v9962_v29  ;;  %v9721_v26 = vpack.c.bf16 %v8599_v16, %v8598_v51  ;;  %v8601_v29 = vld [vmem:[%s12836_s2 + $0x58] sm:$0xff] }
 0x633   : > { %v10659_v12 = vmul.f32 %v9980_v9, %v9964_v30  ;;  %v10694_v30 = vld [vmem:[%s10261_s25 + $0x20] sm:$0xff]  ;;  %v10782_v9 = vld [vmem:[%s10261_s25 + $0x8] sm:$0xff]  ;;  %v10794_v51 = vld [vmem:[%s10261_s25 + $0x18] sm:$0xff] }
 0x635   : > { %v9982_v13 = vpop.eup %9981  ;;  %9294 = vmatprep.mubr.msk.f32.mxu1 %vm1038_vm3, %v10659_v12 }
 0x636   : > { %v9984_v17 = vpop.eup %9983  ;;  %9295 = vmatmul.mubr.msk.f32.vlgmr.msra.gmra.mrb[38].mxu1 %vm1038_vm3, %v10657_v10  ;;  %v10671_v19 = vmul.f32 %v9982_v13, %v9966_v33  ;;  %v10711_v33 = vld [vmem:[%s10261_s25] sm:$0xff] }
 0x637   : > { %9716 = vmatpush3.bf16.msra.mxu1 %v9713_v47  ;;  %v10673_v21 = vmul.f32 %v9984_v17, %v9968_v35  ;;  %9333 = vmatprep.mubr.msk.f32.mxu1 %vm333_vm0, %v10287_v20  ;;  %v9725_v20 = vpack.c.bf16 %v8601_v29, %v8600_v27  ;;  %v8611_v35 = vld [vmem:[%s12837_s3 + $0x48] sm:$0xff] }
 0x638   : > { %9718 = vmatprep.subr.bf16.mxu1 %v9717_v11 }
 0x639   : > { %9287 = vmatprep.mubr.msk.f32.mxu0 %vm1038_vm3, %v10673_v21 }
 0x63a   : > { %9288 = vmatmul.mubr.msk.f32.vlgmr.msra.gmra.mrb[38].mxu0 %vm1038_vm3, %v10671_v19 }
 0x63b   : > { %9720 = vmatpush3.bf16.msra.mxu1 %v9717_v11  ;;  %v10787_v11 = vld [vmem:[%s10261_s25 + $0x10] sm:$0xff] }
 0x63c   : > { %9722 = vmatprep.subr.bf16.mxu1 %v9721_v26 }
 0x63e   : > { %9334 = vmatmul.mubr.msk.f32.vlgmr.msra.gmra.mrb[40].mxu1 %vm333_vm0, %v10299_v23 }
 0x63f   : > { %9336 = vmatprep.mubr.msk.f32.mxu1 %vm333_vm0, %v10302_v24  ;;  %9724 = vmatpush3.bf16.msra.mxu1 %v9721_v26 }
 0x640   : > { %9726 = vmatprep.subr.bf16.mxu1 %v9725_v20 }
 0x642   : > { %9337 = vmatmul.mubr.msk.f32.gmra.mrb[42].mxu1 %vm333_vm0, %v10313_v25 }
 0x643   : > { %9339 = vmatprep.mubr.msk.f32.mxu1 %vm333_vm0, %v10694_v30  ;;  %9728 = vmatpush3.bf16.msra.mxu1 %v9725_v20 }
 0x646   : > { %9340 = vmatmul.mubr.msk.f32.gmra.mrb[44].mxu1 %vm333_vm0, %v10699_v31 }
 0x647   : > { %9342 = vmatprep.mubr.msk.f32.mxu1 %vm333_vm0, %v10704_v32 }
 0x64a   : > { %9343 = vmatmul.mubr.msk.f32.gmra.mrb[46].mxu1 %vm333_vm0, %v10296_v22  ;;  %v10728_v22 = vld [vmem:[%s10261_s25 + $0x38] sm:$0xff]  ;;  %s11751_s25 = scalar_lea.vmem [#allocation2], %s8441_s13 }
 0x64b   : > { %9353 = vmatprep.mubr.msk.f32.mxu1 %vm333_vm0, %v10711_v33 }
 0x64e   : > { %9354 = vmatmul.mubr.msk.f32.vlgmr.msra.gmra.mrb[48].mxu1 %vm333_vm0, %v10299_v23  ;;  %v8569_v23 = vld [vmem:[%s12838_s4 + $0x8] sm:$0xff] }
 0x64f   : > { %9356 = vmatprep.mubr.msk.f32.mxu1 %vm333_vm0, %v10302_v24  ;;  %9297 = vmatprep.subr.mxu0 %v8569_v23  ;;  %v2211_v24 = vld [vmem:[%s12838_s4] sm:$0xff] }
 0x650   : > { %9298 = vmatpush3.msra.mxu0 %v8569_v23  ;;  %v8623_v23 = vld [vmem:[%s12840_s6 + $0x28] sm:$0xff] }
 0x651   : > { %9311 = vmatprep.subr.mxu0 %v2211_v24 }
 0x652   : > { %9357 = vmatmul.mubr.msk.f32.gmra.mrb[50].mxu1 %vm333_vm0, %v10313_v25  ;;  %v8610_v25 = vld [vmem:[%s12837_s3 + $0x40] sm:$0xff] }
 0x653   : > { %9359 = vmatprep.mubr.msk.f32.mxu1 %vm333_vm0, %v10694_v30  ;;  %v9729_v40 = vpack.c.bf16 %v8611_v35, %v8610_v25  ;;  %v8622_v25 = vld [vmem:[%s12840_s6 + $0x20] sm:$0xff] }
 0x656   : > { %9360 = vmatmul.mubr.msk.f32.gmra.mrb[52].mxu1 %vm333_vm0, %v10699_v31 }
 0x657   : > { %9362 = vmatprep.mubr.msk.f32.mxu1 %vm333_vm0, %v10704_v32 }
 0x65a   : > { %9363 = vmatmul.mubr.msk.f32.gmra.mrb[54].mxu1 %vm333_vm0, %v10728_v22 }
 0x6fb   : > { %v9275_v37 = vpop.f32.mrb[36].mxu0 }
 0x6fc   : > { %v3811_v38 = vpop.f32.mrb[37].mxu0 }
 0x6fd   : > { %9299 = vmatprep.mubr.msk.f32.mxu0 %vm689_vm1, %v3811_v38 }
 0x6fe   : > { %9300 = vmatmul.mubr.msk.f32.vlgmr.msra.gmra.mrb[40].mxu0 %vm689_vm1, %v9275_v37 }
 0x6ff   : > { %9312 = vmatpush3.msra.mxu0 %v2211_v24 }
 0x700   : > { %9730 = vmatprep.subr.bf16.mxu0 %v9729_v40 }
 0x703   : > { %v9282_v41 = vpop.f32.mrb[36].mxu1 }
 0x704   : > { %v3892_v42 = vpop.f32.mrb[37].mxu1 }
 0x705   : > { %9302 = vmatprep.mubr.msk.f32.mxu0 %vm689_vm1, %v3892_v42 }
 0x706   : > { %9303 = vmatmul.mubr.msk.f32.gmra.mrb[42].mxu0 %vm689_vm1, %v9282_v41 }
 0x709   : > { %v9296_v43 = vpop.f32.mrb[38].mxu1 }
 0x70a   : > { %v4054_v58 = vpop.f32.mrb[39].mxu1 }
 0x70d   : > { %v9289_v46 = vpop.f32.mrb[38].mxu0 }
 0x70e   : > { %v3973_v49 = vpop.f32.mrb[39].mxu0 }
 0x70f   : > { %9305 = vmatprep.mubr.msk.f32.mxu0 %vm689_vm1, %v3973_v49 }
 0x710   : > { %9306 = vmatmul.mubr.msk.f32.gmra.mrb[44].mxu0 %vm689_vm1, %v9289_v46 }
 0x711   : > { %v9335_v54 = vpop.f32.mrb[40].mxu1  ;;  %9308 = vmatprep.mubr.msk.f32.mxu0 %vm689_vm1, %v4054_v58 }
 0x712   : > { %v4394_v56 = vpop.f32.mrb[41].mxu1 }
 0x713   : > { %9389 = vmatprep.mubr.msk.f32.mxu1 %vm689_vm1, %v4394_v56  ;;  %v8625_v56 = vld [vmem:[%s12840_s6 + $0x68] sm:$0xff] }
 0x714   : > { %9309 = vmatmul.mubr.msk.f32.gmra.mrb[46].mxu0 %vm689_vm1, %v9296_v43 }
 0x715   : > { %v9338_v55 = vpop.f32.mrb[42].mxu1  ;;  %9313 = vmatprep.mubr.msk.f32.mxu0 %vm689_vm1, %v10551_v14 }
 0x716   : > { %v4404_v0 = vpop.f32.mrb[43].mxu1 }
 0x718   : > { %9314 = vmatmul.mubr.msk.f32.vlgmr.msra.gmra.mrb[40].mxu0 %vm689_vm1, %v10549_v5 }
 0x719   : > { %v9341_v47 = vpop.f32.mrb[44].mxu1  ;;  %9316 = vmatprep.mubr.msk.f32.mxu0 %vm689_vm1, %v10543_v2  ;;  %9732 = vmatpush3.bf16.msra.mxu0 %v9729_v40 }
 0x71a   : > { %v4414_v7 = vpop.f32.mrb[45].mxu1  ;;  %9734 = vmatprep.subr.bf16.mxu0 %v9733_v59 }
 0x71c   : > { %9317 = vmatmul.mubr.msk.f32.gmra.mrb[42].mxu0 %vm689_vm1, %v10541_v1 }
 0x71d   : > { %v9344_v60 = vpop.f32.mrb[46].mxu1  ;;  %9319 = vmatprep.mubr.msk.f32.mxu0 %vm689_vm1, %v10555_v18  ;;  %9736 = vmatpush3.bf16.msra.mxu0 %v9733_v59 }
 0x71e   : > { %v4424_v14 = vpop.f32.mrb[47].mxu1 }
 0x720   : > { %9320 = vmatmul.mubr.msk.f32.gmra.mrb[44].mxu0 %vm689_vm1, %v10553_v15 }
 0x721   : > { %v9355_v5 = vpop.f32.mrb[48].mxu1  ;;  %9322 = vmatprep.mubr.msk.f32.mxu0 %vm689_vm1, %v10547_v4 }
 0x722   : > { %v4504_v2 = vpop.f32.mrb[49].mxu1 }
 0x723   : > { %v9737_v8 = vpack.c.bf16 %v9355_v5, %v4504_v2  ;;  %v8626_v5 = vld [vmem:[%s12840_s6 + $0xa0] sm:$0xff] }
 0x724   : > { %9323 = vmatmul.mubr.msk.f32.gmra.mrb[46].mxu0 %vm689_vm1, %v10545_v3 }
 0x725   : > { %9739 = vmatprep.subr.msk.bf16.mxu1 %vm10351_vm2, %v9737_v8  ;;  %v9358_v1 = vpop.f32.mrb[50].mxu1  ;;  %9373 = vmatprep.mubr.msk.f32.mxu0 %vm333_vm0, %v10711_v33 }
 0x726   : > { %9742 = vmatpush3.bf16.xpose.msk.msra.mxu1 %vm10351_vm2, %v9737_v8  ;;  %v4514_v15 = vpop.f32.mrb[51].mxu1 }
 0x727   : > { %v9743_v18 = vpack.c.bf16 %v9358_v1, %v4514_v15 }
 0x728   : > { %9374 = vmatmul.mubr.msk.f32.vlgmr.msra.gmra.mrb[48].mxu0 %vm333_vm0, %v10782_v9 }
 0x729   : > { %v9361_v4 = vpop.f32.mrb[52].mxu1  ;;  %9376 = vmatprep.mubr.msk.f32.mxu0 %vm333_vm0, %v10787_v11  ;;  %9745 = vmatprep.subr.msk.bf16.mxu1 %vm10351_vm2, %v9743_v18 }
 0x72a   : > { %v4524_v3 = vpop.f32.mrb[53].mxu1 }
 0x72b   : > { %v9749_v13 = vpack.c.bf16 %v9361_v4, %v4524_v3  ;;  %v8629_v3 = vld [vmem:[%s12840_s6 + $0xe8] sm:$0xff] }
 0x72c   : > { %9377 = vmatmul.mubr.msk.f32.gmra.mrb[50].mxu0 %vm333_vm0, %v10794_v51 }
 0x72d   : > { %9390 = vmatmul.mubr.msk.f32.vlgmr.msra.gmra.mrb[56].mxu1 %vm689_vm1, %v9335_v54  ;;  %9751 = vmatprep.subr.msk.bf16.mxu0 %vm10351_vm2, %v9749_v13  ;;  %v9364_v16 = vpop.f32.mrb[54].mxu1 }
 0x72e   : > { %9748 = vmatpush3.bf16.xpose.msk.msra.mxu1 %vm10351_vm2, %v9743_v18  ;;  %9396 = vmatprep.mubr.msk.f32.mxu1 %vm689_vm1, %v4404_v0  ;;  %v4534_v17 = vpop.f32.mrb[55].mxu1 }
 0x72f   : > { %9379 = vmatprep.mubr.msk.f32.mxu0 %vm333_vm0, %v10694_v30  ;;  %9754 = vmatpush3.bf16.xpose.msk.msra.mxu0 %vm10351_vm2, %v9749_v13  ;;  %v9755_v26 = vpack.c.bf16 %v9364_v16, %v4534_v17  ;;  %v8628_v16 = vld [vmem:[%s12840_s6 + $0xe0] sm:$0xff] }
 0x730   : > { %9380 = vmatmul.mubr.msk.f32.gmra.mrb[52].mxu0 %vm333_vm0, %v10699_v31 }
 0x731   : > { %9382 = vmatprep.mubr.msk.f32.mxu0 %vm333_vm0, %v10704_v32  ;;  %9757 = vmatprep.subr.msk.bf16.mxu1 %vm10351_vm2, %v9755_v26 }
 0x734   : > { %9383 = vmatmul.mubr.msk.f32.gmra.mrb[54].mxu0 %vm333_vm0, %v10728_v22 }
 0x735   : > { %9397 = vmatmul.mubr.msk.f32.vlgmr.msra.gmra.mrb[58].mxu1 %vm689_vm1, %v9338_v55  ;;  %9403 = vmatprep.mubr.msk.f32.mxu0 %vm689_vm1, %v4414_v7 }
 0x736   : > { %9760 = vmatpush3.bf16.xpose.msk.msra.mxu1 %vm10351_vm2, %v9755_v26  ;;  %9410 = vmatprep.mubr.msk.f32.mxu1 %vm689_vm1, %v4424_v14 }
 0x738   : > { %9404 = vmatmul.mubr.msk.f32.vlgmr.msra.gmra.mrb[56].mxu0 %vm689_vm1, %v9341_v47 }
 0x73d   : > { %9411 = vmatmul.mubr.msk.f32.vlgmr.msra.gmra.mrb[60].mxu1 %vm689_vm1, %v9344_v60  ;;  %v8627_v60 = vld [vmem:[%s12840_s6 + $0xa8] sm:$0xff] }
 0x7fb   : > { %v9375_v27 = vpop.f32.mrb[48].mxu0 }
 0x7fc   : > { %v4614_v29 = vpop.f32.mrb[49].mxu0 }
 0x7fd   : > { %v9761_v20 = vpack.c.bf16 %v9375_v27, %v4614_v29 }
 0x7ff   : > { %v9378_v24 = vpop.f32.mrb[50].mxu0  ;;  %9762 = vmatprep.subr.bf16.mxu0 %v9761_v20 }
 0x800   : > { %v9391_v35 = vpop.f32.mrb[56].mxu1  ;;  %v4624_v37 = vpop.f32.mrb[51].mxu0  ;;  %9764 = vmatpush3.bf16.msra.mxu0 %v9761_v20 }
 0x801   : > { %v4746_v38 = vadd.f32 %v9391_v35, %v8623_v23  ;;  %v10829_v40 = vpack.c.bf16 %v9378_v24, %v4624_v37  ;;  %v4740_v41 = vpop.f32.mrb[57].mxu1 }
 0x802   : > { %v4741_v42 = vadd.f32 %v8622_v25, %v4740_v41 }
 0x803   : > { %v5013_v43 = vsel %vm1038_vm3, %v4746_v38, -inf  ;;  %v9381_v58 = vpop.f32.mrb[52].mxu0  ;;  %9766 = vmatprep.subr.bf16.mxu0 %v10829_v40 }
 0x804   : > { %5014 = vmax.xlane.f32.xlu1 %v5013_v43  ;;  %v5010_v46 = vsel %vm1038_vm3, %v4741_v42, -inf  ;;  %v4634_v49 = vpop.f32.mrb[53].mxu0 }
 0x805   : > { %5011 = vmax.xlane.f32.xlu0 %v5010_v46  ;;  %v9769_v54 = vpack.c.bf16 %v9381_v58, %v4634_v49 }
 0x807   : > { %v9384_v61 = vpop.f32.mrb[54].mxu0  ;;  %9770 = vmatprep.subr.bf16.mxu1 %v9769_v54 }
 0x808   : > { %v9398_v55 = vpop.f32.mrb[58].mxu1  ;;  %v4644_v0 = vpop.f32.mrb[55].mxu0  ;;  %9772 = vmatpush3.bf16.msra.mxu1 %v9769_v54 }
 0x809   : > { %v4833_v59 = vadd.f32 %v9398_v55, %v8625_v56  ;;  %v10840_v47 = vpack.c.bf16 %v9384_v61, %v4644_v0  ;;  %v4827_v7 = vpop.f32.mrb[59].mxu1 }
 0x80a   : > { %v4828_v14 = vadd.f32 %v8624_v63, %v4827_v7 }
 0x80b   : > { %v5019_v2 = vsel %vm1038_vm3, %v4833_v59, -inf  ;;  %v9405_v8 = vpop.f32.mrb[56].mxu0 }
 0x80c   : > { %5020 = vmax.xlane.f32.xlu1 %v5019_v2  ;;  %v4920_v1 = vadd.f32 %v9405_v8, %v8627_v60  ;;  %v5016_v15 = vsel %vm1038_vm3, %v4828_v14, -inf  ;;  %v4914_v18 = vpop.f32.mrb[57].mxu0 }
 0x80d   : > { %5017 = vmax.xlane.f32.xlu0 %v5016_v15  ;;  %v4915_v4 = vadd.f32 %v8626_v5, %v4914_v18 }
 0x80e   : > { %v5025_v13 = vsel %vm1038_vm3, %v4920_v1, -inf }
 0x80f   : > { %v5022_v17 = vsel %vm1038_vm3, %v4915_v4, -inf }
 0x810   : > { %v9412_v26 = vpop.f32.mrb[60].mxu1  ;;  %5026 = vmax.xlane.f32.xlu1 %v5025_v13 }
 0x811   : > { %v5007_v27 = vadd.f32 %v9412_v26, %v8629_v3  ;;  %v5001_v29 = vpop.f32.mrb[61].mxu1  ;;  %5023 = vmax.xlane.f32.xlu0 %v5022_v17 }
 0x812   : > { %v5002_v20 = vadd.f32 %v8628_v16, %v5001_v29 }
 0x813   : > { %v5031_v23 = vsel %vm1038_vm3, %v5007_v27, -inf }
 0x814   : > { %5032 = vmax.xlane.f32.xlu1 %v5031_v23  ;;  %v5028_v24 = vsel %vm1038_vm3, %v5002_v20, -inf }
 0x815   : > { %5029 = vmax.xlane.f32.xlu0 %v5028_v24 }
 0x891   : > { %v5015_v25 = vpop.xlane.xlu1 %5014 }
 0x892   : > { %v5035_v35 = vsub.f32 %v4746_v38, %v5015_v25  ;;  %v5012_v37 = vpop.xlane.xlu0 %5011 }
 0x893   : > { %v5034_v41 = vsub.f32 %v4741_v42, %v5012_v37 }
 0x894   : > { %v5044_v43 = vmul.f32 1.442695, %v5035_v35 }
 0x895   : > { %v5042_v58 = vmul.f32 1.442695, %v5034_v41 }
 0x896   : > { %9985 = vpow2.f32 %v5044_v43 }
 0x897   : > { %9987 = vpow2.f32 %v5042_v58 }
 0x899   : > { %v5021_v46 = vpop.xlane.xlu1 %5020 }
 0x89a   : > { %v5037_v49 = vsub.f32 %v4833_v59, %v5021_v46  ;;  %v5018_v54 = vpop.xlane.xlu0 %5017 }
 0x89b   : > { %v5036_v56 = vsub.f32 %v4828_v14, %v5018_v54 }
 0x89c   : > { %v5048_v61 = vmul.f32 1.442695, %v5037_v49 }
 0x89d   : > { %v5046_v63 = vmul.f32 1.442695, %v5036_v56  ;;  %v5027_v55 = vpop.xlane.xlu1 %5026 }
 0x89e   : > { %9989 = vpow2.f32 %v5048_v61  ;;  %v5039_v0 = vsub.f32 %v4920_v1, %v5027_v55  ;;  %v5024_v7 = vpop.xlane.xlu0 %5023 }
 0x89f   : > { %9991 = vpow2.f32 %v5046_v63  ;;  %v5038_v60 = vsub.f32 %v4915_v4, %v5024_v7 }
 0x8a0   : > { %v9986_v5 = vpop.eup %9985  ;;  %v5052_v38 = vmul.f32 1.442695, %v5039_v0 }
 0x8a1   : > { %v9988_v2 = vpop.eup %9987  ;;  %v5050_v42 = vmul.f32 1.442695, %v5038_v60  ;;  %v5033_v8 = vpop.xlane.xlu1 %5032  ;;  %v5061_v15 = vsel %vm1038_vm3, %v9986_v5, 0.0 }
 0x8a2   : > { %9993 = vpow2.f32 %v5052_v38  ;;  %v5041_v18 = vsub.f32 %v5007_v27, %v5033_v8  ;;  %5062 = vadd.xlane.f32.xlu1 %v5061_v15  ;;  %v5030_v59 = vpop.xlane.xlu0 %5029  ;;  %v5058_v14 = vsel %vm1038_vm3, %v9988_v2, 0.0 }
 0x8a3   : > { %9995 = vpow2.f32 %v5050_v42  ;;  %v5040_v3 = vsub.f32 %v5002_v20, %v5030_v59  ;;  %5059 = vadd.xlane.f32.xlu0 %v5058_v14 }
 0x8a4   : > { %v5056_v1 = vmul.f32 1.442695, %v5041_v18 }
 0x8a5   : > { %v5054_v13 = vmul.f32 1.442695, %v5040_v3 }
 0x8a6   : > { %9997 = vpow2.f32 %v5056_v1  ;;  %v8679_v1 = vld [vmem:[%s12836_s2 + $0x60] sm:$0xff] }
 0x8a7   : > { %9999 = vpow2.f32 %v5054_v13  ;;  %v8680_v13 = vld [vmem:[%s12836_s2 + $0x68] sm:$0xff] }
 0x8a8   : > { %v9990_v4 = vpop.eup %9989 }
 0x8a9   : > { %v9992_v16 = vpop.eup %9991  ;;  %v5067_v17 = vsel %vm1038_vm3, %v9990_v4, 0.0 }
 0x8aa   : > { %5068 = vadd.xlane.f32.xlu1 %v5067_v17  ;;  %v5064_v26 = vsel %vm1038_vm3, %v9992_v16, 0.0  ;;  %v8668_v17 = vld [vmem:[%s12835_s1 + $0x68] sm:$0xff] }
 0x8ab   : > { %5065 = vadd.xlane.f32.xlu0 %v5064_v26 }
 0x8ac   : > { %v9994_v27 = vpop.eup %9993 }
 0x8ad   : > { %v9996_v29 = vpop.eup %9995  ;;  %v5073_v23 = vsel %vm1038_vm3, %v9994_v27, 0.0 }
 0x8ae   : > { %5074 = vadd.xlane.f32.xlu1 %v5073_v23  ;;  %v5070_v20 = vsel %vm1038_vm3, %v9996_v29, 0.0 }
 0x8af   : > { %5071 = vadd.xlane.f32.xlu0 %v5070_v20  ;;  %v8691_v20 = vld [vmem:[%s12837_s3 + $0x60] sm:$0xff] }
 0x8b0   : > { %v9998_v24 = vpop.eup %9997 }
 0x8b1   : > { %v10000_v25 = vpop.eup %9999  ;;  %v5079_v35 = vsel %vm1038_vm3, %v9998_v24, 0.0 }
 0x8b2   : > { %5080 = vadd.xlane.f32.xlu1 %v5079_v35  ;;  %v5076_v37 = vsel %vm1038_vm3, %v10000_v25, 0.0 }
 0x8b3   : > { %5077 = vadd.xlane.f32.xlu0 %v5076_v37  ;;  %v8694_v37 = vld [vmem:[%s12837_s3 + $0x78] sm:$0xff] }
 0x92f   : > { %v5063_v41 = vpop.xlane.xlu1 %5062 }
 0x930   : > { %10001 = vrcp.f32 %v5063_v41  ;;  %v5060_v43 = vpop.xlane.xlu0 %5059 }
 0x931   : > { %10003 = vrcp.f32 %v5060_v43  ;;  %v8681_v43 = vld [vmem:[%s12836_s2 + $0x70] sm:$0xff] }
 0x937   : > { %v5069_v58 = vpop.xlane.xlu1 %5068 }
 0x938   : > { %10005 = vrcp.f32 %v5069_v58  ;;  %v5066_v46 = vpop.xlane.xlu0 %5065  ;;  %v8682_v58 = vld [vmem:[%s12836_s2 + $0x78] sm:$0xff] }
 0x939   : > { %10007 = vrcp.f32 %v5066_v46 }
 0x93a   : > { %v10002_v49 = vpop.eup %10001 }
 0x93b   : > { %v10004_v54 = vpop.eup %10003  ;;  %v5075_v56 = vpop.xlane.xlu1 %5074  ;;  %v10870_v55 = vmul.f32 %v10002_v49, %v9986_v5 }
 0x93c   : > { %10009 = vrcp.f32 %v5075_v56  ;;  %v5072_v61 = vpop.xlane.xlu0 %5071  ;;  %v10868_v63 = vmul.f32 %v10004_v54, %v9988_v2  ;;  %v9789_v54 = vpack.c.bf16 %v8682_v58, %v8681_v43 }
 0x93d   : > { %10011 = vrcp.f32 %v5072_v61 }
 0x93e   : > { %9417 = vmatprep.mubr.msk.f32.mxu0 %vm1038_vm3, %v10868_v63 }
 0x93f   : > { %v5081_v0 = vpop.xlane.xlu1 %5080  ;;  %9418 = vmatmul.mubr.msk.f32.vlgmr.msra.gmra.mrb[58].mxu0 %vm1038_vm3, %v10870_v55 }
 0x940   : > { %10013 = vrcp.f32 %v5081_v0  ;;  %9768 = vmatpush3.bf16.msra.mxu0 %v10829_v40  ;;  %v5078_v7 = vpop.xlane.xlu0 %5077 }
 0x941   : > { %9774 = vmatprep.subr.bf16.mxu0 %v10840_v47  ;;  %10015 = vrcp.f32 %v5078_v7 }
 0x942   : > { %v10006_v60 = vpop.eup %10005 }
 0x943   : > { %v10008_v38 = vpop.eup %10007  ;;  %v10880_v5 = vmul.f32 %v10006_v60, %v9990_v4  ;;  %v9785_v4 = vpack.c.bf16 %v8680_v13, %v8679_v1 }
 0x944   : > { %v10878_v2 = vmul.f32 %v10008_v38, %v9992_v16  ;;  %v8667_v16 = vld [vmem:[%s12835_s1 + $0x60] sm:$0xff] }
 0x945   : > { %12884 = vst [vmem:[#allocation5_spill] sm:$0xff] %v10880_v5  ;;  %v9777_v26 = vpack.c.bf16 %v8668_v17, %v8667_v16 }
 0x946   : > { %v10010_v42 = vpop.eup %10009  ;;  %9424 = vmatprep.mubr.msk.f32.mxu0 %vm1038_vm3, %v10878_v2 }
 0x947   : > { %v10012_v8 = vpop.eup %10011  ;;  %9425 = vmatmul.mubr.msk.f32.vlgmr.msra.gmra.mrb[60].mxu0 %vm1038_vm3, %v10880_v5  ;;  %v10889_v15 = vmul.f32 %v10010_v42, %v9994_v27  ;;  %9778 = vmatprep.subr.bf16.mxu1 %v9777_v26  ;;  %v8669_v27 = vld [vmem:[%s12835_s1 + $0x70] sm:$0xff] }
 0x948   : > { %9776 = vmatpush3.bf16.msra.mxu0 %v10840_v47  ;;  %v10887_v40 = vmul.f32 %v10012_v8, %v9996_v29  ;;  %v8658_v47 = vld [vmem:[%s12838_s4 + $0x10] sm:$0xff]  ;;  %v8670_v29 = vld [vmem:[%s12835_s1 + $0x78] sm:$0xff] }
 0x949   : > { %12885 = vst [vmem:[#allocation6_spill] sm:$0xff] %v10889_v15  ;;  %9441 = vmatprep.subr.mxu0 %v8658_v47  ;;  %v9781_v23 = vpack.c.bf16 %v8670_v29, %v8669_v27 }
 0x94a   : > { %v10014_v18 = vpop.eup %10013  ;;  %9431 = vmatprep.mubr.msk.f32.mxu1 %vm1038_vm3, %v10887_v40 }
 0x94b   : > { %v10016_v59 = vpop.eup %10015  ;;  %9432 = vmatmul.mubr.msk.f32.vlgmr.msra.gmra.mrb[62].mxu1 %vm1038_vm3, %v10889_v15  ;;  %v10899_v3 = vmul.f32 %v10014_v18, %v9998_v24  ;;  %v8692_v24 = vld [vmem:[%s12837_s3 + $0x68] sm:$0xff] }
 0x94c   : > { %v10895_v14 = vmul.f32 %v10016_v59, %v10000_v25  ;;  %9463 = vmatprep.mubr.msk.f32.mxu1 %vm333_vm0, %v10711_v33  ;;  %9780 = vmatpush3.bf16.msra.mxu1 %v9777_v26  ;;  %v8693_v25 = vld [vmem:[%s12837_s3 + $0x70] sm:$0xff]  ;;  %v9793_v35 = vpack.c.bf16 %v8692_v24, %v8691_v20 }
 0x94d   : > { %12886 = vst [vmem:[#allocation7_spill] sm:$0xff] %v10899_v3  ;;  %9782 = vmatprep.subr.bf16.mxu1 %v9781_v23  ;;  %v9797_v41 = vpack.c.bf16 %v8694_v37, %v8693_v25 }
 0x94e   : > { %9438 = vmatprep.mubr.msk.f32.mxu0 %vm1038_vm3, %v10895_v14 }
 0x94f   : > { %9439 = vmatmul.mubr.msk.f32.vlgmr.msra.gmra.mrb[62].mxu0 %vm1038_vm3, %v10899_v3 }
 0x950   : > { %9442 = vmatpush3.msra.mxu0 %v8658_v47  ;;  %9784 = vmatpush3.bf16.msra.mxu1 %v9781_v23 }
 0x951   : > { %9786 = vmatprep.subr.bf16.mxu0 %v9785_v4  ;;  %9794 = vmatprep.subr.bf16.mxu1 %v9793_v35 }
 0x953   : > { %9464 = vmatmul.mubr.msk.f32.vlgmr.msra.gmra.mrb[64].mxu1 %vm333_vm0, %v10782_v9 }
 0x954   : > { %9466 = vmatprep.mubr.msk.f32.mxu1 %vm333_vm0, %v10787_v11  ;;  %9796 = vmatpush3.bf16.msra.mxu1 %v9793_v35 }
 0x955   : > { %9798 = vmatprep.subr.bf16.mxu1 %v9797_v41 }
 0x957   : > { %9467 = vmatmul.mubr.msk.f32.gmra.mrb[66].mxu1 %vm333_vm0, %v10794_v51 }
 0x958   : > { %9469 = vmatprep.mubr.msk.f32.mxu1 %vm333_vm0, %v10694_v30  ;;  %9800 = vmatpush3.bf16.msra.mxu1 %v9797_v41 }
 0x95b   : > { %9470 = vmatmul.mubr.msk.f32.gmra.mrb[68].mxu1 %vm333_vm0, %v10699_v31 }
 0x95c   : > { %9472 = vmatprep.mubr.msk.f32.mxu1 %vm333_vm0, %v10704_v32 }
 0x95f   : > { %9473 = vmatmul.mubr.msk.f32.gmra.mrb[70].mxu1 %vm333_vm0, %v10728_v22 }
 0x960   : > { %9503 = vmatprep.mubr.msk.f32.mxu1 %vm333_vm0, %v10711_v33 }
 0x963   : > { %9504 = vmatmul.mubr.msk.f32.vlgmr.msra.gmra.mrb[72].mxu1 %vm333_vm0, %v10782_v9 }
 0x964   : > { %9506 = vmatprep.mubr.msk.f32.mxu1 %vm333_vm0, %v10787_v11 }
 0x967   : > { %9507 = vmatmul.mubr.msk.f32.gmra.mrb[74].mxu1 %vm333_vm0, %v10794_v51 }
 0x968   : > { %9509 = vmatprep.mubr.msk.f32.mxu1 %vm333_vm0, %v10694_v30 }
 0x96b   : > { %9510 = vmatmul.mubr.msk.f32.gmra.mrb[76].mxu1 %vm333_vm0, %v10699_v31 }
 0x96c   : > { %9512 = vmatprep.mubr.msk.f32.mxu1 %vm333_vm0, %v10704_v32 }
 0x96f   : > { %9513 = vmatmul.mubr.msk.f32.gmra.mrb[78].mxu1 %vm333_vm0, %v10728_v22 }
 0xa12   : > { %v9419_v46 = vpop.f32.mrb[58].mxu0 }
 0xa13   : > { %v5922_v49 = vpop.f32.mrb[59].mxu0 }
 0xa14   : > { %9443 = vmatprep.mubr.msk.f32.mxu0 %vm689_vm1, %v5922_v49 }
 0xa15   : > { %9444 = vmatmul.mubr.msk.f32.vlgmr.msra.gmra.mrb[40].mxu0 %vm689_vm1, %v9419_v46 }
 0xa16   : > { %9788 = vmatpush3.bf16.msra.mxu0 %v9785_v4 }
 0xa17   : > { %9790 = vmatprep.subr.bf16.mxu0 %v9789_v54 }
 0xa1a   : > { %v9426_v56 = vpop.f32.mrb[60].mxu0  ;;  %9792 = vmatpush3.bf16.msra.mxu0 %v9789_v54  ;;  %v8703_v54 = vld [vmem:[%s12840_s6 + $0x30] sm:$0xff] }
 0xa1b   : > { %v6003_v61 = vpop.f32.mrb[61].mxu0 }
 0xa1c   : > { %9446 = vmatprep.mubr.msk.f32.mxu0 %vm689_vm1, %v6003_v61 }
 0xa1d   : > { %9447 = vmatmul.mubr.msk.f32.gmra.mrb[42].mxu0 %vm689_vm1, %v9426_v56 }
 0xa1e   : > { %v9433_v0 = vpop.f32.mrb[62].mxu1 }
 0xa1f   : > { %v6084_v7 = vpop.f32.mrb[63].mxu1 }
 0xa20   : > { %9449 = vmatprep.mubr.msk.f32.mxu0 %vm689_vm1, %v6084_v7 }
 0xa21   : > { %9450 = vmatmul.mubr.msk.f32.gmra.mrb[44].mxu0 %vm689_vm1, %v9433_v0 }
 0xa22   : > { %v9440_v60 = vpop.f32.mrb[62].mxu0 }
 0xa23   : > { %v6165_v38 = vpop.f32.mrb[63].mxu0 }
 0xa24   : > { %9452 = vmatprep.mubr.msk.f32.mxu0 %vm689_vm1, %v6165_v38 }
 0xa25   : > { %9453 = vmatmul.mubr.msk.f32.gmra.mrb[46].mxu0 %vm689_vm1, %v9440_v60  ;;  %v8706_v60 = vld [vmem:[%s12840_s6 + $0x78] sm:$0xff] }
 0xa26   : > { %9483 = vmatprep.mubr.msk.f32.mxu0 %vm333_vm0, %v10711_v33  ;;  %v9465_v33 = vpop.f32.mrb[64].mxu1 }
 0xa29   : > { %9484 = vmatmul.mubr.msk.f32.vlgmr.msra.gmra.mrb[64].mxu0 %vm333_vm0, %v10782_v9  ;;  %v6384_v9 = vpop.f32.mrb[65].mxu1 }
 0xa2a   : > { %9486 = vmatprep.mubr.msk.f32.mxu0 %vm333_vm0, %v10787_v11  ;;  %v9468_v11 = vpop.f32.mrb[66].mxu1 }
 0xa2b   : > { %v6394_v42 = vpop.f32.mrb[67].mxu1 }
 0xa2c   : > { %9526 = vmatprep.mubr.msk.f32.mxu1 %vm689_vm1, %v6394_v42 }
 0xa2d   : > { %9487 = vmatmul.mubr.msk.f32.gmra.mrb[66].mxu0 %vm333_vm0, %v10794_v51 }
 0xa2e   : > { %9489 = vmatprep.mubr.msk.f32.mxu0 %vm333_vm0, %v10694_v30  ;;  %v9471_v51 = vpop.f32.mrb[68].mxu1 }
 0xa2f   : > { %v6404_v8 = vpop.f32.mrb[69].mxu1 }
 0xa31   : > { %9490 = vmatmul.mubr.msk.f32.gmra.mrb[68].mxu0 %vm333_vm0, %v10699_v31 }
 0xa32   : > { %9492 = vmatprep.mubr.msk.f32.mxu0 %vm333_vm0, %v10704_v32  ;;  %v9474_v30 = vpop.f32.mrb[70].mxu1 }
 0xa33   : > { %v6414_v18 = vpop.f32.mrb[71].mxu1 }
 0xa35   : > { %9493 = vmatmul.mubr.msk.f32.gmra.mrb[70].mxu0 %vm333_vm0, %v10728_v22 }
 0xa36   : > { %9519 = vmatprep.mubr.msk.f32.mxu0 %vm689_vm1, %v6384_v9  ;;  %v9505_v59 = vpop.f32.mrb[72].mxu1 }
 0xa37   : > { %v6604_v31 = vpop.f32.mrb[73].mxu1 }
 0xa38   : > { %v9825_v47 = vpack.c.bf16 %v9505_v59, %v6604_v31  ;;  %v8707_v59 = vld [vmem:[%s12840_s6 + $0xb0] sm:$0xff] }
 0xa3a   : > { %v9508_v1 = vpop.f32.mrb[74].mxu1 }
 0xa3b   : > { %v6614_v32 = vpop.f32.mrb[75].mxu1 }
 0xa3c   : > { %v9829_v13 = vpack.c.bf16 %v9508_v1, %v6614_v32 }
 0xa3e   : > { %v9511_v4 = vpop.f32.mrb[76].mxu1 }
 0xa3f   : > { %v6624_v41 = vpop.f32.mrb[77].mxu1 }
 0xa40   : > { %v11022_v43 = vpack.c.bf16 %v9511_v4, %v6624_v41  ;;  %v8710_v4 = vld [vmem:[%s12840_s6 + $0xf8] sm:$0xff] }
 0xa42   : > { %v9514_v58 = vpop.f32.mrb[78].mxu1 }
 0xa43   : > { %v6634_v46 = vpop.f32.mrb[79].mxu1 }
 0xa44   : > { %v11025_v49 = vpack.c.bf16 %v9514_v58, %v6634_v46  ;;  %v10122_v58 = vmov 1934713408  }
 0xa45   : > { %v1144_v46 = vunpack.c.l.s4 %v10122_v58 }
 0xafc   : > { %v9485_v22 = vpop.f32.mrb[64].mxu0 }
 0xafd   : > { %v6494_v16 = vpop.f32.mrb[65].mxu0 }
 0xafe   : > { %v9801_v17 = vpack.c.bf16 %v9485_v22, %v6494_v16  ;;  %v8709_v16 = vld [vmem:[%s12840_s6 + $0xf0] sm:$0xff] }
 0xb00   : > { %v9488_v26 = vpop.f32.mrb[66].mxu0  ;;  %9803 = vmatprep.subr.msk.bf16.mxu0 %vm10351_vm2, %v9801_v17 }
 0xb01   : > { %v6504_v27 = vpop.f32.mrb[67].mxu0  ;;  %9806 = vmatpush3.bf16.xpose.msk.msra.mxu0 %vm10351_vm2, %v9801_v17  ;;  %v10121_v17 = vmov 1983009808  }
 0xb02   : > { %v9807_v29 = vpack.c.bf16 %v9488_v26, %v6504_v27  ;;  %v1129_v26 = vunpack.c.l.s4 %v10121_v17  ;;  %v12843_v27 = vlaneseq }
 0xb04   : > { %v9491_v23 = vpop.f32.mrb[68].mxu0  ;;  %9809 = vmatprep.subr.msk.bf16.mxu1 %vm10351_vm2, %v9807_v29  ;;  %v11083_v41 = vshrl.u32 %v12843_v27, 7 }
 0xb05   : > { %v6514_v20 = vpop.f32.mrb[69].mxu0  ;;  %9812 = vmatpush3.bf16.xpose.msk.msra.mxu1 %vm10351_vm2, %v9807_v29 }
 0xb06   : > { %v9813_v24 = vpack.c.bf16 %v9491_v23, %v6514_v20 }
 0xb08   : > { %v9494_v25 = vpop.f32.mrb[70].mxu0  ;;  %9520 = vmatmul.mubr.msk.f32.vlgmr.msra.gmra.mrb[72].mxu0 %vm689_vm1, %v9465_v33  ;;  %9815 = vmatprep.subr.msk.bf16.mxu0 %vm10351_vm2, %v9813_v24  ;;  %v8705_v33 = vld [vmem:[%s12840_s6 + $0x70] sm:$0xff] }
 0xb09   : > { %v6524_v35 = vpop.f32.mrb[71].mxu0  ;;  %9818 = vmatpush3.bf16.xpose.msk.msra.mxu0 %vm10351_vm2, %v9813_v24  ;;  %9533 = vmatprep.mubr.msk.f32.mxu0 %vm689_vm1, %v6404_v8 }
 0xb0a   : > { %v9819_v37 = vpack.c.bf16 %v9494_v25, %v6524_v35  ;;  %9826 = vmatprep.subr.bf16.mxu0 %v9825_v47 }
 0xb0c   : > { %9527 = vmatmul.mubr.msk.f32.vlgmr.msra.gmra.mrb[80].mxu1 %vm689_vm1, %v9468_v11  ;;  %9821 = vmatprep.subr.msk.bf16.mxu1 %vm10351_vm2, %v9819_v37 }
 0xb0d   : > { %9824 = vmatpush3.bf16.xpose.msk.msra.mxu1 %vm10351_vm2, %v9819_v37  ;;  %9540 = vmatprep.mubr.msk.f32.mxu1 %vm689_vm1, %v6414_v18  ;;  %v1130_v37 = vunpack.c.0.s8 %v1129_v26 }
 0xb0e   : > { %9830 = vmatprep.subr.bf16.mxu1 %v9829_v13 }
 0xb10   : > { %9534 = vmatmul.mubr.msk.f32.vlgmr.msra.gmra.mrb[74].mxu0 %vm689_vm1, %v9471_v51 }
 0xb11   : > { %9828 = vmatpush3.bf16.msra.mxu0 %v9825_v47 }
 0xb12   : > { %9834 = vmatprep.subr.bf16.mxu0 %v11022_v43 }
 0xb14   : > { %9541 = vmatmul.mubr.msk.f32.vlgmr.msra.gmra.mrb[82].mxu1 %vm689_vm1, %v9474_v30  ;;  %v8708_v30 = vld [vmem:[%s12840_s6 + $0xb8] sm:$0xff] }
 0xb15   : > { %9832 = vmatpush3.bf16.msra.mxu1 %v9829_v13 }
 0xb16   : > { %9838 = vmatprep.subr.bf16.mxu1 %v11025_v49 }
 0xbdb   : > { %v9521_v56 = vpop.f32.mrb[72].mxu0 }
 0xbdc   : > { %v11034_v61 = vadd.f32 %v9521_v56, %v8704_v36  ;;  %v6730_v0 = vpop.f32.mrb[73].mxu0  ;;  %v1145_v56 = vunpack.c.0.s8 %v1144_v46 }
 0xbdd   : > { %v11036_v7 = vadd.f32 %v8703_v54, %v6730_v0  ;;  %v11088_v54 = vsub.s32 %v1130_v37, %v11083_v41 }
 0xbde   : > { %v7003_v38 = vsel %vm1038_vm3, %v11034_v61, -inf  ;;  %v11091_v0 = vsub.s32 %v1145_v56, %v11083_v41 }
 0xbdf   : > { %v9528_v9 = vpop.f32.mrb[80].mxu1  ;;  %7004 = vmax.xlane.f32.xlu1 %v7003_v38  ;;  %v7000_v11 = vsel %vm1038_vm3, %v11036_v7, -inf }
 0xbe0   : > { %v11048_v42 = vadd.f32 %v9528_v9, %v8706_v60  ;;  %v6817_v51 = vpop.f32.mrb[81].mxu1  ;;  %7001 = vmax.xlane.f32.xlu0 %v7000_v11  ;;  %v1232_v60 = vrot.slane %v10423_v28, %v11088_v54  ;;  %v1134_v9 = vrot.slane %v10450_v45, %v11088_v54  ;;  %v10123_v11 = vmov 0.0  }
 0xbe1   : > { %v11050_v8 = vadd.f32 %v8705_v33, %v6817_v51  ;;  %v1330_v33 = vrot.slane %v10466_v52, %v11088_v54 }
 0xbe2   : > { %v7009_v18 = vsel %vm1038_vm3, %v11048_v42, -inf  ;;  %v11096_v38 = vrot.slane %v1232_v60, %v11091_v0 }
 0xbe3   : > { %7010 = vmax.xlane.f32.xlu1 %v7009_v18  ;;  %v9535_v31 = vpop.f32.mrb[74].mxu0  ;;  %v7006_v47 = vsel %vm1038_vm3, %v11050_v8, -inf  ;;  %v1428_v18 = vrot.slane %v10438_v39, %v11088_v54  ;;  %v1338_v26 = vcombine.high %v1330_v33, %v10123_v11 }
 0xbe4   : > { %v11062_v1 = vadd.f32 %v9535_v31, %v8708_v30  ;;  %v6904_v32 = vpop.f32.mrb[75].mxu0  ;;  %7007 = vmax.xlane.f32.xlu0 %v7006_v47  ;;  %v1270_v51 = vcombine.high %v11096_v38, %v10123_v11  ;;  %v11105_v30 = vrot.slane %v1330_v33, %v11091_v0 }
 0xbe5   : > { %v11064_v13 = vadd.f32 %v8707_v59, %v6904_v32  ;;  %v11111_v59 = vrot.slane %v1134_v9, %v11091_v0  ;;  %v11116_v47 = vrot.slane %v1428_v18, %v11091_v0 }
 0xbe6   : > { %v7015_v22 = vsel %vm1038_vm3, %v11062_v1, -inf  ;;  %v1368_v31 = vcombine.high %v11105_v30, %v10123_v11 }
 0xbe7   : > { %v9542_v29 = vpop.f32.mrb[82].mxu1  ;;  %7016 = vmax.xlane.f32.xlu1 %v7015_v22  ;;  %v7012_v23 = vsel %vm1038_vm3, %v11064_v13, -inf  ;;  %v1172_v32 = vcombine.high %v11111_v59, %v10123_v11  ;;  %v1466_v22 = vcombine.high %v11116_v47, %v10123_v11 }
 0xbe8   : > { %v11076_v20 = vadd.f32 %v9542_v29, %v8710_v4  ;;  %v6991_v24 = vpop.f32.mrb[83].mxu1  ;;  %7013 = vmax.xlane.f32.xlu0 %v7012_v23  ;;  %v1142_v4 = vcombine.high %v1134_v9, %v10123_v11 }
 0xbe9   : > { %v11078_v25 = vadd.f32 %v8709_v16, %v6991_v24  ;;  %v1240_v16 = vcombine.high %v1232_v60, %v10123_v11  ;;  %v1352_v24 = vrot.slane %v1338_v26, %v11091_v0 }
 0xbea   : > { %v7021_v35 = vsel %vm1038_vm3, %v11076_v20, -inf  ;;  %v1156_v17 = vrot.slane %v1142_v4, %v11091_v0 }
 0xbeb   : > { %7022 = vmax.xlane.f32.xlu1 %v7021_v35  ;;  %v7018_v36 = vsel %vm1038_vm3, %v11078_v25, -inf  ;;  %v1254_v29 = vrot.slane %v1240_v16, %v11091_v0  ;;  %v1436_v35 = vcombine.high %v1428_v18, %v10123_v11  ;;  %v1369_v37 = vcombine.high %v1352_v24, %v10123_v11 }
 0xbec   : > { %7019 = vmax.xlane.f32.xlu0 %v7018_v36  ;;  %v1173_v23 = vcombine.high %v1156_v17, %v10123_v11 }
 0xbed   : > { %v1450_v58 = vrot.slane %v1436_v35, %v11091_v0  ;;  %v1271_v46 = vcombine.high %v1254_v29, %v10123_v11 }
 0xbef   : > { %v1467_v36 = vcombine.high %v1450_v58, %v10123_v11 }
 0xbfc   : > { %1525 = vrot.lane.b32.xlu1 %v1270_v51, %s10124_s17 }
 0xc00   : > { %1527 = vrot.lane.b32.xlu1 %v1368_v31, %s10124_s17 }
 0xc02   : > { %1523 = vrot.lane.b32.xlu0 %v1172_v32, %s10124_s17 }
 0xc04   : > { %1529 = vrot.lane.b32.xlu1 %v1466_v22, %s10124_s17 }
 0xc06   : > { %1539 = vrot.lane.b32.xlu0 %v1156_v17, %s10125_s18 }
 0xc08   : > { %1541 = vrot.lane.b32.xlu1 %v1254_v29, %s10125_s18 }
 0xc0a   : > { %1555 = vrot.lane.b32.xlu0 %v1173_v23, %s10126_s19 }
 0xc0c   : > { %1543 = vrot.lane.b32.xlu1 %v1352_v24, %s10125_s18 }
 0xc0e   : > { %1559 = vrot.lane.b32.xlu0 %v1369_v37, %s10126_s19 }
 0xc10   : > { %1545 = vrot.lane.b32.xlu1 %v1450_v58, %s10125_s18 }
 0xc14   : > { %1557 = vrot.lane.b32.xlu1 %v1271_v46, %s10126_s19 }
 0xc18   : > { %1561 = vrot.lane.b32.xlu1 %v1467_v36, %s10126_s19 }
 0xc6c   : > { %v7005_v56 = vpop.xlane.xlu1 %7004 }
 0xc6d   : > { %v7025_v60 = vsub.f32 %v11034_v61, %v7005_v56  ;;  %v7002_v33 = vpop.xlane.xlu0 %7001 }
 0xc6e   : > { %v7024_v9 = vsub.f32 %v11036_v7, %v7002_v33 }
 0xc6f   : > { %v7034_v51 = vmul.f32 1.442695, %v7025_v60 }
 0xc70   : > { %v7032_v18 = vmul.f32 1.442695, %v7024_v9  ;;  %v7011_v31 = vpop.xlane.xlu1 %7010 }
 0xc71   : > { %10017 = vpow2.f32 %v7034_v51  ;;  %v7027_v32 = vsub.f32 %v11048_v42, %v7011_v31  ;;  %v7008_v4 = vpop.xlane.xlu0 %7007 }
 0xc72   : > { %10019 = vpow2.f32 %v7032_v18  ;;  %v7026_v22 = vsub.f32 %v11050_v8, %v7008_v4 }
 0xc73   : > { %v7038_v16 = vmul.f32 1.442695, %v7027_v32  ;;  %v1225_v32 = vcombine.high %v10423_v28, %v10123_v11 }
 0xc74   : > { %v7036_v17 = vmul.f32 1.442695, %v7026_v22  ;;  %v7017_v26 = vpop.xlane.xlu1 %7016 }
 0xc75   : > { %10021 = vpow2.f32 %v7038_v16  ;;  %v7029_v29 = vsub.f32 %v11062_v1, %v7017_v26  ;;  %v7014_v61 = vpop.xlane.xlu0 %7013  ;;  %v1239_v4 = vrot.slane %v1225_v32, %v11088_v54  ;;  %v1127_v16 = vcombine.high %v10450_v45, %v10123_v11 }
 0xc76   : > { %v7028_v23 = vsub.f32 %v11064_v13, %v7014_v61  ;;  %10023 = vpow2.f32 %v7036_v17  ;;  %v1323_v26 = vcombine.high %v10466_v52, %v10123_v11 }
 0xc77   : > { %v7042_v7 = vmul.f32 1.442695, %v7029_v29  ;;  %v1262_v22 = vrot.slane %v1239_v4, %v11091_v0  ;;  %v1141_v17 = vrot.slane %v1127_v16, %v11088_v54 }
 0xc78   : > { %v7040_v24 = vmul.f32 1.442695, %v7028_v23  ;;  %v7023_v35 = vpop.xlane.xlu1 %7022  ;;  %v1337_v61 = vrot.slane %v1323_v26, %v11088_v54 }
 0xc79   : > { %v7031_v37 = vsub.f32 %v11076_v20, %v7023_v35  ;;  %v1164_v29 = vrot.slane %v1141_v17, %v11091_v0  ;;  %v7020_v28 = vpop.xlane.xlu0 %7019  ;;  %v1157_v35 = vcombine.high %v1141_v17, %v10123_v11  ;;  %v1421_v17 = vcombine.high %v10438_v39, %v10123_v11 }
 0xc7a   : > { %10025 = vpow2.f32 %v7040_v24  ;;  %v7030_v23 = vsub.f32 %v11078_v25, %v7020_v28  ;;  %v1353_v25 = vcombine.high %v1337_v61, %v10123_v11 }
 0xc7b   : > { %v11152_v42 = vpop.eup %10017  ;;  %10027 = vpow2.f32 %v7042_v7  ;;  %v7046_v8 = vmul.f32 1.442695, %v7031_v37  ;;  %v1360_v7 = vrot.slane %v1337_v61, %v11091_v0  ;;  %v1174_v45 = vcombine.high %v1164_v29, %v10123_v11 }
 0xc7c   : > { %v11154_v58 = vpop.eup %10019  ;;  %v7051_v46 = vsel %vm1038_vm3, %v11152_v42, 0.0  ;;  %v7044_v24 = vmul.f32 1.442695, %v7030_v23  ;;  %v1171_v37 = vrot.slane %v1157_v35, %v11091_v0  ;;  %v1435_v61 = vrot.slane %v1421_v17, %v11088_v54 }
 0xc7d   : > { %7052 = vadd.xlane.f32.xlu0 %v7051_v46  ;;  %v7048_v1 = vsel %vm1038_vm3, %v11154_v58, 0.0  ;;  %10029 = vpow2.f32 %v7046_v8  ;;  %v1370_v52 = vcombine.high %v1360_v7, %v10123_v11  ;;  %v1367_v8 = vrot.slane %v1353_v25, %v11091_v0 }
 0xc7e   : > { %7049 = vadd.xlane.f32.xlu1 %v7048_v1  ;;  %10031 = vpow2.f32 %v7044_v24  ;;  %v1175_v1 = vcombine.high %v1171_v37, %v10123_v11  ;;  %v1272_v24 = vcombine.high %v1262_v22, %v10123_v11 }
 0xc7f   : > { %v11160_v13 = vpop.eup %10021 }
 0xc80   : > { %v7057_v20 = vsel %vm1038_vm3, %v11160_v13, 0.0  ;;  %v11164_v36 = vpop.eup %10023 }
 0xc81   : > { %7058 = vadd.xlane.f32.xlu0 %v7057_v20  ;;  %v7054_v60 = vsel %vm1038_vm3, %v11164_v36, 0.0  ;;  %v1183_v20 = vrot.slane %v10462_v50, %v11088_v54 }
 0xc84   : > { %v11166_v56 = vpop.eup %10025 }
 0xc85   : > { %v11170_v33 = vpop.eup %10027  ;;  %7055 = vadd.xlane.f32.xlu0 %v7054_v60  ;;  %v7060_v9 = vsel %vm1038_vm3, %v11166_v56, 0.0 }
 0xc86   : > { %7061 = vadd.xlane.f32.xlu1 %v7060_v9  ;;  %v7063_v51 = vsel %vm1038_vm3, %v11170_v33, 0.0  ;;  %v1371_v9 = vcombine.high %v1367_v8, %v10123_v11 }
 0xc87   : > { %v11176_v18 = vpop.eup %10029 }
 0xc88   : > { %v7069_v31 = vsel %vm1038_vm3, %v11176_v18, 0.0  ;;  %v11205_v46 = vpop.eup %10031 }
 0xc89   : > { %7064 = vadd.xlane.f32.xlu0 %v7063_v51  ;;  %v7066_v60 = vsel %vm1038_vm3, %v11205_v46, 0.0  ;;  %v11216_v51 = vrot.slane %v1183_v20, %v11091_v0 }
 0xc8b   : > { %v1221_v32 = vcombine.high %v11216_v51, %v10123_v11 }
 0xc8d   : > { %7070 = vadd.xlane.f32.xlu0 %v7069_v31  ;;  %v1379_v31 = vrot.slane %v10479_v57, %v11088_v54 }
 0xc8f   : > { %v11224_v16 = vrot.slane %v1379_v31, %v11091_v0  ;;  %v1387_v23 = vcombine.high %v1379_v31, %v10123_v11 }
 0xc91   : > { %v1417_v26 = vcombine.high %v11224_v16, %v10123_v11  ;;  %v1401_v39 = vrot.slane %v1387_v23, %v11091_v0 }
 0xc93   : > { %v1418_v25 = vcombine.high %v1401_v39, %v10123_v11 }
 0xc97   : > { %1573 = vrot.lane.b32.xlu1 %v1262_v22, %s10127_s20 }
 0xca3   : > { %1571 = vrot.lane.b32.xlu0 %v1164_v29, %s10127_s20  ;;  %v1191_v29 = vcombine.high %v1183_v20, %v10123_v11  ;;  %v1451_v20 = vcombine.high %v1435_v61, %v10123_v11 }
 0xca5   : > { %v1205_v28 = vrot.slane %v1191_v29, %v11091_v0 }
 0xca7   : > { %1575 = vrot.lane.b32.xlu0 %v1360_v7, %s10127_s20  ;;  %v1458_v7 = vrot.slane %v1435_v61, %v11091_v0  ;;  %v1477_v61 = vrot.slane %v10448_v44, %v11088_v54 }
 0xca9   : > { %v1468_v35 = vcombine.high %v1458_v7, %v10123_v11 }
 0xcab   : > { %1587 = vrot.lane.b32.xlu0 %v1174_v45, %s10128_s22  ;;  %v1222_v45 = vcombine.high %v1205_v28, %v10123_v11 }
 0xcaf   : > { %1591 = vrot.lane.b32.xlu0 %v1370_v52, %s10128_s22  ;;  %v1176_v52 = vcombine.high %v10462_v50, %v10123_v11 }
 0xcb1   : > { %v1190_v22 = vrot.slane %v1176_v52, %v11088_v54 }
 0xcb3   : > { %1603 = vrot.lane.b32.xlu0 %v1171_v37, %s10129_s24  ;;  %v1255_v37 = vcombine.high %v1239_v4, %v10123_v11  ;;  %v1213_v50 = vrot.slane %v1190_v22, %v11091_v0 }
 0xcb5   : > { %v1223_v17 = vcombine.high %v1213_v50, %v10123_v11 }
 0xcb7   : > { %1607 = vrot.lane.b32.xlu0 %v1367_v8, %s10129_s24  ;;  %v1372_v8 = vcombine.high %v10479_v57, %v10123_v11 }
 0xcb9   : > { %v1386_v4 = vrot.slane %v1372_v8, %v11088_v54 }
 0xcbb   : > { %7067 = vadd.xlane.f32.xlu1 %v7066_v60  ;;  %1619 = vrot.lane.b32.xlu0 %v1175_v1, %s10130_s26  ;;  %v1269_v1 = vrot.slane %v1255_v37, %v11091_v0  ;;  %v1465_v60 = vrot.slane %v1451_v20, %v11091_v0  ;;  %v1409_v57 = vrot.slane %v1386_v4, %v11091_v0 }
 0xcbd   : > { %v1273_v31 = vcombine.high %v1269_v1, %v10123_v11  ;;  %v1419_v23 = vcombine.high %v1409_v57, %v10123_v11 }
 0xcbf   : > { %1623 = vrot.lane.b32.xlu0 %v1371_v9, %s10130_s26  ;;  %v11263_v9 = vpop.permute.xlu1 %1525 }
 0xcc3   : > { %1635 = vrot.lane.b32.xlu0 %v1221_v32, %s10124_s17  ;;  %v1281_v32 = vrot.slane %v10433_v34, %v11088_v54 }
 0xcc5   : > { %v11274_v29 = vrot.slane %v1281_v32, %v11091_v0 }
 0xcc7   : > { %1639 = vrot.lane.b32.xlu0 %v1417_v26, %s10124_s17  ;;  %v1469_v26 = vcombine.high %v1465_v60, %v10123_v11 }
 0xccb   : > { %1651 = vrot.lane.b32.xlu0 %v1205_v28, %s10125_s18  ;;  %v11278_v28 = vpop.permute.xlu1 %1527 }
 0xccc   : > { %1577 = vrot.lane.b32.xlu1 %v1458_v7, %s10127_s20  ;;  %v1206_v7 = vcombine.high %v1190_v22, %v10123_v11 }
 0xcce   : > { %v1220_v52 = vrot.slane %v1206_v7, %v11091_v0 }
 0xccf   : > { %1655 = vrot.lane.b32.xlu0 %v1401_v39, %s10125_s18  ;;  %v1319_v39 = vcombine.high %v11274_v29, %v10123_v11 }
 0xcd0   : > { %1589 = vrot.lane.b32.xlu1 %v1272_v24, %s10128_s22  ;;  %v11287_v24 = vrot.slane %v1477_v61, %v11091_v0 }
 0xcd2   : > { %12887 = vst [vmem:[#allocation8_spill] sm:$0xff] %v11287_v24  ;;  %v1515_v37 = vcombine.high %v11287_v24, %v10123_v11 }
 0xcd3   : > { %1667 = vrot.lane.b32.xlu0 %v1222_v45, %s10126_s19  ;;  %v11291_v45 = vpop.permute.xlu1 %1529 }
 0xcd4   : > { %1593 = vrot.lane.b32.xlu1 %v1468_v35, %s10128_s22  ;;  %v1402_v35 = vcombine.high %v1386_v4, %v10123_v11  ;;  %v2994_v4 = vrot.slane %v10627_v48, %v11088_v54 }
 0xcd6   : > { %v1416_v22 = vrot.slane %v1402_v35, %v11091_v0 }
 0xcd7   : > { %1671 = vrot.lane.b32.xlu0 %v1418_v25, %s10126_s19  ;;  %v1289_v25 = vcombine.high %v1281_v32, %v10123_v11  ;;  %v11303_v20 = vpop.permute.xlu1 %1541 }
 0xcd8   : > { %1605 = vrot.lane.b32.xlu1 %v1269_v1, %s10129_s24  ;;  %v1485_v1 = vcombine.high %v1477_v61, %v10123_v11  ;;  %v1420_v32 = vcombine.high %v1416_v22, %v10123_v11 }
 0xcd9   : > { %v1303_v8 = vrot.slane %v1289_v25, %v11091_v0  ;;  %v1470_v25 = vcombine.high %v10448_v44, %v10123_v11 }
 0xcdb   : > { %1683 = vrot.lane.b32.xlu0 %v1213_v50, %s10127_s20  ;;  %v1224_v50 = vcombine.high %v1220_v52, %v10123_v11  ;;  %v1320_v61 = vcombine.high %v1303_v8, %v10123_v11 }
 0xcdc   : > { %1609 = vrot.lane.b32.xlu1 %v1465_v60, %s10129_s24  ;;  %v1499_v60 = vrot.slane %v1485_v1, %v11091_v0 }
 0xcde   : > { %v1516_v35 = vcombine.high %v1499_v60, %v10123_v11 }
 0xcdf   : > { %1687 = vrot.lane.b32.xlu0 %v1409_v57, %s10127_s20  ;;  %v11312_v57 = vpop.permute.xlu0 %1523 }
 0xce0   : > { %1621 = vrot.lane.b32.xlu1 %v1273_v31, %s10130_s26  ;;  %v11315_v31 = vpop.permute.xlu1 %1543 }
 0xce3   : > { %1699 = vrot.lane.b32.xlu0 %v1223_v17, %s10128_s22  ;;  %v11319_v17 = vrot.slane %v2994_v4, %v11091_v0 }
 0xce4   : > { %1625 = vrot.lane.b32.xlu1 %v1469_v26, %s10130_s26  ;;  %v3190_v26 = vrot.slane %v10673_v21, %v11088_v54 }
 0xce5   : > { %12888 = vst [vmem:[#allocation9_spill] sm:$0xff] %v11319_v17  ;;  %v3032_v7 = vcombine.high %v11319_v17, %v10123_v11 }
 0xce7   : > { %1703 = vrot.lane.b32.xlu0 %v1419_v23, %s10128_s22  ;;  %v1274_v23 = vcombine.high %v10433_v34, %v10123_v11  ;;  %v11339_v34 = vpop.permute.xlu1 %1545 }
 0xce8   : > { %1637 = vrot.lane.b32.xlu1 %v1319_v39, %s10124_s17  ;;  %v11331_v39 = vrot.slane %v3190_v26, %v11091_v0  ;;  %12890 = vst [vmem:[#allocation11_spill] sm:$0xff] %v11339_v34 }
 0xcea   : > { %12889 = vst [vmem:[#allocation10_spill] sm:$0xff] %v11331_v39 }
 0xceb   : > { %1715 = vrot.lane.b32.xlu0 %v1220_v52, %s10129_s24  ;;  %v11333_v52 = vpop.permute.xlu0 %1539  ;;  %v11352_v44 = vpop.permute.xlu1 %1557 }
 0xcec   : > { %1641 = vrot.lane.b32.xlu1 %v1515_v37, %s10124_s17  ;;  %v1288_v37 = vrot.slane %v1274_v23, %v11088_v54 }
 0xcee   : > { %v1311_v1 = vrot.slane %v1288_v37, %v11091_v0 }
 0xcef   : > { %1719 = vrot.lane.b32.xlu0 %v1416_v22, %s10129_s24  ;;  %v3228_v22 = vcombine.high %v11331_v39, %v10123_v11 }
 0xcf0   : > { %1653 = vrot.lane.b32.xlu1 %v1303_v8, %s10125_s18  ;;  %v3002_v8 = vcombine.high %v2994_v4, %v10123_v11 }
 0xcf3   : > { %1731 = vrot.lane.b32.xlu0 %v1224_v50, %s10130_s26  ;;  %v1484_v50 = vrot.slane %v1470_v25, %v11088_v54  ;;  %v11363_v25 = vpop.permute.xlu1 %1561 }
 0xcf4   : > { %1657 = vrot.lane.b32.xlu1 %v1499_v60, %s10125_s18  ;;  %v11349_v60 = vpop.permute.xlu0 %1555  ;;  %12891 = vst [vmem:[#allocation12_spill] sm:$0xff] %v11363_v25 }
 0xcf5   : > { %v1507_v23 = vrot.slane %v1484_v50, %v11091_v0 }
 0xcf7   : > { %1735 = vrot.lane.b32.xlu0 %v1420_v32, %s10130_s26  ;;  %v3016_v32 = vrot.slane %v3002_v8, %v11091_v0  ;;  %v1517_v27 = vcombine.high %v1507_v23, %v10123_v11 }
 0xcf8   : > { %1669 = vrot.lane.b32.xlu1 %v1320_v61, %s10126_s19  ;;  %v3198_v61 = vcombine.high %v3190_v26, %v10123_v11 }
 0xcf9   : > { %v3033_v26 = vcombine.high %v3016_v32, %v10123_v11 }
 0xcfa   : > { %v3212_v4 = vrot.slane %v3198_v61, %v11091_v0  ;;  %v1304_v61 = vcombine.high %v1288_v37, %v10123_v11 }
 0xcfb   : > { %3383 = vrot.lane.b32.xlu0 %v3032_v7, %s10124_s17  ;;  %v11360_v7 = vpop.permute.xlu0 %1559 }
 0xcfc   : > { %1673 = vrot.lane.b32.xlu1 %v1516_v35, %s10126_s19  ;;  %v1321_v35 = vcombine.high %v1311_v1, %v10123_v11  ;;  %v1318_v17 = vrot.slane %v1304_v61, %v11091_v0 }
 0xcfe   : > { %v1322_v61 = vcombine.high %v1318_v17, %v10123_v11 }
 0xcff   : > { %3387 = vrot.lane.b32.xlu0 %v3228_v22, %s10124_s17  ;;  %v2987_v22 = vcombine.high %v10627_v48, %v10123_v11 }
 0xd00   : > { %1685 = vrot.lane.b32.xlu1 %v1311_v1, %s10127_s20  ;;  %v3229_v1 = vcombine.high %v3212_v4, %v10123_v11 }
 0xd03   : > { %3399 = vrot.lane.b32.xlu0 %v3016_v32, %s10125_s18  ;;  %v3183_v32 = vcombine.high %v10673_v21, %v10123_v11 }
 0xd04   : > { %1689 = vrot.lane.b32.xlu1 %v1507_v23, %s10127_s20  ;;  %v1500_v23 = vcombine.high %v1484_v50, %v10123_v11 }
 0xd07   : > { %3403 = vrot.lane.b32.xlu0 %v3212_v4, %s10125_s18  ;;  %v1514_v4 = vrot.slane %v1500_v23, %v11091_v0 }
 0xd08   : > { %1701 = vrot.lane.b32.xlu1 %v1321_v35, %s10128_s22  ;;  %v3001_v35 = vrot.slane %v2987_v22, %v11088_v54 }
 0xd0a   : > { %v7053_v8 = vpop.xlane.xlu0 %7052 }
 0xd0b   : > { %10033 = vrcp.f32 %v7053_v8  ;;  %v7050_v39 = vpop.xlane.xlu1 %7049  ;;  %3415 = vrot.lane.b32.xlu0 %v3033_v26, %s10126_s19 }
 0xd0c   : > { %10035 = vrcp.f32 %v7050_v39  ;;  %1705 = vrot.lane.b32.xlu1 %v1517_v27, %s10128_s22  ;;  %v3024_v39 = vrot.slane %v3001_v35, %v11091_v0  ;;  %v3197_v27 = vrot.slane %v3183_v32, %v11088_v54 }
 0xd0e   : > { %v7059_v48 = vpop.xlane.xlu0 %7058  ;;  %v3220_v50 = vrot.slane %v3197_v27, %v11091_v0  ;;  %v3034_v23 = vcombine.high %v3024_v39, %v10123_v11 }
 0xd0f   : > { %3419 = vrot.lane.b32.xlu0 %v3229_v1, %s10126_s19  ;;  %10037 = vrcp.f32 %v7059_v48  ;;  %v3092_v1 = vrot.slane %v10636_v62, %v11088_v54 }
 0xd10   : > { %1717 = vrot.lane.b32.xlu1 %v1318_v17, %s10129_s24 }
 0xd12   : > { %v7056_v37 = vpop.xlane.xlu0 %7055 }
 0xd13   : > { %10039 = vrcp.f32 %v7056_v37  ;;  %v7062_v26 = vpop.xlane.xlu1 %7061  ;;  %3431 = vrot.lane.b32.xlu0 %v3024_v39, %s10127_s20  ;;  %v1518_v37 = vcombine.high %v1514_v4, %v10123_v11 }
 0xd14   : > { %10041 = vrcp.f32 %v7062_v26  ;;  %1721 = vrot.lane.b32.xlu1 %v1514_v4, %s10129_s24  ;;  %v3288_v26 = vrot.slane %v10659_v12, %v11088_v54 }
 0xd15   : > { %v10034_v21 = vpop.eup %10033 }
 0xd16   : > { %v10036_v22 = vpop.eup %10035  ;;  %v7065_v8 = vpop.xlane.xlu0 %7064  ;;  %v11397_v48 = vmul.f32 %v10034_v21, %v11152_v42  ;;  %v3230_v21 = vcombine.high %v3220_v50, %v10123_v11 }
 0xd17   : > { %10043 = vrcp.f32 %v7065_v8  ;;  %3435 = vrot.lane.b32.xlu0 %v3220_v50, %s10127_s20  ;;  %v11393_v32 = vmul.f32 %v10036_v22, %v11154_v58  ;;  %v11408_v58 = vrot.slane %v3092_v1, %v11091_v0  ;;  %v3017_v22 = vcombine.high %v3001_v35, %v10123_v11 }
 0xd18   : > { %1733 = vrot.lane.b32.xlu1 %v1322_v61, %s10130_s26  ;;  %12893 = vst [vmem:[#allocation14_spill] sm:$0xff] %v11397_v48 }
 0xd19   : > { %12892 = vst [vmem:[#allocation13_spill] sm:$0xff] %v11393_v32  ;;  %9547 = vmatprep.mubr.msk.f32.mxu0 %vm1038_vm3, %v11393_v32  ;;  %12894 = vst [vmem:[#allocation15_spill] sm:$0xff] %v11408_v58  ;;  %v10038_v42 = vpop.eup %10037  ;;  %v3130_v61 = vcombine.high %v11408_v58, %v10123_v11 }
 0xd1a   : > { %9548 = vmatmul.mubr.msk.f32.vlgmr.msra.gmra.mrb[76].mxu0 %vm1038_vm3, %v11397_v48  ;;  %v11404_v17 = vpop.xlane.xlu0 %7070 }
 0xd1b   : > { %9836 = vmatpush3.bf16.msra.mxu0 %v11022_v43  ;;  %3447 = vrot.lane.b32.xlu0 %v3034_v23, %s10128_s22  ;;  %v11425_v43 = vrot.slane %v3288_v26, %v11091_v0  ;;  %v11429_v23 = vmul.f32 %v10038_v42, %v11160_v13  ;;  %v3213_v13 = vcombine.high %v3197_v27, %v10123_v11  ;;  %10045 = vrcp.f32 %v11404_v17 }
 0xd1c   : > { %1737 = vrot.lane.b32.xlu1 %v1518_v37, %s10130_s26 }
 0xd1d   : > { %v10040_v39 = vpop.eup %10039  ;;  %12896 = vst [vmem:[#allocation17_spill] sm:$0xff] %v11425_v43  ;;  %12897 = vst [vmem:[#allocation18_spill] sm:$0xff] %v11429_v23  ;;  %v3326_v37 = vcombine.high %v11425_v43, %v10123_v11  ;;  %v3227_v27 = vrot.slane %v3213_v13, %v11091_v0  ;;  %v3239_v13 = vrot.slane %v10671_v19, %v11088_v54 }
 0xd1e   : > { %v10042_v8 = vpop.eup %10041  ;;  %v11417_v4 = vpop.permute.xlu0 %1571  ;;  %v11422_v32 = vmul.f32 %v10040_v39, %v11164_v36  ;;  %v3031_v36 = vrot.slane %v3017_v22, %v11091_v0  ;;  %v3100_v39 = vcombine.high %v3092_v1, %v10123_v11  ;;  %v3296_v22 = vcombine.high %v3288_v26, %v10123_v11 }
 0xd1f   : > { %3451 = vrot.lane.b32.xlu0 %v3230_v21, %s10128_s22  ;;  %v11432_v50 = vmul.f32 %v10042_v8, %v11166_v56  ;;  %v3043_v1 = vrot.slane %v10629_v53, %v11088_v54 }
 0xd20   : > { %12895 = vst [vmem:[#allocation16_spill] sm:$0xff] %v11422_v32  ;;  %3385 = vrot.lane.b32.xlu1 %v3130_v61, %s10124_s17  ;;  %9554 = vmatprep.mubr.msk.f32.mxu1 %vm1038_vm3, %v11422_v32  ;;  %v3114_v21 = vrot.slane %v3100_v39, %v11091_v0  ;;  %v3310_v61 = vrot.slane %v3296_v22, %v11091_v0 }
 0xd21   : > { %12898 = vst [vmem:[#allocation19_spill] sm:$0xff] %v11432_v50  ;;  %v10044_v35 = vpop.eup %10043  ;;  %9555 = vmatmul.mubr.msk.f32.vlgmr.msra.gmra.mrb[84].mxu1 %vm1038_vm3, %v11429_v23  ;;  %9561 = vmatprep.mubr.msk.f32.mxu0 %vm1038_vm3, %v11432_v50  ;;  %v11473_v26 = vrot.slane %v3043_v1, %v11091_v0  ;;  %v3085_v39 = vcombine.high %v10636_v62, %v10123_v11 }
 0xd22   : > { %9840 = vmatpush3.bf16.msra.mxu1 %v11025_v49  ;;  %v11444_v56 = vpop.permute.xlu0 %1575  ;;  %v11449_v42 = vmul.f32 %v10044_v35, %v11170_v33  ;;  %v3035_v33 = vcombine.high %v3031_v36, %v10123_v11  ;;  %v3231_v35 = vcombine.high %v3227_v27, %v10123_v11  ;;  %v11487_v22 = vrot.slane %v3239_v13, %v11091_v0 }
 0xd23   : > { %3463 = vrot.lane.b32.xlu0 %v3031_v36, %s10129_s24  ;;  %12900 = vst [vmem:[#allocation21_spill] sm:$0xff] %v11473_v26  ;;  %v3327_v50 = vcombine.high %v3310_v61, %v10123_v11 }
 0xd24   : > { %12899 = vst [vmem:[#allocation20_spill] sm:$0xff] %v11449_v42  ;;  %3389 = vrot.lane.b32.xlu1 %v3326_v37, %s10124_s17  ;;  %9562 = vmatmul.mubr.msk.f32.vlgmr.msra.gmra.mrb[78].mxu0 %vm1038_vm3, %v11449_v42  ;;  %v3131_v37 = vcombine.high %v3114_v21, %v10123_v11  ;;  %12901 = vst [vmem:[#allocation22_spill] sm:$0xff] %v11487_v22  ;;  %v3099_v42 = vrot.slane %v3085_v39, %v11088_v54 }
 0xd25   : > { %v3277_v62 = vcombine.high %v11487_v22, %v10123_v11  ;;  %v3247_v39 = vcombine.high %v3239_v13, %v10123_v11 }
 0xd26   : > { %v11457_v49 = vpop.permute.xlu0 %1587  ;;  %v3122_v43 = vrot.slane %v3099_v42, %v11091_v0  ;;  %v3115_v23 = vcombine.high %v3099_v42, %v10123_v11 }
 0xd27   : > { %3467 = vrot.lane.b32.xlu0 %v3227_v27, %s10129_s24  ;;  %v3081_v27 = vcombine.high %v11473_v26, %v10123_v11 }
 0xd28   : > { %3401 = vrot.lane.b32.xlu1 %v3114_v21, %s10125_s18  ;;  %v3281_v21 = vcombine.high %v10659_v12, %v10123_v11  ;;  %v3129_v22 = vrot.slane %v3115_v23, %v11091_v0 }
 0xd2a   : > { %v11466_v8 = vpop.permute.xlu0 %1591 }
 0xd2b   : > { %3479 = vrot.lane.b32.xlu0 %v3035_v33, %s10130_s26 }
 0xd2c   : > { %3405 = vrot.lane.b32.xlu1 %v3310_v61, %s10125_s18  ;;  %v3295_v61 = vrot.slane %v3281_v21, %v11088_v54  ;;  %v3132_v21 = vcombine.high %v3122_v43, %v10123_v11 }
 0xd2e   : > { %v11477_v36 = vpop.permute.xlu0 %1603 }
 0xd2f   : > { %3483 = vrot.lane.b32.xlu0 %v3231_v35, %s10130_s26  ;;  %v3051_v35 = vcombine.high %v3043_v1, %v10123_v11  ;;  %v3261_v1 = vrot.slane %v3247_v39, %v11091_v0  ;;  %v11527_v39 = vpop.permute.xlu1 %1573 }
 0xd30   : > { %3417 = vrot.lane.b32.xlu1 %v3131_v37, %s10126_s19 }
 0xd31   : > { %v3065_v12 = vrot.slane %v3051_v35, %v11091_v0 }
 0xd32   : > { %v11489_v33 = vpop.permute.xlu0 %1607 }
 0xd33   : > { %3495 = vrot.lane.b32.xlu0 %v3081_v27, %s10124_s17  ;;  %v3318_v27 = vrot.slane %v3295_v61, %v11091_v0  ;;  %v3082_v13 = vcombine.high %v3065_v12, %v10123_v11 }
 0xd34   : > { %3421 = vrot.lane.b32.xlu1 %v3327_v50, %s10126_s19 }
 0xd35   : > { %v3328_v32 = vcombine.high %v3318_v27, %v10123_v11 }
 0xd36   : > { %v11500_v37 = vpop.permute.xlu0 %1619 }
 0xd37   : > { %3499 = vrot.lane.b32.xlu0 %v3277_v62, %s10124_s17  ;;  %v3036_v62 = vcombine.high %v10629_v53, %v10123_v11 }
 0xd38   : > { %3433 = vrot.lane.b32.xlu1 %v3122_v43, %s10127_s20  ;;  %v3278_v43 = vcombine.high %v3261_v1, %v10123_v11 }
 0xd3a   : > { %v11508_v50 = vpop.permute.xlu0 %1623 }
 0xd3b   : > { %3511 = vrot.lane.b32.xlu0 %v3065_v12, %s10125_s18  ;;  %v3232_v12 = vcombine.high %v10671_v19, %v10123_v11 }
 0xd3c   : > { %3437 = vrot.lane.b32.xlu1 %v3318_v27, %s10127_s20  ;;  %v3311_v27 = vcombine.high %v3295_v61, %v10123_v11 }
 0xd3e   : > { %v11514_v58 = vpop.permute.xlu0 %1635  ;;  %v3325_v19 = vrot.slane %v3311_v27, %v11091_v0 }
 0xd3f   : > { %3515 = vrot.lane.b32.xlu0 %v3261_v1, %s10125_s18  ;;  %v3246_v1 = vrot.slane %v3232_v12, %v11088_v54 }
 0xd40   : > { %3449 = vrot.lane.b32.xlu1 %v3132_v21, %s10128_s22  ;;  %v3050_v21 = vrot.slane %v3036_v62, %v11088_v54  ;;  %v3133_v62 = vcombine.high %v3129_v22, %v10123_v11  ;;  %v3329_v48 = vcombine.high %v3325_v19, %v10123_v11 }
 0xd41   : > { %v3269_v17 = vrot.slane %v3246_v1, %v11091_v0 }
 0xd42   : > { %v11522_v35 = vpop.permute.xlu0 %1639  ;;  %v3073_v42 = vrot.slane %v3050_v21, %v11091_v0 }
 0xd43   : > { %3527 = vrot.lane.b32.xlu0 %v3082_v13, %s10126_s19 }
 0xd44   : > { %3453 = vrot.lane.b32.xlu1 %v3328_v32, %s10128_s22  ;;  %v3083_v27 = vcombine.high %v3073_v42, %v10123_v11 }
 0xd46   : > { %v11534_v53 = vpop.permute.xlu0 %1651 }
 0xd47   : > { %3531 = vrot.lane.b32.xlu0 %v3278_v43, %s10126_s19  ;;  %v3141_v43 = vrot.slane %v10646_v6, %v11088_v54 }
 0xd48   : > { %3465 = vrot.lane.b32.xlu1 %v3129_v22, %s10129_s24  ;;  %v7068_v32 = vpop.xlane.xlu1 %7067  ;;  %v3337_v22 = vrot.slane %v10657_v10, %v11088_v54 }
 0xd49   : > { %10047 = vrcp.f32 %v7068_v32  ;;  %v10046_v32 = vpop.eup %10045  ;;  %v11565_v3 = vrot.slane %v3141_v43, %v11091_v0 }
 0xd4a   : > { %v11543_v13 = vpop.permute.xlu0 %1655  ;;  %v11577_v15 = vmul.f32 %v10046_v32, %v11176_v18  ;;  %v3149_v32 = vcombine.high %v3141_v43, %v10123_v11 }
 0xd4b   : > { %3543 = vrot.lane.b32.xlu0 %v3073_v42, %s10127_s20  ;;  %12903 = vst [vmem:[#allocation24_spill] sm:$0xff] %v11565_v3 }
 0xd4c   : > { %3469 = vrot.lane.b32.xlu1 %v3325_v19, %s10129_s24  ;;  %v11548_v23 = vpop.permute.xlu1 %1577  ;;  %12906 = vst [vmem:[#allocation27_spill] sm:$0xff] %v11577_v15  ;;  %v3279_v19 = vcombine.high %v3269_v17, %v10123_v11 }
 0xd4d   : > { %12902 = vst [vmem:[#allocation23_spill] sm:$0xff] %v11548_v23  ;;  %v3066_v23 = vcombine.high %v3050_v21, %v10123_v11 }
 0xd4e   : > { %v11551_v61 = vpop.permute.xlu0 %1667 }
 0xd4f   : > { %3547 = vrot.lane.b32.xlu0 %v3269_v17, %s10127_s20  ;;  %v3080_v18 = vrot.slane %v3066_v23, %v11091_v0  ;;  %v3163_v23 = vrot.slane %v3149_v32, %v11091_v0 }
 0xd50   : > { %3481 = vrot.lane.b32.xlu1 %v3133_v62, %s10130_s26  ;;  %v11558_v12 = vpop.permute.xlu1 %1589 }
 0xd52   : > { %v11561_v26 = vpop.permute.xlu0 %1671 }
 0xd53   : > { %v10048_v5 = vpop.eup %10047  ;;  %3559 = vrot.lane.b32.xlu0 %v3083_v27, %s10128_s22  ;;  %v11588_v27 = vrot.slane %v3337_v22, %v11091_v0 }
 0xd54   : > { %3485 = vrot.lane.b32.xlu1 %v3329_v48, %s10130_s26  ;;  %v11571_v62 = vpop.permute.xlu1 %1593  ;;  %v11574_v42 = vmul.f32 %v10048_v5, %v11205_v46  ;;  %v3179_v48 = vcombine.high %v11565_v3, %v10123_v11  ;;  %v3262_v46 = vcombine.high %v3246_v1, %v10123_v11  ;;  %v3345_v1 = vcombine.high %v3337_v22, %v10123_v11 }
 0xd55   : > { %12904 = vst [vmem:[#allocation25_spill] sm:$0xff] %v11571_v62  ;;  %12907 = vst [vmem:[#allocation28_spill] sm:$0xff] %v11588_v27  ;;  %v3375_v17 = vcombine.high %v11588_v27, %v10123_v11  ;;  %v5105_v27 = vrot.slane %v10868_v63, %v11088_v54  ;;  %v10131_v62 = vmov 1966171168  }
 0xd56   : > { %12905 = vst [vmem:[#allocation26_spill] sm:$0xff] %v11574_v42  ;;  %9568 = vmatprep.mubr.msk.f32.mxu1 %vm1038_vm3, %v11574_v42  ;;  %v11583_v25 = vpop.permute.xlu0 %1683  ;;  %v3359_v32 = vrot.slane %v3345_v1, %v11091_v0 }
 0xd57   : > { %9569 = vmatmul.mubr.msk.f32.vlgmr.msra.gmra.mrb[86].mxu1 %vm1038_vm3, %v11577_v15  ;;  %3563 = vrot.lane.b32.xlu0 %v3279_v19, %s10128_s22  ;;  %v3134_v15 = vcombine.high %v10646_v6, %v10123_v11  ;;  %v3330_v6 = vcombine.high %v10657_v10, %v10123_v11  ;;  %v11637_v1 = vrot.slane %v5105_v27, %v11091_v0 }
 0xd58   : > { %3497 = vrot.lane.b32.xlu1 %v3179_v48, %s10124_s17  ;;  %v11594_v5 = vpop.permute.xlu1 %1605  ;;  %v3276_v48 = vrot.slane %v3262_v46, %v11091_v0  ;;  %v3376_v10 = vcombine.high %v3359_v32, %v10123_v11 }
 0xd59   : > { %12908 = vst [vmem:[#allocation29_spill] sm:$0xff] %v11594_v5  ;;  %v11624_v22 = vrot.slane %v3134_v15, %v11088_v54  ;;  %v3180_v15 = vcombine.high %v3163_v23, %v10123_v11  ;;  %v11647_v5 = vrot.slane %v3330_v6, %v11088_v54 }
 0xd5a   : > { %v11598_v21 = vpop.permute.xlu0 %1687 }
 0xd5b   : > { %3575 = vrot.lane.b32.xlu0 %v3080_v18, %s10129_s24 }
 0xd5c   : > { %3501 = vrot.lane.b32.xlu1 %v3375_v17, %s10124_s17  ;;  %v11605_v19 = vpop.permute.xlu1 %1609  ;;  %v3084_v17 = vcombine.high %v3080_v18, %v10123_v11  ;;  %v11633_v18 = vrot.slane %v10887_v40, %v11088_v54 }
 0xd5d   : > { %12909 = vst [vmem:[#allocation30_spill] sm:$0xff] %v11605_v19  ;;  %v3280_v19 = vcombine.high %v3276_v48, %v10123_v11 }
 0xd5e   : > { %v1700_v42 = vpop.permute.xlu0 %1699 }
 0xd5f   : > { %3579 = vrot.lane.b32.xlu0 %v3276_v48, %s10129_s24  ;;  %v1743_v48 = vsel %vm1038_vm3, %v11111_v59, %v11312_v57  ;;  %v1776_v59 = vsel %vm1038_vm3, %v11216_v51, %v11514_v58  ;;  %v5143_v57 = vcombine.high %v11637_v1, %v10123_v11 }
 0xd60   : > { %3513 = vrot.lane.b32.xlu1 %v3163_v23, %s10125_s18  ;;  %v11614_v43 = vpop.permute.xlu1 %1621  ;;  %v1747_v6 = vsel %vm333_vm0, %v1743_v48, %v11333_v52 }
 0xd61   : > { %12910 = vst [vmem:[#allocation31_spill] sm:$0xff] %v11614_v43  ;;  %v1814_v43 = vunpack.c.l.s4 %v10131_v62  ;;  %v11657_v62 = vrot.slane %v11633_v18, %v11091_v0 }
 0xd62   : > { %v11619_v46 = vpop.permute.xlu0 %1703 }
 0xd63   : > { %3591 = vrot.lane.b32.xlu0 %v3084_v17, %s10130_s26  ;;  %v1815_v24 = vunpack.c.0.s8 %v1814_v43 }
 0xd64   : > { %3517 = vrot.lane.b32.xlu1 %v3359_v32, %s10125_s18  ;;  %v11629_v3 = vpop.permute.xlu1 %1625  ;;  %v1745_v32 = vsel %vm1038_vm3, %v11105_v30, %v11278_v28  ;;  %v1752_v30 = vsel %vm1751_vm4, %v1747_v6, %v11349_v60  ;;  %v5339_v60 = vcombine.high %v11657_v62, %v10123_v11 }
 0xd65   : > { %12911 = vst [vmem:[#allocation32_spill] sm:$0xff] %v11629_v3  ;;  %v11644_v3 = vrot.slane %v11624_v22, %v11091_v0  ;;  %v1757_v28 = vsel %vm1756_vm6, %v1752_v30, %v11417_v4  ;;  %v1778_v4 = vsel %vm1038_vm3, %v11224_v16, %v11522_v35  ;;  %v8739_v16 = vld [vmem:[%s12838_s4 + $0x18] sm:$0xff] }
 0xd66   : > { %v1716_v17 = vpop.permute.xlu0 %1715  ;;  %v1782_v43 = vsel %vm333_vm0, %v1778_v4, %v11543_v13  ;;  %9571 = vmatprep.subr.mxu0 %v8739_v16  ;;  %v3164_v4 = vcombine.high %v11624_v22, %v10123_v11  ;;  %v3360_v22 = vcombine.high %v11647_v5, %v10123_v11 }
 0xd67   : > { %3595 = vrot.lane.b32.xlu0 %v3280_v19, %s10130_s26  ;;  %v5113_v19 = vcombine.high %v5105_v27, %v10123_v11  ;;  %v1780_v27 = vsel %vm333_vm0, %v1776_v59, %v11534_v53  ;;  %v1762_v53 = vsel %vm1761_vm5, %v1757_v28, %v11457_v49  ;;  %9572 = vmatpush3.msra.mxu0 %v8739_v16 }
 0xd68   : > { %3529 = vrot.lane.b32.xlu1 %v3180_v15, %s10126_s19  ;;  %v11653_v23 = vpop.permute.xlu1 %1637  ;;  %v1749_v15 = vsel %vm333_vm0, %v1745_v32, %v11315_v31  ;;  %v1784_v51 = vsel %vm1751_vm4, %v1780_v27, %v11551_v61  ;;  %v1767_v61 = vsel %vm1766_vm7, %v1762_v53, %v11477_v36 }
 0xd69   : > { %v1788_v31 = vsel %vm1756_vm6, %v1784_v51, %v11583_v25  ;;  %v1754_v58 = vsel %vm1751_vm4, %v1749_v15, %v11360_v7  ;;  %v11703_v7 = vsub.s32 %v1815_v24, %v11083_v41  ;;  %v1772_v35 = vsel %vm1771_vm8, %v1767_v61, %v11500_v37 }
 0xd6a   : > { %v1720_v34 = vpop.permute.xlu0 %1719  ;;  %v1792_v25 = vsel %vm1761_vm5, %v1788_v31, %v1700_v42  ;;  %v1786_v42 = vsel %vm1751_vm4, %v1782_v43, %v11561_v26  ;;  %v1759_v41 = vsel %vm1756_vm6, %v1754_v58, %v11444_v56  ;;  %v5127_v56 = vrot.slane %v5113_v19, %v11091_v0 }
 0xd6b   : > { %5494 = vrot.lane.b32.xlu0 %v5143_v57, %s10124_s17  ;;  %v1790_v24 = vsel %vm1756_vm6, %v1786_v42, %v11598_v21  ;;  %v1764_v26 = vsel %vm1761_vm5, %v1759_v41, %v11466_v8  ;;  %v5309_v21 = vcombine.high %v11633_v18, %v10123_v11  ;;  %v3367_v57 = vrot.slane %v11647_v5, %v11091_v0 }
 0xd6c   : > { %3533 = vrot.lane.b32.xlu1 %v3376_v10, %s10126_s19  ;;  %v11684_v52 = vpop.permute.xlu1 %1641  ;;  %v1796_v10 = vsel %vm1766_vm7, %v1792_v25, %v1716_v17  ;;  %v1794_v17 = vsel %vm1761_vm5, %v1790_v24, %v11619_v46  ;;  %v1769_v48 = vsel %vm1766_vm7, %v1764_v26, %v11489_v33  ;;  %v12912_v46 = vlaneseq }
 0xd6d   : > { %v1798_v32 = vsel %vm1766_vm7, %v1794_v17, %v1720_v34  ;;  %v1774_v8 = vsel %vm1771_vm8, %v1769_v48, %v11508_v50  ;;  %v5323_v27 = vrot.slane %v5309_v21, %v11091_v0  ;;  %v3181_v51 = vcombine.high %v11644_v3, %v10123_v11 }
 0xd6e   : > { %v1732_v49 = vpop.permute.xlu0 %1731  ;;  %vm11740_vm9 = vcmp.lt.s32.totalorder %v12912_v46, 256  ;;  %v5098_v58 = vcombine.high %v10868_v63, %v10123_v11  ;;  %v5294_v43 = vcombine.high %v10887_v40, %v10123_v11  ;;  %v3374_v40 = vrot.slane %v3360_v22, %v11091_v0 }
 0xd6f   : > { %v1800_v36 = vsel %vm1771_vm8, %v1796_v10, %v1732_v49  ;;  %5498 = vrot.lane.b32.xlu0 %v5339_v60, %s10124_s17  ;;  %v5144_v60 = vcombine.high %v5127_v56, %v10123_v11  ;;  %v5340_v61 = vcombine.high %v5323_v27, %v10123_v11  ;;  %v3178_v49 = vrot.slane %v3164_v4, %v11091_v0 }
 0xd70   : > { %v1812_v13 = vcombine.low %v1772_v35, %v1800_v36  ;;  %3545 = vrot.lane.b32.xlu1 %v11644_v3, %s10127_s20  ;;  %v11722_v37 = vpop.permute.xlu1 %1653  ;;  %v3377_v3 = vcombine.high %v3367_v57, %v10123_v11  ;;  %v5112_v63 = vrot.slane %v5098_v58, %v11088_v54  ;;  %v5308_v42 = vrot.slane %v5294_v43, %v11088_v54 }
 0xd71   : > { %v5203_v26 = vrot.slane %v10878_v2, %v11088_v54  ;;  %v3378_v48 = vcombine.high %v3374_v40, %v10123_v11  ;;  %v1744_v58 = vsel %vm1038_vm3, %v11096_v38, %v11263_v9  ;;  %v11852_v43 = vrot.slane %v10870_v55, %v11088_v54 }
 0xd72   : > { %v1819_v6 = vrot.slane %v1812_v13, %v11703_v7  ;;  %v1736_v59 = vpop.permute.xlu0 %1735  ;;  %v5135_v35 = vrot.slane %v5112_v63, %v11091_v0  ;;  %v5331_v5 = vrot.slane %v5308_v42, %v11091_v0  ;;  %v3182_v13 = vcombine.high %v3178_v49, %v10123_v11 }
 0xd73   : > { %v1802_v18 = vsel %vm1771_vm8, %v1798_v32, %v1736_v59  ;;  %5510 = vrot.lane.b32.xlu0 %v5127_v56, %s10125_s18  ;;  %v11814_v32 = vrot.slane %v5203_v26, %v11091_v0  ;;  %v1748_v4 = vsel %vm333_vm0, %v1744_v58, %v11303_v20 }
 0xd74   : > { %v1826_v34 = vrot.slane %v1819_v6, %v11703_v7  ;;  %v1842_v33 = vcombine.low %v1774_v8, %v1802_v18  ;;  %3549 = vrot.lane.b32.xlu1 %v3367_v57, %s10127_s20  ;;  %v11748_v15 = vpop.permute.xlu1 %1657  ;;  %v5145_v56 = vcombine.high %v5135_v35, %v10123_v11  ;;  %v5399_v6 = vrot.slane %v10895_v14, %v11088_v54 }
 0xd75   : > { %12915 = vst [vmem:[#allocation33_spill] sm:$0xff] %v11814_v32  ;;  %v5341_v57 = vcombine.high %v5331_v5, %v10123_v11  ;;  %v5128_v8 = vcombine.high %v5112_v63, %v10123_v11  ;;  %v5241_v18 = vcombine.high %v11814_v32, %v10123_v11  ;;  %v1753_v38 = vsel %vm1751_vm4, %v1748_v4, %v11352_v44  ;;  %v12933_v32 = vld [vmem:[#allocation9_spill] sm:$0xff] }
 0xd76   : > { %1880 = vst.msk [vmem:[%s11751_s25] ss:$4 sm:$0x3] %vm11740_vm9, %v1826_v34  ;;  %v1849_v50 = vrot.slane %v1842_v33, %v11703_v7  ;;  %v11757_v30 = vpop.permute.xlu0 %3383  ;;  %v11827_v34 = vrot.slane %v5399_v6, %v11091_v0  ;;  %v1746_v44 = vsel %vm1038_vm3, %v11116_v47, %v11291_v45 }
 0xd77   : > { %5514 = vrot.lane.b32.xlu0 %v5323_v27, %s10125_s18  ;;  %v5142_v27 = vrot.slane %v5128_v8, %v11091_v0  ;;  %v12921_v8 = vld [vmem:[#allocation23_spill] sm:$0xff] }
 0xd78   : > { %v1856_v28 = vrot.slane %v1849_v50, %v11703_v7  ;;  %3561 = vrot.lane.b32.xlu1 %v3181_v51, %s10128_s22  ;;  %v11764_v31 = vpop.permute.xlu1 %1669  ;;  %v5324_v50 = vcombine.high %v5308_v42, %v10123_v11  ;;  %v12916_v42 = vld [vmem:[#allocation8_spill] sm:$0xff] }
 0xd79   : > { %v5146_v20 = vcombine.high %v5142_v27, %v10123_v11 }
 0xd7a   : > { %8487 = vst.msk [vmem:[%s11751_s25 + $0x10] ss:$4 sm:$0x3] %vm11740_vm9, %v1856_v28  ;;  %v11772_v53 = vpop.permute.xlu0 %3387  ;;  %v5437_v28 = vcombine.high %v11827_v34, %v10123_v11 }
 0xd7b   : > { %5526 = vrot.lane.b32.xlu0 %v5144_v60, %s10126_s19  ;;  %v5211_v60 = vcombine.high %v5203_v26, %v10123_v11 }
 0xd7c   : > { %3565 = vrot.lane.b32.xlu1 %v3377_v3, %s10128_s22  ;;  %v11779_v25 = vpop.permute.xlu1 %1673  ;;  %v1777_v3 = vsel %vm1038_vm3, %v11274_v29, %v11653_v23  ;;  %v5338_v29 = vrot.slane %v5324_v50, %v11091_v0  ;;  %v1758_v23 = vsel %vm1756_vm6, %v1753_v38, %v11527_v39  ;;  %v11910_v38 = vrot.slane %v11852_v43, %v11091_v0 }
 0xd7d   : > { %v5225_v22 = vrot.slane %v5211_v60, %v11091_v0 }
 0xd7e   : > { %v11785_v10 = vpop.permute.xlu0 %3399  ;;  %12924 = vst [vmem:[#allocation8_spill] sm:$0xff] %v11910_v38 }
 0xd7f   : > { %5530 = vrot.lane.b32.xlu0 %v5340_v61, %s10126_s19  ;;  %v1781_v61 = vsel %vm333_vm0, %v1777_v3, %v11722_v37 }
 0xd80   : > { %3577 = vrot.lane.b32.xlu1 %v3178_v49, %s10129_s24  ;;  %v1686_v16 = vpop.permute.xlu1 %1685  ;;  %v1785_v9 = vsel %vm1751_vm4, %v1781_v61, %v11764_v31  ;;  %v1763_v31 = vsel %vm1761_vm5, %v1758_v23, %v11558_v12  ;;  %v5342_v23 = vcombine.high %v5338_v29, %v10123_v11 }
 0xd81   : > { %v1789_v37 = vsel %vm1756_vm6, %v1785_v9, %v1686_v16  ;;  %v12917_v16 = vld [vmem:[#allocation11_spill] sm:$0xff]  ;;  %v12925_v9 = vld [vmem:[#allocation32_spill] sm:$0xff] }
 0xd82   : > { %v11794_v36 = vpop.permute.xlu0 %3403 }
 0xd83   : > { %5542 = vrot.lane.b32.xlu0 %v5135_v35, %s10127_s20  ;;  %v5407_v35 = vcombine.high %v5399_v6, %v10123_v11 }
 0xd84   : > { %3581 = vrot.lane.b32.xlu1 %v3374_v40, %s10129_s24  ;;  %v11799_v41 = vpop.permute.xlu1 %1689  ;;  %v1779_v40 = vsel %vm1038_vm3, %v12916_v42, %v11684_v52  ;;  %v5242_v42 = vcombine.high %v5225_v22, %v10123_v11 }
 0xd85   : > { %v1783_v47 = vsel %vm333_vm0, %v1779_v40, %v11748_v15  ;;  %v5421_v50 = vrot.slane %v5407_v35, %v11091_v0  ;;  %v5196_v40 = vcombine.high %v10878_v2, %v10123_v11 }
 0xd86   : > { %v11802_v24 = vpop.permute.xlu0 %3415  ;;  %v1787_v6 = vsel %vm1751_vm4, %v1783_v47, %v11779_v25  ;;  %v12923_v25 = vld [vmem:[#allocation30_spill] sm:$0xff]  ;;  %v5392_v47 = vcombine.high %v10895_v14, %v10123_v11 }
 0xd87   : > { %5546 = vrot.lane.b32.xlu0 %v5331_v5, %s10127_s20  ;;  %v1750_v5 = vsel %vm333_vm0, %v1746_v44, %v12917_v16  ;;  %v1791_v15 = vsel %vm1756_vm6, %v1787_v6, %v11799_v41  ;;  %v5192_v16 = vcombine.high %v11910_v38, %v10123_v11 }
 0xd88   : > { %3593 = vrot.lane.b32.xlu1 %v3182_v13, %s10130_s26  ;;  %v1702_v17 = vpop.permute.xlu1 %1701  ;;  %v12918_v13 = vld [vmem:[#allocation29_spill] sm:$0xff]  ;;  %v5406_v14 = vrot.slane %v5392_v47, %v11088_v54 }
 0xd89   : > { %v1793_v39 = vsel %vm1761_vm5, %v1789_v37, %v1702_v17  ;;  %v1768_v26 = vsel %vm1766_vm7, %v1763_v31, %v12918_v13  ;;  %v12920_v17 = vld [vmem:[#allocation31_spill] sm:$0xff]  ;;  %v12926_v37 = vld [vmem:[#allocation6_spill] sm:$0xff]  ;;  %v5438_v13 = vcombine.high %v5421_v50, %v10123_v11 }
 0xd8a   : > { %v11810_v21 = vpop.permute.xlu0 %3419  ;;  %v5350_v35 = vrot.slane %v12926_v37, %v11088_v54 }
 0xd8b   : > { %5558 = vrot.lane.b32.xlu0 %v5145_v56, %s10128_s22  ;;  %v12919_v56 = vld [vmem:[#allocation12_spill] sm:$0xff] }
 0xd8c   : > { %3597 = vrot.lane.b32.xlu1 %v3378_v48, %s10130_s26  ;;  %v1706_v59 = vpop.permute.xlu1 %1705  ;;  %v1755_v52 = vsel %vm1751_vm4, %v1750_v5, %v12919_v56  ;;  %v1773_v48 = vsel %vm1771_vm8, %v1768_v26, %v12920_v17  ;;  %v11935_v5 = vrot.slane %v5350_v35, %v11091_v0  ;;  %v5210_v26 = vrot.slane %v5196_v40, %v11088_v54 }
 0xd8d   : > { %v1795_v58 = vsel %vm1761_vm5, %v1791_v15, %v1706_v59  ;;  %v5162_v56 = vcombine.high %v11852_v43, %v10123_v11  ;;  %v5429_v43 = vrot.slane %v5406_v14, %v11091_v0 }
 0xd8e   : > { %v11822_v46 = vpop.permute.xlu0 %3431  ;;  %12927 = vst [vmem:[#allocation11_spill] sm:$0xff] %v11935_v5  ;;  %v5233_v17 = vrot.slane %v5210_v26, %v11091_v0 }
 0xd8f   : > { %5562 = vrot.lane.b32.xlu0 %v5341_v57, %s10128_s22  ;;  %v5176_v6 = vrot.slane %v5162_v56, %v11091_v0 }
 0xd90   : > { %5496 = vrot.lane.b32.xlu1 %v5241_v18, %s10124_s17  ;;  %v1718_v33 = vpop.permute.xlu1 %1717  ;;  %v1760_v18 = vsel %vm1756_vm6, %v1755_v52, %v12921_v8 }
 0xd91   : > { %v1797_v45 = vsel %vm1766_vm7, %v1793_v39, %v1718_v33 }
 0xd92   : > { %v11833_v51 = vpop.permute.xlu0 %3435 }
 0xd93   : > { %5574 = vrot.lane.b32.xlu0 %v5142_v27, %s10129_s24 }
 0xd94   : > { %5500 = vrot.lane.b32.xlu1 %v5437_v28, %s10124_s17  ;;  %v1722_v63 = vpop.permute.xlu1 %1721  ;;  %v12922_v28 = vld [vmem:[#allocation25_spill] sm:$0xff] }
 0xd95   : > { %v1765_v60 = vsel %vm1761_vm5, %v1760_v18, %v12922_v28  ;;  %v1799_v4 = vsel %vm1766_vm7, %v1795_v58, %v1722_v63  ;;  %v5147_v58 = vcombine.high %v10870_v55, %v10123_v11 }
 0xd96   : > { %v11863_v49 = vpop.permute.xlu0 %3447  ;;  %v1770_v3 = vsel %vm1766_vm7, %v1765_v60, %v12923_v25  ;;  %v5193_v60 = vcombine.high %v5176_v6, %v10123_v11 }
 0xd97   : > { %5578 = vrot.lane.b32.xlu0 %v5338_v29, %s10129_s24  ;;  %v1775_v59 = vsel %vm1771_vm8, %v1770_v3, %v12925_v9  ;;  %v5439_v3 = vcombine.high %v5429_v43, %v10123_v11  ;;  %v5161_v9 = vrot.slane %v5147_v58, %v11088_v54 }
 0xd98   : > { %5512 = vrot.lane.b32.xlu1 %v5225_v22, %s10125_s18  ;;  %v1734_v12 = vpop.permute.xlu1 %1733 }
 0xd99   : > { %v1801_v57 = vsel %vm1771_vm8, %v1797_v45, %v1734_v12  ;;  %v5388_v12 = vcombine.high %v11935_v5, %v10123_v11 }
 0xd9a   : > { %v1827_v33 = vcombine.low %v1773_v48, %v1801_v57  ;;  %v11896_v27 = vpop.permute.xlu0 %3451  ;;  %v5358_v57 = vcombine.high %v5350_v35, %v10123_v11 }
 0xd9b   : > { %5590 = vrot.lane.b32.xlu0 %v5146_v20, %s10130_s26 }
 0xd9c   : > { %v1834_v41 = vrot.slane %v1827_v33, %v11703_v7  ;;  %5516 = vrot.lane.b32.xlu1 %v5421_v50, %s10125_s18  ;;  %v1738_v61 = vpop.permute.xlu1 %1737  ;;  %v5372_v15 = vrot.slane %v5358_v57, %v11091_v0  ;;  %v5243_v50 = vcombine.high %v5233_v17, %v10123_v11 }
 0xd9d   : > { %v1803_v20 = vsel %vm1771_vm8, %v1799_v4, %v1738_v61  ;;  %v5226_v4 = vcombine.high %v5210_v26, %v10123_v11 }
 0xd9e   : > { %v1841_v63 = vrot.slane %v1834_v41, %v11703_v7  ;;  %v1857_v44 = vcombine.low %v1775_v59, %v1803_v20  ;;  %v11919_v31 = vpop.permute.xlu0 %3463  ;;  %v5389_v61 = vcombine.high %v5372_v15, %v10123_v11  ;;  %v5343_v59 = vcombine.high %v12926_v37, %v10123_v11 }
 0xd9f   : > { %5594 = vrot.lane.b32.xlu0 %v5342_v23, %s10130_s26  ;;  %v5240_v20 = vrot.slane %v5226_v4, %v11091_v0  ;;  %v5422_v23 = vcombine.high %v5406_v14, %v10123_v11 }
 0xda0   : > { %8486 = vst.msk [vmem:[%s11751_s25 + $0x8] ss:$4 sm:$0x3] %vm11740_vm9, %v1841_v63  ;;  %v1864_v29 = vrot.slane %v1857_v44, %v11703_v7  ;;  %5528 = vrot.lane.b32.xlu1 %v5242_v42, %s10126_s19  ;;  %v11930_v39 = vpop.permute.xlu1 %3385  ;;  %v5184_v63 = vrot.slane %v5161_v9, %v11091_v0  ;;  %v5357_v44 = vrot.slane %v5343_v59, %v11088_v54 }
 0xda1   : > { %v5436_v37 = vrot.slane %v5422_v23, %v11091_v0 }
 0xda2   : > { %v1871_v22 = vrot.slane %v1864_v29, %v11703_v7  ;;  %v11938_v2 = vpop.permute.xlu0 %3467  ;;  %v5380_v29 = vrot.slane %v5357_v44, %v11091_v0  ;;  %v5373_v59 = vcombine.high %v5357_v44, %v10123_v11 }
 0xda3   : > { %5606 = vrot.lane.b32.xlu0 %v5192_v16, %s10124_s17 }
 0xda4   : > { %8488 = vst.msk [vmem:[%s11751_s25 + $0x18] ss:$4 sm:$0x3] %vm11740_vm9, %v1871_v22  ;;  %5532 = vrot.lane.b32.xlu1 %v5438_v13, %s10126_s19  ;;  %v11949_v45 = vpop.permute.xlu1 %3389  ;;  %v5244_v22 = vcombine.high %v5240_v20, %v10123_v11  ;;  %v12928_v13 = vld [vmem:[#allocation5_spill] sm:$0xff] }
 0xda5   : > { %v5252_v26 = vrot.slane %v12928_v13, %v11088_v54 }
 0xda6   : > { %v11955_v52 = vpop.permute.xlu0 %3479 }
 0xda7   : > { %5610 = vrot.lane.b32.xlu0 %v5388_v12, %s10124_s17  ;;  %v5194_v12 = vcombine.high %v5184_v63, %v10123_v11  ;;  %v12027_v14 = vrot.slane %v5252_v26, %v11091_v0  ;;  %v5260_v23 = vcombine.high %v5252_v26, %v10123_v11 }
 0xda8   : > { %5544 = vrot.lane.b32.xlu1 %v5233_v17, %s10127_s20  ;;  %v11961_v48 = vpop.permute.xlu1 %3401  ;;  %v5440_v17 = vcombine.high %v5436_v37, %v10123_v11 }
 0xda9   : > { %12929 = vst [vmem:[#allocation29_spill] sm:$0xff] %v12027_v14  ;;  %v5290_v58 = vcombine.high %v12027_v14, %v10123_v11 }
 0xdaa   : > { %v11965_v8 = vpop.permute.xlu0 %3483 }
 0xdab   : > { %5622 = vrot.lane.b32.xlu0 %v5176_v6, %s10125_s18  ;;  %v12930_v6 = vld [vmem:[#allocation7_spill] sm:$0xff] }
 0xdac   : > { %5548 = vrot.lane.b32.xlu1 %v5429_v43, %s10127_s20  ;;  %v11970_v18 = vpop.permute.xlu1 %3405  ;;  %v5448_v57 = vrot.slane %v12930_v6, %v11088_v54 }
 0xdae   : > { %v11973_v33 = vpop.permute.xlu0 %3495  ;;  %v5456_v44 = vcombine.high %v5448_v57, %v10123_v11 }
 0xdaf   : > { %5626 = vrot.lane.b32.xlu0 %v5372_v15, %s10125_s18  ;;  %v5390_v15 = vcombine.high %v5380_v29, %v10123_v11 }
 0xdb0   : > { %5560 = vrot.lane.b32.xlu1 %v5243_v50, %s10128_s22  ;;  %v11978_v28 = vpop.permute.xlu1 %3417  ;;  %v5177_v50 = vcombine.high %v5161_v9, %v10123_v11 }
 0xdb2   : > { %v11983_v25 = vpop.permute.xlu0 %3499 }
 0xdb3   : > { %5638 = vrot.lane.b32.xlu0 %v5193_v60, %s10126_s19 }
 0xdb4   : > { %5564 = vrot.lane.b32.xlu1 %v5439_v3, %s10128_s22  ;;  %v11989_v41 = vpop.permute.xlu1 %3421  ;;  %v12040_v3 = vrot.slane %v5448_v57, %v11091_v0 }
 0xdb6   : > { %v11995_v55 = vpop.permute.xlu0 %3511  ;;  %12931 = vst [vmem:[#allocation12_spill] sm:$0xff] %v12040_v3  ;;  %v5486_v9 = vcombine.high %v12040_v3, %v10123_v11 }
 0xdb7   : > { %5642 = vrot.lane.b32.xlu0 %v5389_v61, %s10126_s19  ;;  %v5191_v61 = vrot.slane %v5177_v50, %v11091_v0 }
 0xdb8   : > { %5576 = vrot.lane.b32.xlu1 %v5240_v20, %s10129_s24  ;;  %v12001_v35 = vpop.permute.xlu1 %3433 }
 0xdb9   : > { %v5195_v26 = vcombine.high %v5191_v61, %v10123_v11 }
 0xdba   : > { %v12005_v42 = vpop.permute.xlu0 %3515 }
 0xdbb   : > { %5654 = vrot.lane.b32.xlu0 %v5184_v63, %s10127_s20 }
 0xdbc   : > { %5580 = vrot.lane.b32.xlu1 %v5436_v37, %s10129_s24  ;;  %v12010_v40 = vpop.permute.xlu1 %3437  ;;  %v5387_v37 = vrot.slane %v5373_v59, %v11091_v0  ;;  %v5245_v59 = vcombine.high %v12928_v13, %v10123_v11  ;;  %v5441_v13 = vcombine.high %v12930_v6, %v10123_v11 }
 0xdbe   : > { %v12013_v16 = vpop.permute.xlu0 %3527  ;;  %v12080_v14 = vrot.slane %v5245_v59, %v11088_v54  ;;  %v12934_v59 = vld [vmem:[#allocation21_spill] sm:$0xff] }
 0xdbf   : > { %5658 = vrot.lane.b32.xlu0 %v5380_v29, %s10127_s20 }
 0xdc0   : > { %5592 = vrot.lane.b32.xlu1 %v5244_v22, %s10130_s26  ;;  %v12020_v47 = vpop.permute.xlu1 %3449  ;;  %v5274_v22 = vrot.slane %v5260_v23, %v11091_v0  ;;  %v5282_v38 = vrot.slane %v12080_v14, %v11091_v0 }
 0xdc2   : > { %v12023_v56 = vpop.permute.xlu0 %3531  ;;  %v5291_v3 = vcombine.high %v5274_v22, %v10123_v11 }
 0xdc3   : > { %5670 = vrot.lane.b32.xlu0 %v5194_v12, %s10128_s22 }
 0xdc4   : > { %5596 = vrot.lane.b32.xlu1 %v5440_v17, %s10130_s26  ;;  %v12033_v43 = vpop.permute.xlu1 %3453  ;;  %v12932_v17 = vld [vmem:[#allocation14_spill] sm:$0xff] }
 0xdc6   : > { %v3544_v60 = vpop.permute.xlu0 %3543 }
 0xdc7   : > { %5674 = vrot.lane.b32.xlu0 %v5390_v15, %s10128_s22  ;;  %v7144_v15 = vrot.slane %v12932_v17, %v11088_v54 }
 0xdc8   : > { %5608 = vrot.lane.b32.xlu1 %v5290_v58, %s10124_s17  ;;  %v12044_v4 = vpop.permute.xlu1 %3465  ;;  %v5470_v58 = vrot.slane %v5456_v44, %v11091_v0 }
 0xdc9   : > { %v12076_v23 = vrot.slane %v7144_v15, %v11091_v0 }
 0xdca   : > { %v12048_v20 = vpop.permute.xlu0 %3547 }
 0xdcb   : > { %5686 = vrot.lane.b32.xlu0 %v5191_v61, %s10129_s24  ;;  %v7182_v6 = vcombine.high %v12076_v23, %v10123_v11 }
 0xdcc   : > { %5612 = vrot.lane.b32.xlu1 %v5486_v9, %s10124_s17  ;;  %v12055_v63 = vpop.permute.xlu1 %3469  ;;  %v5391_v9 = vcombine.high %v5387_v37, %v10123_v11 }
 0xdce   : > { %v3560_v29 = vpop.permute.xlu0 %3559 }
 0xdcf   : > { %5690 = vrot.lane.b32.xlu0 %v5387_v37, %s10129_s24  ;;  %v7152_v37 = vcombine.high %v7144_v15, %v10123_v11 }
 0xdd0   : > { %5624 = vrot.lane.b32.xlu1 %v5274_v22, %s10125_s18  ;;  %v12062_v12 = vpop.permute.xlu1 %3481  ;;  %v3603_v22 = vsel %vm1038_vm3, %v12933_v32, %v11757_v30 }
 0xdd2   : > { %v3564_v50 = vpop.permute.xlu0 %3563 }
 0xdd3   : > { %5702 = vrot.lane.b32.xlu0 %v5195_v26, %s10130_s26  ;;  %v7137_v26 = vcombine.high %v12932_v17, %v10123_v11  ;;  %v5487_v17 = vcombine.high %v5470_v58, %v10123_v11 }
 0xdd4   : > { %5628 = vrot.lane.b32.xlu1 %v5470_v58, %s10125_s18  ;;  %v12072_v57 = vpop.permute.xlu1 %3485 }
 0xdd6   : > { %v3576_v61 = vpop.permute.xlu0 %3575 }
 0xdd7   : > { %5706 = vrot.lane.b32.xlu0 %v5391_v9, %s10130_s26  ;;  %v3631_v9 = vsel %vm1038_vm3, %v12934_v59, %v11973_v33  ;;  %v12112_v33 = vrot.slane %v5441_v13, %v11088_v54  ;;  %v12936_v13 = vld [vmem:[#allocation10_spill] sm:$0xff] }
 0xdd8   : > { %5640 = vrot.lane.b32.xlu1 %v5291_v3, %s10126_s19  ;;  %v12086_v44 = vpop.permute.xlu1 %3497  ;;  %v3607_v3 = vsel %vm333_vm0, %v3603_v22, %v11785_v10  ;;  %v3635_v15 = vsel %vm333_vm0, %v3631_v9, %v11995_v55  ;;  %v12935_v10 = vld [vmem:[#allocation13_spill] sm:$0xff]  ;;  %v3605_v9 = vsel %vm1038_vm3, %v12936_v13, %v11772_v53 }
 0xdd9   : > { %v3611_v30 = vsel %vm1751_vm4, %v3607_v3, %v11802_v24  ;;  %v3639_v32 = vsel %vm1751_vm4, %v3635_v15, %v12013_v16  ;;  %v7095_v55 = vrot.slane %v12935_v10, %v11088_v54  ;;  %v12123_v24 = vrot.slane %v7152_v37, %v11091_v0 }
 0xdda   : > { %v3580_v5 = vpop.permute.xlu0 %3579  ;;  %v3615_v58 = vsel %vm1756_vm6, %v3611_v30, %v11822_v46  ;;  %v3643_v22 = vsel %vm1756_vm6, %v3639_v32, %v3544_v60  ;;  %v12126_v16 = vrot.slane %v7137_v26, %v11088_v54  ;;  %v12937_v46 = vld [vmem:[#allocation22_spill] sm:$0xff]  ;;  %v3609_v37 = vsel %vm333_vm0, %v3605_v9, %v11794_v36 }
 0xddb   : > { %7596 = vrot.lane.b32.xlu0 %v7182_v6, %s10124_s17  ;;  %v3619_v6 = vsel %vm1761_vm5, %v3615_v58, %v11863_v49  ;;  %v3633_v60 = vsel %vm1038_vm3, %v12937_v46, %v11983_v25  ;;  %v3647_v3 = vsel %vm1761_vm5, %v3643_v22, %v3560_v29  ;;  %v3613_v49 = vsel %vm1751_vm4, %v3609_v37, %v11810_v21 }
 0xddc   : > { %5644 = vrot.lane.b32.xlu1 %v5487_v17, %s10126_s19  ;;  %v12120_v59 = vpop.permute.xlu1 %3501  ;;  %v3623_v26 = vsel %vm1766_vm7, %v3619_v6, %v11919_v31  ;;  %v3637_v15 = vsel %vm333_vm0, %v3633_v60, %v12005_v42  ;;  %v3651_v53 = vsel %vm1766_vm7, %v3647_v3, %v3576_v61  ;;  %v3617_v31 = vsel %vm1756_vm6, %v3613_v49, %v11833_v51 }
 0xddd   : > { %v3627_v25 = vsel %vm1771_vm8, %v3623_v26, %v11955_v52  ;;  %v3641_v29 = vsel %vm1751_vm4, %v3637_v15, %v12023_v56  ;;  %v3621_v52 = vsel %vm1761_vm5, %v3617_v31, %v11896_v27  ;;  %v7174_v30 = vrot.slane %v12126_v16, %v11091_v0 }
 0xdde   : > { %v3592_v17 = vpop.permute.xlu0 %3591  ;;  %v3645_v42 = vsel %vm1756_vm6, %v3641_v29, %v12048_v20  ;;  %v12166_v32 = vrot.slane %v7095_v55, %v11091_v0  ;;  %v3625_v51 = vsel %vm1766_vm7, %v3621_v52, %v11938_v2  ;;  %v5478_v27 = vrot.slane %v12112_v33, %v11091_v0 }
 0xddf   : > { %v3655_v36 = vsel %vm1771_vm8, %v3651_v53, %v3592_v17  ;;  %7612 = vrot.lane.b32.xlu0 %v12123_v24, %s10125_s18  ;;  %v3649_v56 = vsel %vm1761_vm5, %v3645_v42, %v3564_v50  ;;  %v3629_v50 = vsel %vm1771_vm8, %v3625_v51, %v11965_v8  ;;  %v7103_v46 = vcombine.high %v7095_v55, %v10123_v11 }
 0xde0   : > { %v3667_v61 = vcombine.low %v3627_v25, %v3655_v36  ;;  %5656 = vrot.lane.b32.xlu1 %v5282_v38, %s10127_s20  ;;  %v12158_v21 = vpop.permute.xlu1 %3513  ;;  %v3653_v20 = vsel %vm1766_vm7, %v3649_v56, %v3580_v5  ;;  %v7133_v2 = vcombine.high %v12166_v32, %v10123_v11  ;;  %v7088_v8 = vcombine.high %v12935_v10, %v10123_v11 }
 0xde1   : > { %v5292_v37 = vcombine.high %v5282_v38, %v10123_v11  ;;  %v7117_v55 = vrot.slane %v7103_v46, %v11091_v0  ;;  %v5488_v17 = vcombine.high %v5478_v27, %v10123_v11  ;;  %v5275_v38 = vcombine.high %v12080_v14, %v10123_v11 }
 0xde2   : > { %v3674_v58 = vrot.slane %v3667_v61, %v11703_v7  ;;  %v3596_v22 = vpop.permute.xlu0 %3595  ;;  %v7102_v10 = vrot.slane %v7088_v8, %v11088_v54  ;;  %v5471_v61 = vcombine.high %v12112_v33, %v10123_v11  ;;  %v7183_v52 = vcombine.high %v12123_v24, %v10123_v11 }
 0xde3   : > { %v3657_v13 = vsel %vm1771_vm8, %v3653_v20, %v3596_v22  ;;  %7644 = vrot.lane.b32.xlu0 %v7174_v30, %s10127_s20  ;;  %v5289_v42 = vrot.slane %v5275_v38, %v11091_v0  ;;  %v7184_v22 = vcombine.high %v7174_v30, %v10123_v11 }
 0xde4   : > { %v3681_v9 = vrot.slane %v3674_v58, %v11703_v7  ;;  %v3697_v6 = vcombine.low %v3629_v50, %v3657_v13  ;;  %5660 = vrot.lane.b32.xlu1 %v5478_v27, %s10127_s20  ;;  %v12180_v5 = vpop.permute.xlu1 %3517  ;;  %v7125_v29 = vrot.slane %v7102_v10, %v11091_v0  ;;  %v5485_v51 = vrot.slane %v5471_v61, %v11091_v0  ;;  %v12938_v13 = vld [vmem:[#allocation18_spill] sm:$0xff]  ;;  %v12939_v61 = vld [vmem:[#allocation16_spill] sm:$0xff] }
 0xde5   : > { %v7167_v27 = vcombine.high %v12126_v16, %v10123_v11  ;;  %v5293_v50 = vcombine.high %v5289_v42, %v10123_v11 }
 0xde6   : > { %8557 = vst.msk [vmem:[%s11751_s25 + $0x1] ss:$4 sm:$0x3] %vm11740_vm9, %v3681_v9  ;;  %v3704_v60 = vrot.slane %v3697_v6, %v11703_v7  ;;  %v12191_v3 = vpop.permute.xlu0 %5494  ;;  %v7242_v9 = vrot.slane %v12938_v13, %v11088_v54  ;;  %v5489_v8 = vcombine.high %v5485_v51, %v10123_v11 }
 0xde7   : > { %7484 = vrot.lane.b32.xlu0 %v7133_v2, %s10124_s17  ;;  %v7181_v16 = vrot.slane %v7167_v27, %v11091_v0 }
 0xde8   : > { %v3711_v26 = vrot.slane %v3704_v60, %v11703_v7  ;;  %5672 = vrot.lane.b32.xlu1 %v5292_v37, %s10128_s22  ;;  %v12197_v15 = vpop.permute.xlu1 %3529  ;;  %v12250_v60 = vrot.slane %v7242_v9, %v11091_v0 }
 0xdea   : > { %8559 = vst.msk [vmem:[%s11751_s25 + $0x11] ss:$4 sm:$0x3] %vm11740_vm9, %v3711_v26  ;;  %v12204_v53 = vpop.permute.xlu0 %5498  ;;  %v7235_v26 = vcombine.high %v12938_v13, %v10123_v11  ;;  %v12940_v13 = vld [vmem:[#allocation15_spill] sm:$0xff] }
 0xdeb   : > { %7500 = vrot.lane.b32.xlu0 %v7117_v55, %s10125_s18 }
 0xdec   : > { %5676 = vrot.lane.b32.xlu1 %v5488_v17, %s10128_s22  ;;  %v12211_v49 = vpop.permute.xlu1 %3533  ;;  %v7134_v17 = vcombine.high %v7117_v55, %v10123_v11  ;;  %v7135_v55 = vcombine.high %v7125_v29, %v10123_v11 }
 0xded   : > { %v9549_v25 = vpop.f32.mrb[76].mxu0 }
 0xdee   : > { %v7912_v36 = vpop.f32.mrb[77].mxu0  ;;  %v12214_v31 = vpop.permute.xlu0 %5510 }
 0xdef   : > { %9573 = vmatprep.mubr.msk.f32.mxu0 %vm689_vm1, %v7912_v36  ;;  %7532 = vrot.lane.b32.xlu0 %v7125_v29, %s10127_s20  ;;  %v7250_v36 = vcombine.high %v7242_v9, %v10123_v11  ;;  %v3604_v9 = vsel %vm1038_vm3, %v12940_v13, %v11930_v39 }
 0xdf0   : > { %5688 = vrot.lane.b32.xlu1 %v5289_v42, %s10129_s24  ;;  %v12222_v14 = vpop.permute.xlu1 %3545  ;;  %9574 = vmatmul.mubr.msk.f32.vlgmr.msra.gmra.mrb[40].mxu0 %vm689_vm1, %v9549_v25  ;;  %v7280_v25 = vcombine.high %v12250_v60, %v10123_v11  ;;  %v7118_v42 = vcombine.high %v7102_v10, %v10123_v11  ;;  %v7185_v10 = vcombine.high %v7181_v16, %v10123_v11 }
 0xdf2   : > { %v12227_v56 = vpop.permute.xlu0 %5514  ;;  %v7132_v27 = vrot.slane %v7118_v42, %v11091_v0  ;;  %v12943_v42 = vld [vmem:[#allocation20_spill] sm:$0xff] }
 0xdf3   : > { %7628 = vrot.lane.b32.xlu0 %v7183_v52, %s10126_s19  ;;  %v7193_v52 = vrot.slane %v12939_v61, %v11088_v54 }
 0xdf4   : > { %5692 = vrot.lane.b32.xlu1 %v5485_v51, %s10129_s24  ;;  %v12232_v33 = vpop.permute.xlu1 %3549  ;;  %v9556_v20 = vpop.f32.mrb[84].mxu1 }
 0xdf5   : > { %v7993_v58 = vpop.f32.mrb[85].mxu1  ;;  %v7201_v29 = vcombine.high %v7193_v52, %v10123_v11 }
 0xdf6   : > { %9576 = vmatprep.mubr.msk.f32.mxu0 %vm689_vm1, %v7993_v58  ;;  %v12238_v24 = vpop.permute.xlu0 %5526 }
 0xdf7   : > { %v9563_v6 = vpop.f32.mrb[78].mxu0  ;;  %9577 = vmatmul.mubr.msk.f32.gmra.mrb[42].mxu0 %vm689_vm1, %v9556_v20  ;;  %7660 = vrot.lane.b32.xlu0 %v7184_v22, %s10128_s22  ;;  %v12269_v20 = vrot.slane %v7235_v26, %v11088_v54  ;;  %v12273_v22 = vrot.slane %v7250_v36, %v11091_v0 }
 0xdf8   : > { %5704 = vrot.lane.b32.xlu1 %v5293_v50, %s10130_s26  ;;  %v3562_v30 = vpop.permute.xlu1 %3561  ;;  %v8074_v2 = vpop.f32.mrb[79].mxu0  ;;  %v12278_v50 = vrot.slane %v7193_v52, %v11091_v0 }
 0xdf9   : > { %9579 = vmatprep.mubr.msk.f32.mxu0 %vm689_vm1, %v8074_v2 }
 0xdfa   : > { %v5531_v46 = vpop.permute.xlu0 %5530 }
 0xdfb   : > { %9580 = vmatmul.mubr.msk.f32.gmra.mrb[44].mxu0 %vm689_vm1, %v9563_v6  ;;  %7676 = vrot.lane.b32.xlu0 %v7181_v16, %s10129_s24  ;;  %v12941_v6 = vld [vmem:[#allocation24_spill] sm:$0xff]  ;;  %v12942_v16 = vld [vmem:[#allocation17_spill] sm:$0xff] }
 0xdfc   : > { %5708 = vrot.lane.b32.xlu1 %v5489_v8, %s10130_s26  ;;  %v3566_v37 = vpop.permute.xlu1 %3565  ;;  %v3632_v2 = vsel %vm1038_vm3, %v12941_v6, %v12086_v44  ;;  %v7186_v8 = vcombine.high %v12939_v61, %v10123_v11  ;;  %v3606_v26 = vsel %vm1038_vm3, %v12942_v16, %v11949_v45  ;;  %v12301_v44 = vrot.slane %v12269_v20, %v11091_v0 }
 0xdfd   : > { %v3636_v39 = vsel %vm333_vm0, %v3632_v2, %v12158_v21  ;;  %v3610_v36 = vsel %vm333_vm0, %v3606_v26, %v11970_v18  ;;  %v7340_v21 = vrot.slane %v12943_v42, %v11088_v54  ;;  %v7231_v18 = vcombine.high %v12278_v50, %v10123_v11 }
 0xdfe   : > { %v12258_v38 = vpop.permute.xlu0 %5542  ;;  %v3614_v61 = vsel %vm1751_vm4, %v3610_v36, %v11989_v41  ;;  %v5716_v41 = vsel %vm1038_vm3, %v11657_v62, %v12204_v53 }
 0xdff   : > { %7516 = vrot.lane.b32.xlu0 %v7134_v17, %s10126_s19  ;;  %v3608_v17 = vsel %vm333_vm0, %v3604_v9, %v11961_v48  ;;  %v3640_v48 = vsel %vm1751_vm4, %v3636_v39, %v12197_v15  ;;  %v12944_v15 = vld [vmem:[#allocation28_spill] sm:$0xff]  ;;  %v7136_v39 = vcombine.high %v7132_v27, %v10123_v11 }
 0xe00   : > { %v3578_v51 = vpop.permute.xlu1 %3577  ;;  %7598 = vrot.lane.b32.xlu1 %v7280_v25, %s10124_s17  ;;  %v3612_v45 = vsel %vm1751_vm4, %v3608_v17, %v11978_v28  ;;  %v3634_v9 = vsel %vm1038_vm3, %v12944_v15, %v12120_v59 }
 0xe01   : > { %v3616_v52 = vsel %vm1756_vm6, %v3612_v45, %v12001_v35  ;;  %v3638_v6 = vsel %vm333_vm0, %v3634_v9, %v12180_v5  ;;  %v3618_v5 = vsel %vm1756_vm6, %v3614_v61, %v12010_v40  ;;  %v7215_v45 = vrot.slane %v7201_v29, %v11091_v0 }
 0xe02   : > { %v5547_v58 = vpop.permute.xlu0 %5546  ;;  %v3620_v28 = vsel %vm1761_vm5, %v3616_v52, %v12020_v47  ;;  %v5720_v47 = vsel %vm333_vm0, %v5716_v41, %v12227_v56  ;;  %v3642_v53 = vsel %vm1751_vm4, %v3638_v6, %v12211_v49  ;;  %v7348_v52 = vcombine.high %v7340_v21, %v10123_v11 }
 0xe03   : > { %7548 = vrot.lane.b32.xlu0 %v7135_v55, %s10128_s22  ;;  %v3644_v55 = vsel %vm1756_vm6, %v3640_v48, %v12222_v14  ;;  %v3624_v14 = vsel %vm1766_vm7, %v3620_v28, %v12044_v4  ;;  %v5724_v4 = vsel %vm1751_vm4, %v5720_v47, %v5531_v46  ;;  %v3646_v56 = vsel %vm1756_vm6, %v3642_v53, %v12232_v33 }
 0xe04   : > { %v3582_v25 = vpop.permute.xlu1 %3581  ;;  %7614 = vrot.lane.b32.xlu1 %v12273_v22, %s10125_s18  ;;  %v3648_v35 = vsel %vm1761_vm5, %v3644_v55, %v3562_v30  ;;  %v3628_v62 = vsel %vm1771_vm8, %v3624_v14, %v12062_v12  ;;  %v3622_v12 = vsel %vm1761_vm5, %v3618_v5, %v12033_v43  ;;  %v3650_v17 = vsel %vm1761_vm5, %v3646_v56, %v3566_v37 }
 0xe05   : > { %v3652_v2 = vsel %vm1766_vm7, %v3648_v35, %v3578_v51  ;;  %v5728_v51 = vsel %vm1756_vm6, %v5724_v4, %v5547_v58  ;;  %v3626_v40 = vsel %vm1766_vm7, %v3622_v12, %v12055_v63  ;;  %v3654_v33 = vsel %vm1766_vm7, %v3650_v17, %v3582_v25 }
 0xe06   : > { %v12317_v13 = vpop.permute.xlu0 %5558  ;;  %v3630_v43 = vsel %vm1771_vm8, %v3626_v40, %v12072_v57  ;;  %v7200_v48 = vrot.slane %v7186_v8, %v11088_v54  ;;  %v7333_v29 = vcombine.high %v12943_v42, %v10123_v11  ;;  %v7362_v15 = vrot.slane %v7348_v52, %v11091_v0  ;;  %v12945_v42 = vld [vmem:[#allocation19_spill] sm:$0xff] }
 0xe07   : > { %7564 = vrot.lane.b32.xlu0 %v7132_v27, %s10129_s24  ;;  %v7291_v9 = vrot.slane %v12945_v42, %v11088_v54  ;;  %v7281_v35 = vcombine.high %v12273_v22, %v10123_v11 }
 0xe08   : > { %v3594_v59 = vpop.permute.xlu1 %3593  ;;  %7646 = vrot.lane.b32.xlu1 %v12301_v44, %s10127_s20 }
 0xe09   : > { %v3656_v30 = vsel %vm1771_vm8, %v3652_v2, %v3594_v59  ;;  %v12411_v47 = vrot.slane %v7291_v9, %v11091_v0  ;;  %v7282_v59 = vcombine.high %v12301_v44, %v10123_v11  ;;  %v7299_v4 = vcombine.high %v7291_v9, %v10123_v11 }
 0xe0a   : > { %v3682_v16 = vcombine.low %v3628_v62, %v3656_v30  ;;  %v5563_v26 = vpop.permute.xlu0 %5562  ;;  %v7265_v62 = vcombine.high %v12269_v20, %v10123_v11  ;;  %v7284_v30 = vcombine.high %v12945_v42, %v10123_v11 }
 0xe0b   : > { %v12355_v49 = vsel %vm1761_vm5, %v5728_v51, %v5563_v26  ;;  %7692 = vrot.lane.b32.xlu0 %v7185_v10, %s10130_s26  ;;  %v12368_v10 = vrot.slane %v7340_v21, %v11091_v0  ;;  %v7347_v21 = vrot.slane %v7333_v29, %v11088_v54  ;;  %v7329_v53 = vcombine.high %v12411_v47, %v10123_v11  ;;  %v12946_v29 = vld [vmem:[#allocation27_spill] sm:$0xff] }
 0xe0c   : > { %v3689_v46 = vrot.slane %v3682_v16, %v11703_v7  ;;  %v3598_v58 = vpop.permute.xlu1 %3597  ;;  %7486 = vrot.lane.b32.xlu1 %v7231_v18, %s10124_s17  ;;  %v7223_v18 = vrot.slane %v7200_v48, %v11091_v0  ;;  %v7279_v44 = vrot.slane %v7265_v62, %v11091_v0  ;;  %v7313_v56 = vrot.slane %v7299_v4, %v11091_v0 }
 0xe0d   : > { %v3658_v37 = vsel %vm1771_vm8, %v3654_v33, %v3598_v58  ;;  %v7378_v61 = vcombine.high %v12368_v10, %v10123_v11  ;;  %v7370_v6 = vrot.slane %v7347_v21, %v11091_v0  ;;  %v7298_v51 = vrot.slane %v7284_v30, %v11088_v54 }
 0xe0e   : > { %v3696_v36 = vrot.slane %v3689_v46, %v11703_v7  ;;  %v3712_v63 = vcombine.low %v3630_v43, %v3658_v37  ;;  %v12371_v25 = vpop.permute.xlu0 %5574  ;;  %v7232_v26 = vcombine.high %v7215_v45, %v10123_v11  ;;  %v7233_v33 = vcombine.high %v7223_v18, %v10123_v11 }
 0xe0f   : > { %7580 = vrot.lane.b32.xlu0 %v7136_v39, %s10130_s26  ;;  %v7321_v17 = vrot.slane %v7298_v51, %v11091_v0  ;;  %v7216_v46 = vcombine.high %v7200_v48, %v10123_v11  ;;  %v7379_v43 = vcombine.high %v7362_v15, %v10123_v11  ;;  %v7380_v48 = vcombine.high %v7370_v6, %v10123_v11 }
 0xe10   : > { %8558 = vst.msk [vmem:[%s11751_s25 + $0x9] ss:$4 sm:$0x3] %vm11740_vm9, %v3696_v36  ;;  %v3719_v57 = vrot.slane %v3712_v63, %v11703_v7  ;;  %v12380_v27 = vpop.permute.xlu1 %5496  ;;  %7502 = vrot.lane.b32.xlu1 %v7215_v45, %s10125_s18  ;;  %v7283_v52 = vcombine.high %v7279_v44, %v10123_v11 }
 0xe11   : > { %v7230_v36 = vrot.slane %v7216_v46, %v11091_v0 }
 0xe12   : > { %v3726_v8 = vrot.slane %v3719_v57, %v11703_v7  ;;  %v12389_v55 = vpop.permute.xlu0 %5578  ;;  %v7363_v57 = vcombine.high %v7347_v21, %v10123_v11 }
 0xe13   : > { %7600 = vrot.lane.b32.xlu0 %v7378_v61, %s10124_s17 }
 0xe14   : > { %8560 = vst.msk [vmem:[%s11751_s25 + $0x19] ss:$4 sm:$0x3] %vm11740_vm9, %v3726_v8  ;;  %v5501_v28 = vpop.permute.xlu1 %5500  ;;  %7534 = vrot.lane.b32.xlu1 %v7223_v18, %s10127_s20  ;;  %v7438_v8 = vrot.slane %v12946_v29, %v11088_v54  ;;  %v7377_v42 = vrot.slane %v7363_v57, %v11091_v0 }
 0xe16   : > { %v12401_v41 = vpop.permute.xlu0 %5590  ;;  %v7446_v30 = vcombine.high %v7438_v8, %v10123_v11 }
 0xe17   : > { %7616 = vrot.lane.b32.xlu0 %v7362_v15, %s10125_s18  ;;  %v5717_v15 = vsel %vm1038_vm3, %v11827_v34, %v5501_v28  ;;  %v7330_v28 = vcombine.high %v7313_v56, %v10123_v11 }
 0xe18   : > { %v12406_v14 = vpop.permute.xlu1 %5512  ;;  %7630 = vrot.lane.b32.xlu1 %v7281_v35, %s10126_s19  ;;  %v7234_v35 = vcombine.high %v7230_v36, %v10123_v11  ;;  %v7460_v46 = vrot.slane %v7446_v30, %v11091_v0  ;;  %v5714_v30 = vsel %vm1038_vm3, %v11637_v1, %v12191_v3 }
 0xe1a   : > { %v12413_v2 = vpop.permute.xlu0 %5594 }
 0xe1b   : > { %7648 = vrot.lane.b32.xlu0 %v7370_v6, %s10127_s20  ;;  %v12476_v6 = vrot.slane %v7438_v8, %v11091_v0 }
 0xe1c   : > { %v5517_v22 = vpop.permute.xlu1 %5516  ;;  %7662 = vrot.lane.b32.xlu1 %v7282_v59, %s10128_s22 }
 0xe1d   : > { %v5721_v21 = vsel %vm333_vm0, %v5717_v15, %v5517_v22  ;;  %v7476_v4 = vcombine.high %v12476_v6, %v10123_v11 }
 0xe1e   : > { %v12426_v5 = vpop.permute.xlu0 %5606 }
 0xe1f   : > { %7488 = vrot.lane.b32.xlu0 %v7329_v53, %s10124_s17 }
 0xe20   : > { %v12430_v20 = vpop.permute.xlu1 %5528  ;;  %7678 = vrot.lane.b32.xlu1 %v7279_v44, %s10129_s24  ;;  %v7431_v44 = vcombine.high %v12946_v29, %v10123_v11 }
 0xe22   : > { %v12435_v16 = vpop.permute.xlu0 %5610 }
 0xe23   : > { %7504 = vrot.lane.b32.xlu0 %v7313_v56, %s10125_s18 }
 0xe24   : > { %v5533_v12 = vpop.permute.xlu1 %5532  ;;  %7518 = vrot.lane.b32.xlu1 %v7232_v26, %s10126_s19 }
 0xe25   : > { %v5725_v59 = vsel %vm1751_vm4, %v5721_v21, %v5533_v12  ;;  %v7331_v12 = vcombine.high %v7321_v17, %v10123_v11 }
 0xe26   : > { %v12441_v40 = vpop.permute.xlu0 %5622 }
 0xe27   : > { %7536 = vrot.lane.b32.xlu0 %v7321_v17, %s10127_s20 }
 0xe28   : > { %v12446_v58 = vpop.permute.xlu1 %5544  ;;  %7550 = vrot.lane.b32.xlu1 %v7233_v33, %s10128_s22  ;;  %v7314_v33 = vcombine.high %v7298_v51, %v10123_v11 }
 0xe2a   : > { %v9570_v37 = vpop.f32.mrb[86].mxu1  ;;  %v12450_v39 = vpop.permute.xlu0 %5626 }
 0xe2b   : > { %v8155_v63 = vpop.f32.mrb[87].mxu1  ;;  %7632 = vrot.lane.b32.xlu0 %v7379_v43, %s10126_s19  ;;  %v7445_v43 = vrot.slane %v7431_v44, %v11088_v54  ;;  %v12948_v44 = vld [vmem:[#allocation8_spill] sm:$0xff] }
 0xe2c   : > { %v5549_v45 = vpop.permute.xlu1 %5548  ;;  %7566 = vrot.lane.b32.xlu1 %v7230_v36, %s10129_s24  ;;  %9582 = vmatprep.mubr.msk.f32.mxu0 %vm689_vm1, %v8155_v63 }
 0xe2d   : > { %9583 = vmatmul.mubr.msk.f32.gmra.mrb[46].mxu0 %vm689_vm1, %v9570_v37  ;;  %v5729_v62 = vsel %vm1756_vm6, %v5725_v59, %v5549_v45  ;;  %v12947_v37 = vld [vmem:[#allocation26_spill] sm:$0xff]  ;;  %v7328_v45 = vrot.slane %v7314_v33, %v11091_v0  ;;  %v7468_v17 = vrot.slane %v7445_v43, %v11091_v0  ;;  %v7381_v59 = vcombine.high %v7377_v42, %v10123_v11 }
 0xe2e   : > { %v12459_v61 = vpop.permute.xlu0 %5638  ;;  %v7389_v36 = vrot.slane %v12947_v37, %v11088_v54  ;;  %v7382_v21 = vcombine.high %v12947_v37, %v10123_v11 }
 0xe2f   : > { %7664 = vrot.lane.b32.xlu0 %v7380_v48, %s10128_s22 }
 0xe30   : > { %v12465_v18 = vpop.permute.xlu1 %5560  ;;  %7694 = vrot.lane.b32.xlu1 %v7283_v52, %s10130_s26  ;;  %v12508_v51 = vrot.slane %v7389_v36, %v11091_v0  ;;  %v7332_v52 = vcombine.high %v7328_v45, %v10123_v11  ;;  %v7397_v15 = vcombine.high %v7389_v36, %v10123_v11 }
 0xe32   : > { %v12472_v9 = vpop.permute.xlu0 %5642  ;;  %v7427_v8 = vcombine.high %v12508_v51, %v10123_v11 }
 0xe33   : > { %7680 = vrot.lane.b32.xlu0 %v7377_v42, %s10129_s24  ;;  %v5718_v42 = vsel %vm333_vm0, %v5714_v30, %v12214_v31 }
 0xe34   : > { %v5565_v53 = vpop.permute.xlu1 %5564  ;;  %7582 = vrot.lane.b32.xlu1 %v7234_v35, %s10130_s26  ;;  %v5722_v36 = vsel %vm1751_vm4, %v5718_v42, %v12238_v24 }
 0xe35   : > { %v12483_v34 = vsel %vm1761_vm5, %v5729_v62, %v5565_v53  ;;  %v7411_v53 = vrot.slane %v7397_v15, %v11091_v0  ;;  %v5726_v1 = vsel %vm1756_vm6, %v5722_v36, %v12258_v38  ;;  %v7477_v15 = vcombine.high %v7460_v46, %v10123_v11 }
 0xe36   : > { %v5655_v22 = vpop.permute.xlu0 %5654  ;;  %v5730_v31 = vsel %vm1761_vm5, %v5726_v1, %v12317_v13 }
 0xe37   : > { %7520 = vrot.lane.b32.xlu0 %v7330_v28, %s10126_s19  ;;  %v7396_v28 = vrot.slane %v7382_v21, %v11088_v54  ;;  %v7428_v36 = vcombine.high %v7411_v53, %v10123_v11 }
 0xe38   : > { %v12492_v26 = vpop.permute.xlu1 %5576  ;;  %7602 = vrot.lane.b32.xlu1 %v7476_v4, %s10124_s17 }
 0xe39   : > { %v7419_v37 = vrot.slane %v7396_v28, %v11091_v0 }
 0xe3a   : > { %v5659_v56 = vpop.permute.xlu0 %5658 }
 0xe3b   : > { %7552 = vrot.lane.b32.xlu0 %v7331_v12, %s10128_s22  ;;  %v5742_v12 = vsel %vm1038_vm3, %v12948_v44, %v12426_v5 }
 0xe3c   : > { %v12502_v63 = vpop.permute.xlu1 %5580  ;;  %7618 = vrot.lane.b32.xlu1 %v7460_v46, %s10125_s18  ;;  %v5746_v54 = vsel %vm333_vm0, %v5742_v12, %v12441_v40  ;;  %v12949_v40 = vld [vmem:[#allocation11_spill] sm:$0xff] }
 0xe3e   : > { %v5671_v48 = vpop.permute.xlu0 %5670 }
 0xe3f   : > { %7568 = vrot.lane.b32.xlu0 %v7328_v45, %s10129_s24  ;;  %v5750_v45 = vsel %vm1751_vm4, %v5746_v54, %v12459_v61  ;;  %v5734_v61 = vsel %vm1766_vm7, %v5730_v31, %v12371_v25  ;;  %v7412_v31 = vcombine.high %v7396_v28, %v10123_v11 }
 0xe40   : > { %v12511_v57 = vpop.permute.xlu1 %5592  ;;  %7650 = vrot.lane.b32.xlu1 %v7468_v17, %s10127_s20  ;;  %v5754_v3 = vsel %vm1756_vm6, %v5750_v45, %v5655_v22  ;;  %v5738_v13 = vsel %vm1771_vm8, %v5734_v61, %v12401_v41  ;;  %v5736_v41 = vsel %vm1766_vm7, %v12355_v49, %v12389_v55 }
 0xe41   : > { %v5758_v24 = vsel %vm1761_vm5, %v5754_v3, %v5671_v48  ;;  %v5740_v44 = vsel %vm1771_vm8, %v5736_v41, %v12413_v2  ;;  %v7429_v3 = vcombine.high %v7419_v37, %v10123_v11 }
 0xe42   : > { %v5675_v29 = vpop.permute.xlu0 %5674 }
 0xe43   : > { %7584 = vrot.lane.b32.xlu0 %v7332_v52, %s10130_s26  ;;  %v5744_v52 = vsel %vm1038_vm3, %v12949_v40, %v12435_v16 }
 0xe44   : > { %v12521_v35 = vpop.permute.xlu1 %5596  ;;  %7490 = vrot.lane.b32.xlu1 %v7427_v8, %s10124_s17  ;;  %v5748_v38 = vsel %vm333_vm0, %v5744_v52, %v12450_v39  ;;  %s10132_s17 = smov [#allocation2]  }
 0xe45   : > { %v5752_v21 = vsel %vm1751_vm4, %v5748_v38, %v12472_v9 }
 0xe46   : > { %v5687_v62 = vpop.permute.xlu0 %5686  ;;  %v5756_v48 = vsel %vm1756_vm6, %v5752_v21, %v5659_v56  ;;  %v7478_v56 = vcombine.high %v7468_v17, %v10123_v11 }
 0xe47   : > { %7696 = vrot.lane.b32.xlu0 %v7381_v59, %s10130_s26  ;;  %v5762_v22 = vsel %vm1766_vm7, %v5758_v24, %v5687_v62  ;;  %v5760_v39 = vsel %vm1761_vm5, %v5756_v48, %v5675_v29  ;;  %v7461_v62 = vcombine.high %v7445_v43, %v10123_v11  ;;  %v7426_v24 = vrot.slane %v7412_v31, %v11091_v0  ;;  %v12951_v48 = vld [vmem:[#allocation29_spill] sm:$0xff] }
 0xe48   : > { %v12528_v4 = vpop.permute.xlu1 %5608  ;;  %7506 = vrot.lane.b32.xlu1 %v7411_v53, %s10125_s18  ;;  %s10061_s18 = sshll.u32 %s10132_s17, 4  ;;  %s10062_s18 = int_to_ptr.vmem [resolvable:$false] %s10061_s18 }
 0xe49   : > { %v7475_v17 = vrot.slane %v7461_v62, %v11091_v0  ;;  %v7430_v53 = vcombine.high %v7426_v24, %v10123_v11  ;;  %v12950_v0 = vld [vmem:[#allocation33_spill] sm:$0xff] }
 0xe4a   : > { %v5691_v33 = vpop.permute.xlu0 %5690 }
 0xe4b   : > { %v5764_v46 = vsel %vm1766_vm7, %v5760_v39, %v5691_v33 }
 0xe4c   : > { %v12549_v5 = vpop.permute.xlu1 %5612  ;;  %7538 = vrot.lane.b32.xlu1 %v7419_v37, %s10127_s20  ;;  %v7479_v37 = vcombine.high %v7475_v17, %v10123_v11 }
 0xe4e   : > { %v5703_v8 = vpop.permute.xlu0 %5702 }
 0xe4f   : > { %v5766_v16 = vsel %vm1771_vm8, %v5762_v22, %v5703_v8 }
 0xe50   : > { %v5778_v59 = vcombine.low %v5738_v13, %v5766_v16  ;;  %v5625_v25 = vpop.permute.xlu1 %5624  ;;  %7634 = vrot.lane.b32.xlu1 %v7477_v15, %s10126_s19  ;;  %v5715_v16 = vsel %vm1038_vm3, %v12950_v0, %v12380_v27 }
 0xe51   : > { %v5719_v39 = vsel %vm333_vm0, %v5715_v16, %v12406_v14 }
 0xe52   : > { %v5785_v9 = vrot.slane %v5778_v59, %v11703_v7  ;;  %v5707_v30 = vpop.permute.xlu0 %5706  ;;  %v5743_v59 = vsel %vm1038_vm3, %v12951_v48, %v12528_v4  ;;  %v5723_v41 = vsel %vm1751_vm4, %v5719_v39, %v12430_v20 }
 0xe53   : > { %v5768_v12 = vsel %vm1771_vm8, %v5764_v46, %v5707_v30  ;;  %v5747_v62 = vsel %vm333_vm0, %v5743_v59, %v5625_v25 }
 0xe54   : > { %v5792_v29 = vrot.slane %v5785_v9, %v11703_v7  ;;  %v5808_v43 = vcombine.low %v5740_v44, %v5768_v12  ;;  %v5629_v42 = vpop.permute.xlu1 %5628  ;;  %7666 = vrot.lane.b32.xlu1 %v7478_v56, %s10128_s22  ;;  %v5727_v9 = vsel %vm1756_vm6, %v5723_v41, %v12446_v58  ;;  %v12952_v56 = vld [vmem:[#allocation12_spill] sm:$0xff] }
 0xe55   : > { %v5731_v4 = vsel %vm1761_vm5, %v5727_v9, %v12465_v18  ;;  %v5745_v14 = vsel %vm1038_vm3, %v12952_v56, %v12549_v5 }
 0xe56   : > { %8646 = vst.msk [vmem:[%s11751_s25 + $0x2] ss:$4 sm:$0x3] %vm11740_vm9, %v5792_v29  ;;  %v5815_v49 = vrot.slane %v5808_v43, %v11703_v7  ;;  %v12588_v55 = vpop.permute.xlu0 %7596  ;;  %v5735_v20 = vsel %vm1766_vm7, %v5731_v4, %v12492_v26  ;;  %v5749_v44 = vsel %vm333_vm0, %v5745_v14, %v5629_v42  ;;  %v5737_v26 = vsel %vm1766_vm7, %v12483_v34, %v12502_v63 }
 0xe57   : > { %v5739_v29 = vsel %vm1771_vm8, %v5735_v20, %v12511_v57 }
 0xe58   : > { %v5822_v54 = vrot.slane %v5815_v49, %v11703_v7  ;;  %v5641_v2 = vpop.permute.xlu1 %5640  ;;  %7682 = vrot.lane.b32.xlu1 %v7475_v17, %s10129_s24 }
 0xe59   : > { %v5751_v46 = vsel %vm1751_vm4, %v5747_v62, %v5641_v2 }
 0xe5a   : > { %8648 = vst.msk [vmem:[%s11751_s25 + $0x12] ss:$4 sm:$0x3] %vm11740_vm9, %v5822_v54  ;;  %v12596_v33 = vpop.permute.xlu0 %7612 }
 0xe5c   : > { %v5645_v45 = vpop.permute.xlu1 %5644  ;;  %7522 = vrot.lane.b32.xlu1 %v7428_v36, %s10126_s19  ;;  %v5741_v36 = vsel %vm1771_vm8, %v5737_v26, %v12521_v35  ;;  %s10063_s19 = scalar_lea.vmem %s10062_s18, 1024 }
 0xe5d   : > { %v5753_v18 = vsel %vm1751_vm4, %v5749_v44, %v5645_v45 }
 0xe5e   : > { %v12600_v1 = vpop.permute.xlu0 %7644 }
 0xe60   : > { %v5657_v40 = vpop.permute.xlu1 %5656  ;;  %7554 = vrot.lane.b32.xlu1 %v7429_v3, %s10128_s22  ;;  %s12730_s22 = scalar_lea.vmem %s12841_s7, %s8443_s21  ;;  %s8350_s21 = sshll.u32 %s11751_s25, 4  ;;  %s12779_s21 = int_to_ptr.vmem [resolvable:$true] %s8350_s21 }
 0xe61   : > { %v5755_v27 = vsel %vm1756_vm6, %v5751_v46, %v5657_v40  ;;  %s10057_s13 = scalar_lea.vmem %s12779_s21, 512  ;;  %p10064_p0 = scmp.lt.s32.totalorder %s12779_s21, %s10062_s18 }
 0xe62   : > { %v7485_v52 = vpop.permute.xlu0 %7484  ;;  %p10058_p11 = scmp.ne.s32.totalorder %s12779_s21, %s10057_s13  ;;  %p10065_p1 = scmp.lt.s32.totalorder %s10063_s19, %s10057_s13 }
 0xe63   : > { %v7704_v35 = vsel %vm1038_vm3, %v12166_v32, %v7485_v52 }
 0xe64   : > { %v5661_v61 = vpop.permute.xlu1 %5660  ;;  %7570 = vrot.lane.b32.xlu1 %v7426_v24, %s10129_s24  ;;  %p10059_p12 = pnand %p10058_p11, %p10218_p5  ;;  %p10066_p2 = por %p10065_p1, %p10064_p0 }
 0xe65   : > { %v5757_v5 = vsel %vm1756_vm6, %v5753_v18, %v5661_v61 }
 0xe66   : > { %v7501_v38 = vpop.permute.xlu0 %7500  ;;  %p10060_p13 = pneg %p10059_p12 }
 0xe68   : > { %v5673_v22 = vpop.permute.xlu1 %5672  ;;  %7586 = vrot.lane.b32.xlu1 %v7430_v53, %s10130_s26  ;;  %v7732_v53 = vsel %vm1038_vm3, %v12076_v23, %v12588_v55  ;;  %p10067_p3 = pnand %p10066_p2, %p10060_p13 }
 0xe69   : > { %v5759_v25 = vsel %vm1761_vm5, %v5755_v27, %v5673_v22  ;;  %v7736_v22 = vsel %vm333_vm0, %v7732_v53, %v12596_v33 }
 0xe6a   : > { %v7533_v8 = vpop.permute.xlu0 %7532 }
 0xe6c   : > { %v5677_v15 = vpop.permute.xlu1 %5676  ;;  %7698 = vrot.lane.b32.xlu1 %v7479_v37, %s10130_s26  ;;  %v7708_v37 = vsel %vm333_vm0, %v7704_v35, %v7501_v38 }
 0xe6d   : > { %v5761_v54 = vsel %vm1761_vm5, %v5757_v5, %v5677_v15 }
 0xe6e   : > { %v7629_v28 = vpop.permute.xlu0 %7628 }
 0xe70   : > { %v5689_v13 = vpop.permute.xlu1 %5688 }
 0xe71   : > { %v5763_v12 = vsel %vm1766_vm7, %v5759_v25, %v5689_v13  ;;  %v7740_v13 = vsel %vm1751_vm4, %v7736_v22, %v7629_v28 }
 0xe72   : > { %v7661_v21 = vpop.permute.xlu0 %7660  ;;  %v7744_v23 = vsel %vm1756_vm6, %v7740_v13, %v12600_v1 }
 0xe73   : > { %v7748_v33 = vsel %vm1761_vm5, %v7744_v23, %v7661_v21 }
 0xe74   : > { %v5693_v11 = vpop.permute.xlu1 %5692 }
 0xe75   : > { %v5765_v42 = vsel %vm1766_vm7, %v5761_v54, %v5693_v11 }
 0xe76   : > { %v7677_v30 = vpop.permute.xlu0 %7676 }
 0xe77   : > { %v7752_v38 = vsel %vm1766_vm7, %v7748_v33, %v7677_v30 }
 0xe78   : > { %v5705_v58 = vpop.permute.xlu1 %5704 }
 0xe79   : > { %v5767_v43 = vsel %vm1771_vm8, %v5763_v12, %v5705_v58 }
 0xe7a   : > { %v5793_v49 = vcombine.low %v5739_v29, %v5767_v43  ;;  %v7517_v17 = vpop.permute.xlu0 %7516 }
 0xe7b   : > { %v7712_v0 = vsel %vm1751_vm4, %v7708_v37, %v7517_v17 }
 0xe7c   : > { %v5800_v2 = vrot.slane %v5793_v49, %v11703_v7  ;;  %v5709_v57 = vpop.permute.xlu1 %5708  ;;  %v7716_v32 = vsel %vm1756_vm6, %v7712_v0, %v7533_v8 }
 0xe7d   : > { %v5769_v45 = vsel %vm1771_vm8, %v5765_v42, %v5709_v57 }
 0xe7e   : > { %v5807_v3 = vrot.slane %v5800_v2, %v11703_v7  ;;  %v5823_v31 = vcombine.low %v5741_v36, %v5769_v45  ;;  %v7549_v40 = vpop.permute.xlu0 %7548 }
 0xe7f   : > { %v7720_v52 = vsel %vm1761_vm5, %v7716_v32, %v7549_v40 }
 0xe80   : > { %8647 = vst.msk [vmem:[%s11751_s25 + $0xa] ss:$4 sm:$0x3] %vm11740_vm9, %v5807_v3  ;;  %v5830_v34 = vrot.slane %v5823_v31, %v11703_v7  ;;  %v7599_v63 = vpop.permute.xlu1 %7598 }
 0xe81   : > { %v7733_v43 = vsel %vm1038_vm3, %v12250_v60, %v7599_v63 }
 0xe82   : > { %v5837_v24 = vrot.slane %v5830_v34, %v11703_v7  ;;  %v7565_v61 = vpop.permute.xlu0 %7564 }
 0xe83   : > { %v7724_v48 = vsel %vm1766_vm7, %v7720_v52, %v7565_v61 }
 0xe84   : > { %8649 = vst.msk [vmem:[%s11751_s25 + $0x1a] ss:$4 sm:$0x3] %vm11740_vm9, %v5837_v24  ;;  %v7615_v15 = vpop.permute.xlu1 %7614 }
 0xe85   : > { %v7737_v49 = vsel %vm333_vm0, %v7733_v43, %v7615_v15 }
 0xe86   : > { %v7693_v16 = vpop.permute.xlu0 %7692 }
 0xe87   : > { %v7756_v28 = vsel %vm1771_vm8, %v7752_v38, %v7693_v16 }
 0xe88   : > { %v7647_v55 = vpop.permute.xlu1 %7646 }
 0xe8a   : > { %v7581_v59 = vpop.permute.xlu0 %7580 }
 0xe8b   : > { %v7728_v39 = vsel %vm1771_vm8, %v7724_v48, %v7581_v59  ;;  %v12719_v59 = vld [vmem:[%s12839_s5] ss:$0 sm:$0xff] }
 0xe8c   : > { %v7768_v62 = vcombine.low %v7728_v39, %v7756_v28  ;;  %v7487_v11 = vpop.permute.xlu1 %7486 }
 0xe8d   : > { %v7705_v5 = vsel %vm1038_vm3, %v12278_v50, %v7487_v11 }
 0xe8e   : > { %v7775_v1 = vrot.slane %v7768_v62, %v11703_v7  ;;  %v7601_v41 = vpop.permute.xlu0 %7600 }
 0xe8f   : > { %v7734_v15 = vsel %vm1038_vm3, %v12368_v10, %v7601_v41 }
 0xe90   : > { %v7782_v8 = vrot.slane %v7775_v1, %v11703_v7  ;;  %v7503_v46 = vpop.permute.xlu1 %7502 }
 0xe91   : > { %v7709_v17 = vsel %vm333_vm0, %v7705_v5, %v7503_v46 }
 0xe92   : > { %8727 = vst.msk [vmem:[%s11751_s25 + $0x3] ss:$4 sm:$0x3] %vm11740_vm9, %v7782_v8  ;;  %v7617_v21 = vpop.permute.xlu0 %7616 }
 0xe93   : > { %v7738_v0 = vsel %vm333_vm0, %v7734_v15, %v7617_v21 }
 0xe94   : > { %v7535_v9 = vpop.permute.xlu1 %7534 }
 0xe96   : > { %v7649_v27 = vpop.permute.xlu0 %7648 }
 0xe98   : > { %v7631_v30 = vpop.permute.xlu1 %7630 }
 0xe99   : > { %v7741_v26 = vsel %vm1751_vm4, %v7737_v49, %v7631_v30 }
 0xe9a   : > { %v7489_v4 = vpop.permute.xlu0 %7488  ;;  %v7745_v57 = vsel %vm1756_vm6, %v7741_v26, %v7647_v55 }
 0xe9b   : > { %v7706_v13 = vsel %vm1038_vm3, %v12411_v47, %v7489_v4 }
 0xe9c   : > { %v7663_v56 = vpop.permute.xlu1 %7662 }
 0xe9d   : > { %v7749_v60 = vsel %vm1761_vm5, %v7745_v57, %v7663_v56 }
 0xe9e   : > { %v7505_v14 = vpop.permute.xlu0 %7504 }
 0xe9f   : > { %v7710_v16 = vsel %vm333_vm0, %v7706_v13, %v7505_v14 }
 0xea0   : > { %v7679_v25 = vpop.permute.xlu1 %7678 }
 0xea1   : > { %v7753_v50 = vsel %vm1766_vm7, %v7749_v60, %v7679_v25 }
 0xea2   : > { %v7537_v20 = vpop.permute.xlu0 %7536 }
 0xea4   : > { %v7519_v44 = vpop.permute.xlu1 %7518 }
 0xea5   : > { %v7713_v42 = vsel %vm1751_vm4, %v7709_v17, %v7519_v44 }
 0xea6   : > { %v7633_v12 = vpop.permute.xlu0 %7632  ;;  %v7717_v36 = vsel %vm1756_vm6, %v7713_v42, %v7535_v9 }
 0xea7   : > { %v7742_v32 = vsel %vm1751_vm4, %v7738_v0, %v7633_v12 }
 0xea8   : > { %v7551_v58 = vpop.permute.xlu1 %7550  ;;  %v7746_v52 = vsel %vm1756_vm6, %v7742_v32, %v7649_v27 }
 0xea9   : > { %v7721_v3 = vsel %vm1761_vm5, %v7717_v36, %v7551_v58 }
 0xeaa   : > { %v7665_v29 = vpop.permute.xlu0 %7664 }
 0xeab   : > { %v7750_v47 = vsel %vm1761_vm5, %v7746_v52, %v7665_v29 }
 0xeac   : > { %v7567_v18 = vpop.permute.xlu1 %7566 }
 0xead   : > { %v7725_v31 = vsel %vm1766_vm7, %v7721_v3, %v7567_v18 }
 0xeae   : > { %v7681_v54 = vpop.permute.xlu0 %7680 }
 0xeaf   : > { %v7754_v28 = vsel %vm1766_vm7, %v7750_v47, %v7681_v54 }
 0xeb0   : > { %v7695_v2 = vpop.permute.xlu1 %7694 }
 0xeb1   : > { %v7757_v34 = vsel %vm1771_vm8, %v7753_v50, %v7695_v2 }
 0xeb2   : > { %v7521_v45 = vpop.permute.xlu0 %7520 }
 0xeb3   : > { %v7714_v55 = vsel %vm1751_vm4, %v7710_v16, %v7521_v45 }
 0xeb4   : > { %v7583_v40 = vpop.permute.xlu1 %7582  ;;  %v7718_v10 = vsel %vm1756_vm6, %v7714_v55, %v7537_v20 }
 0xeb5   : > { %v7729_v63 = vsel %vm1771_vm8, %v7725_v31, %v7583_v40 }
 0xeb6   : > { %v7783_v24 = vcombine.low %v7729_v63, %v7757_v34  ;;  %v7553_v61 = vpop.permute.xlu0 %7552 }
 0xeb7   : > { %v7722_v48 = vsel %vm1761_vm5, %v7718_v10, %v7553_v61 }
 0xeb8   : > { %v7790_v53 = vrot.slane %v7783_v24, %v11703_v7  ;;  %v7603_v35 = vpop.permute.xlu1 %7602 }
 0xeb9   : > { %v7735_v2 = vsel %vm1038_vm3, %v12476_v6, %v7603_v35 }
 0xeba   : > { %v7797_v22 = vrot.slane %v7790_v53, %v11703_v7  ;;  %v7569_v37 = vpop.permute.xlu0 %7568 }
 0xebb   : > { %v7726_v39 = vsel %vm1766_vm7, %v7722_v48, %v7569_v37 }
 0xebc   : > { %8728 = vst.msk [vmem:[%s11751_s25 + $0xb] ss:$4 sm:$0x3] %vm11740_vm9, %v7797_v22  ;;  %v7619_v23 = vpop.permute.xlu1 %7618 }
 0xebd   : > { %v7739_v36 = vsel %vm333_vm0, %v7735_v2, %v7619_v23 }
 0xebe   : > { %v7585_v33 = vpop.permute.xlu0 %7584 }
 0xebf   : > { %v7730_v11 = vsel %vm1771_vm8, %v7726_v39, %v7585_v33 }
 0xec0   : > { %v7651_v38 = vpop.permute.xlu1 %7650 }
 0xec2   : > { %v7697_v62 = vpop.permute.xlu0 %7696 }
 0xec3   : > { %v7758_v1 = vsel %vm1771_vm8, %v7754_v28, %v7697_v62  ;;  %v9575_v41 = vpop.f32.mrb[40].mxu0 }
 0xec4   : > { %v7798_v8 = vcombine.low %v7730_v11, %v7758_v1  ;;  %v8311_v46 = vadd.f32 %v9575_v41, %v12719_v59  ;;  %v8256_v21 = vpop.f32.mrb[41].mxu0  ;;  %v7491_v9 = vpop.permute.xlu1 %7490 }
 0xec5   : > { %v8310_v27 = vadd.f32 %v12719_v59, %v8256_v21  ;;  %v7707_v57 = vsel %vm1038_vm3, %v12508_v51, %v7491_v9 }
 0xec6   : > { %v7805_v30 = vrot.slane %v7798_v8, %v11703_v7  ;;  %8319 = vst.msk [vmem:[%s12730_s22 + $0x8] sm:$0xff] %vm333_vm0, %v8311_v46 }
 0xec7   : > { %8318 = vst.msk [vmem:[%s12730_s22] sm:$0xff] %vm333_vm0, %v8310_v27 }
 0xec8   : > { %v7812_v4 = vrot.slane %v7805_v30, %v11703_v7  ;;  %v7507_v56 = vpop.permute.xlu1 %7506 }
 0xec9   : > { %v7711_v45 = vsel %vm333_vm0, %v7707_v57, %v7507_v56 }
 0xeca   : > { %8729 = vst.msk [vmem:[%s11751_s25 + $0x13] ss:$4 sm:$0x3] %vm11740_vm9, %v7812_v4  ;;  %v9578_v14 = vpop.f32.mrb[42].mxu0 }
 0xecb   : > { %v8313_v25 = vadd.f32 %v9578_v14, %v12719_v59  ;;  %v8266_v20 = vpop.f32.mrb[43].mxu0 }
 0xecc   : > { %v8312_v44 = vadd.f32 %v12719_v59, %v8266_v20  ;;  %v7539_v12 = vpop.permute.xlu1 %7538 }
 0xecd   : > { %8321 = vst.msk [vmem:[%s12730_s22 + $0x18] sm:$0xff] %vm333_vm0, %v8313_v25 }
 0xece   : > { %8320 = vst.msk [vmem:[%s12730_s22 + $0x10] sm:$0xff] %vm333_vm0, %v8312_v44  ;;  %v9581_v58 = vpop.f32.mrb[44].mxu0 }
 0xecf   : > { %v8315_v29 = vadd.f32 %v9581_v58, %v12719_v59  ;;  %v8276_v18 = vpop.f32.mrb[45].mxu0 }
 0xed0   : > { %v8314_v43 = vadd.f32 %v12719_v59, %v8276_v18  ;;  %v7635_v5 = vpop.permute.xlu1 %7634 }
 0xed1   : > { %8323 = vst.msk [vmem:[%s12730_s22 + $0x28] sm:$0xff] %vm333_vm0, %v8315_v29  ;;  %v7743_v60 = vsel %vm1751_vm4, %v7739_v36, %v7635_v5 }
 0xed2   : > { %8322 = vst.msk [vmem:[%s12730_s22 + $0x20] sm:$0xff] %vm333_vm0, %v8314_v43  ;;  %v7747_v31 = vsel %vm1756_vm6, %v7743_v60, %v7651_v38 }
 0xed4   : > { %v7667_v49 = vpop.permute.xlu1 %7666 }
 0xed5   : > { %v7751_v6 = vsel %vm1761_vm5, %v7747_v31, %v7667_v49 }
 0xed8   : > { %v7683_v17 = vpop.permute.xlu1 %7682 }
 0xed9   : > { %v7755_v34 = vsel %vm1766_vm7, %v7751_v6, %v7683_v17 }
 0xedc   : > { %v7523_v54 = vpop.permute.xlu1 %7522 }
 0xedd   : > { %v7715_v3 = vsel %vm1751_vm4, %v7711_v45, %v7523_v54 }
 0xede   : > { %v7719_v40 = vsel %vm1756_vm6, %v7715_v3, %v7539_v12 }
 0xee0   : > { %v7555_v26 = vpop.permute.xlu1 %7554 }
 0xee1   : > { %v7723_v51 = vsel %vm1761_vm5, %v7719_v40, %v7555_v26 }
 0xee4   : > { %v7571_v42 = vpop.permute.xlu1 %7570 }
 0xee5   : > { %v7727_v63 = vsel %vm1766_vm7, %v7723_v51, %v7571_v42 }
 0xee8   : > { %v7587_v50 = vpop.permute.xlu1 %7586 }
 0xee9   : > { %v7731_v61 = vsel %vm1771_vm8, %v7727_v63, %v7587_v50 }
 0xeec   : > { %v7699_v24 = vpop.permute.xlu1 %7698 }
 0xeed   : > { %v7759_v53 = vsel %vm1771_vm8, %v7755_v34, %v7699_v24 }
 0xeee   : > { %v7813_v35 = vcombine.low %v7731_v61, %v7759_v53 }
 0xef0   : > { %v7820_v22 = vrot.slane %v7813_v35, %v11703_v7 }
 0xef2   : > { %v7827_v37 = vrot.slane %v7820_v22, %v11703_v7 }
 0xef4   : > { %8730 = vst.msk [vmem:[%s11751_s25 + $0x1b] ss:$4 sm:$0x3] %vm11740_vm9, %v7827_v37 }
 0xef5   : > { %10070 = shalt.err (!%p10067_p3)
}
 0xef6   : > { %s10071_s10 = scalar_lea.hbm %s12777_s12, 512  ;;  %s10075_s23 = scalar_lea.hbm %s12842_s8, 1024 }
 0xef7   : > { %p10072_p4 = scmp.ne.s32.totalorder %s12777_s12, %s10071_s10  ;;  %p10076_p9 = scmp.lt.u32.totalorder %s12777_s12, %s12842_s8 }
 0xef8   : > { %p10077_p10 = scmp.lt.u32.totalorder %s10075_s23, %s10071_s10  ;;  %p10079_p12 = scmp.lt.u32.totalorder %s10071_s10, %s12777_s12 }
 0xef9   : > { %p10073_p7 = pnand %p10072_p4, %p10218_p5 }
 0xefa   : > { %p10078_p11 = por %p10077_p10, %p10076_p9 }
 0xefb   : > { %p10074_p8 = pneg %p10073_p7 }
 0xefc   : > { %p10080_p13 = por %p10079_p12, %p10078_p11 }
 0xefe   : > { %p10081_p0 = pnand %p10080_p13, %p10074_p8 }
 0xf00   : > { %10084 = shalt.err (!%p10081_p0)
}
 0xf01   : > { %s10133_s13 = smov 128   ;;  %s10134_s17 = smov 8   ;;  %v9584_v7 = vpop.f32.mrb[46].mxu0 }
 0xf02   : > { %9869 = dma.vmem_to_hbm [thread:$0]  (%p10218_p5), %s12779_s21, 512, %s12777_s12, %s12787_s9, %s10133_s13, %s10133_s13, %s10134_s17   ;;  %v8317_v19 = vadd.f32 %v9584_v7, %v12719_v59  ;;  %v8286_v15 = vpop.f32.mrb[47].mxu0 }
 0xf03   : > { %v8316_v13 = vadd.f32 %v12719_v59, %v8286_v15 }
 0xf04   : > { %8325 = vst.msk [vmem:[%s12730_s22 + $0x38] sm:$0xff] %vm333_vm0, %v8317_v19 }
 0xf05   : > { %8324 = vst.msk [vmem:[%s12730_s22 + $0x30] sm:$0xff] %vm333_vm0, %v8316_v13 }
 0xf06 PF: > { %p9875_p1 = scmp.ge.s32.totalorder %s10119_s30, 2  ;;  %s8373_s18 = sand.u32 1, %s10107_s27  }
 0xf07   : > { %s8374_s15 = scalar_lea.sflag [#allocation3], %s8373_s18 }
 0xf08   : > { %p9872_p2 = pnand %p9875_p1, %p10222_p6 }
 0xf0a   : > { %10102 = dma.done.wait (!%p9872_p2), %s8374_s15, 512  }
 0xf0b   : > { %10104 = vsyncadd (!%p9872_p2), %s8374_s15, 4294966784  ;;  %p19_p5 = scmp.ge.s32.totalorder %s10205_s11, 4   ;;  %s12953_s27 = smov %s10111_s28 }
 0xf0c   : > { %s12954_s28 = smov %s10115_s29  ;;  %s12955_s29 = smov %s10216_s14 }
 0xf0d   : > { %s12956_s30 = smov %s10205_s11  ;;  %21 = sbr.rel (!%p19_p5) target bundleno = 3 (0x3), region = 125 }
 0xf14   :  { %8379 = vsyncpa [#allocation3], 1 }
 0xf15   :  { %8381 = vsyncpa [#allocation3 + $0x1], 1 }

</bundles_post_ra>
